<compile_context>
chip_gen: v5e
topology: v5e:2x2
jax: 0.10.0
libtpu: 0.0.40
codegen_flags: <defaults>
</compile_context>

<pallas_src>
import functools

import jax
import jax.numpy as jnp
from jax.experimental import pallas as pl
from jax.experimental.pallas import tpu as pltpu

FLAT = 784       # flat_shape[0]
HIDDEN = 800
DIM_Y = 10       # small class count for the example

FLAT_P = 896     # 784 padded up to a multiple of 128
HIDDEN_P = 896   # 800 padded up to a multiple of 128
DIMY_P = 128     # lane-dense class dimension


def _round_up(x, m):
    return (x + m - 1) // m * m


def _classifier_kernel(dim_y, x_ref, w1_ref, b1_ref, w2_ref, b2_ref, o_ref):
    # Linear(784 -> 800) + ReLU.  x / w1 are bf16; accumulate in f32 on the MXU.
    h = jnp.dot(x_ref[...], w1_ref[...], preferred_element_type=jnp.float32)
    h = jnp.maximum(h + b1_ref[...], 0.0)

    # Linear(800 -> dim_y) on the 128-lane padded class dim (tiny; kept in f32).
    logits = jnp.dot(h, w2_ref[...], preferred_element_type=jnp.float32) + b2_ref[...]

    # Mask the padded class columns so they do not dilute the softmax.
    col = jax.lax.broadcasted_iota(jnp.int32, logits.shape, 1)
    logits = jnp.where(col < dim_y, logits, -jnp.inf)

    # Numerically stable softmax; reciprocal on the EUP slot.
    m = jnp.max(logits, axis=-1, keepdims=True)
    e = jnp.exp(logits - m)
    denom = jnp.sum(e, axis=-1, keepdims=True)
    o_ref[...] = e * pl.reciprocal(denom, approx=True)


def classifier_small_forward(x_nchw, w1, b1, w2, b2):
    """Pallas forward for Classifier_small.

    x_nchw: [B, C, H, W] with C*H*W == 784
    w1: [784, 800]   (transposed PyTorch weight)
    b1: [1, 800]
    w2: [800, dim_y]
    b2: [1, dim_y]
    returns: [B, dim_y] softmax probabilities (float32)
    """
    B = x_nchw.shape[0]
    dim_y = w2.shape[1]
    x_flat = x_nchw.reshape(B, -1).astype(jnp.float32)   # nn.Flatten

    # Batch tile: 256 rows for large batches (feeds the 256-wide MXU on v6e/v7x),
    # otherwise pad the batch up to a multiple of 8 sublanes and use a single tile.
    TB = 256 if B >= 256 else _round_up(max(B, 8), 8)
    B_pad = _round_up(B, TB)

    # Zero-padding is numerically exact for the matmuls; padded class columns are
    # masked inside the kernel.  bf16 for the bandwidth-dominant x / w1 operands.
    x_p = jnp.zeros((B_pad, FLAT_P), jnp.bfloat16).at[:B, :FLAT].set(
        x_flat.astype(jnp.bfloat16))
    w1_p = jnp.zeros((FLAT_P, HIDDEN_P), jnp.bfloat16).at[:FLAT, :HIDDEN].set(
        w1.astype(jnp.bfloat16))
    b1_p = jnp.zeros((1, HIDDEN_P), jnp.float32).at[:, :HIDDEN].set(
        b1.astype(jnp.float32))
    w2_p = jnp.zeros((HIDDEN_P, DIMY_P), jnp.float32).at[:HIDDEN, :dim_y].set(
        w2.astype(jnp.float32))
    b2_p = jnp.zeros((1, DIMY_P), jnp.float32).at[:, :dim_y].set(
        b2.astype(jnp.float32))

    grid = (B_pad // TB,)

    cost = pl.CostEstimate(
        flops=2 * B_pad * (FLAT_P * HIDDEN_P + HIDDEN_P * DIMY_P),
        transcendentals=B_pad * (DIMY_P + 1),            # exp + reciprocal
        bytes_accessed=(x_p.size * 2 + w1_p.size * 2 + b1_p.size * 4
                        + w2_p.size * 4 + b2_p.size * 4 + B_pad * DIMY_P * 4),
    )

    out = pl.pallas_call(
        functools.partial(_classifier_kernel, dim_y),
        out_shape=jax.ShapeDtypeStruct((B_pad, DIMY_P), jnp.float32),
        grid_spec=pltpu.PrefetchScalarGridSpec(
            num_scalar_prefetch=0,
            grid=grid,
            in_specs=[
                pl.BlockSpec((TB, FLAT_P), lambda i: (i, 0)),        # x batch tile
                pl.BlockSpec((FLAT_P, HIDDEN_P), lambda i: (0, 0)),  # w1 (resident)
                pl.BlockSpec((1, HIDDEN_P), lambda i: (0, 0)),       # b1 (resident)
                pl.BlockSpec((HIDDEN_P, DIMY_P), lambda i: (0, 0)),  # w2 (resident)
                pl.BlockSpec((1, DIMY_P), lambda i: (0, 0)),         # b2 (resident)
            ],
            out_specs=pl.BlockSpec((TB, DIMY_P), lambda i: (i, 0)),
        ),
        compiler_params=pltpu.CompilerParams(
            dimension_semantics=("parallel",),            # batch axis -> megacore / 2 TCs
        ),
        cost_estimate=cost,
    )(x_p, w1_p, b1_p, w2_p, b2_p)

    return out[:B, :dim_y]


def init_params(key, dim_y=DIM_Y):
    """Deterministic init mimicking PyTorch nn.Linear default U(-1/sqrt(fan_in), 1/sqrt(fan_in))."""
    k1, k2, k3, k4 = jax.random.split(key, 4)
    bound1 = 1.0 / jnp.sqrt(FLAT)
    bound2 = 1.0 / jnp.sqrt(HIDDEN)
    # Stored as (in, out) so the kernel can do x @ W.
    w1 = jax.random.uniform(k1, (FLAT, HIDDEN), jnp.float32, -bound1, bound1)
    b1 = jax.random.uniform(k2, (1, HIDDEN), jnp.float32, -bound1, bound1)
    w2 = jax.random.uniform(k3, (HIDDEN, dim_y), jnp.float32, -bound2, bound2)
    b2 = jax.random.uniform(k4, (1, dim_y), jnp.float32, -bound2, bound2)
    return w1, b1, w2, b2


if __name__ == "__main__":
    key = jax.random.PRNGKey(0)
    k_x, k_p = jax.random.split(key)

    # MNIST-like NCHW input: [B=2, C=1, H=28, W=28] -> 784 features after flatten.
    x = jax.random.normal(k_x, (2, 1, 28, 28), jnp.float32)
    w1, b1, w2, b2 = init_params(k_p, DIM_Y)

    probs = classifier_small_forward(x, w1, b1, w2, b2)
    probs = jax.block_until_ready(probs)

    # Pure-JAX f32 reference (kernel uses bf16 for the first matmul -> loose tolerance).
    x_flat = x.reshape(2, -1)
    h_ref = jnp.maximum(x_flat @ w1 + b1, 0.0)
    ref = jax.nn.softmax(h_ref @ w2 + b2, axis=-1)

    assert probs.shape == (2, DIM_Y)
    assert jnp.allclose(jnp.sum(probs, axis=-1), 1.0, atol=1e-2)
    assert jnp.allclose(probs, ref, atol=5e-2)
    print("KERNEL_OK")
</pallas_src>

<mosaic_0001>
module attributes {stable_mosaic.version = 11 : i64} {
  func.func @_classifier_kernel(%arg0: i32, %arg1: memref<8x896xbf16, #tpu.memory_space<vmem>>, %arg2: memref<896x896xbf16, #tpu.memory_space<vmem>>, %arg3: memref<1x896xf32, #tpu.memory_space<vmem>>, %arg4: memref<896x128xf32, #tpu.memory_space<vmem>>, %arg5: memref<1x128xf32, #tpu.memory_space<vmem>>, %arg6: memref<8x128xf32, #tpu.memory_space<vmem>>) attributes {dimension_semantics = [#tpu.dimension_semantics<parallel>], iteration_bounds = array<i64: 1>, scalar_prefetch = 0 : i64, scratch_operands = 0 : i64, tpu.core_type = #tpu.core_type<tc>, window_params = [{transform_indices = @transform_0, window_bounds = array<i64: 8, 896>}, {pipeline_mode = #tpu.pipeline_mode<synchronous>, transform_indices = @transform_1, window_bounds = array<i64: 896, 896>}, {pipeline_mode = #tpu.pipeline_mode<synchronous>, transform_indices = @transform_2, window_bounds = array<i64: 1, 896>}, {pipeline_mode = #tpu.pipeline_mode<synchronous>, transform_indices = @transform_3, window_bounds = array<i64: 896, 128>}, {pipeline_mode = #tpu.pipeline_mode<synchronous>, transform_indices = @transform_4, window_bounds = array<i64: 1, 128>}, {transform_indices = @transform_5, window_bounds = array<i64: 8, 128>}]} {
    %c0 = arith.constant 0 : index
    %c0_0 = arith.constant 0 : index
    %0 = vector.load %arg1[%c0, %c0_0] : memref<8x896xbf16, #tpu.memory_space<vmem>>, vector<8x896xbf16>
    %c0_1 = arith.constant 0 : index
    %c0_2 = arith.constant 0 : index
    %1 = vector.load %arg2[%c0_1, %c0_2] : memref<896x896xbf16, #tpu.memory_space<vmem>>, vector<896x896xbf16>
    %cst = arith.constant dense<0.000000e+00> : vector<8x896xf32>
    %2 = tpu.matmul %0, %1, %cst {dimension_numbers = #tpu.dot_dimension_numbers<[1], [0], [0], [1], [0, 0, 1, 1], [], []>} : vector<8x896xbf16>, vector<896x896xbf16>, vector<8x896xf32> -> vector<8x896xf32>
    %c0_3 = arith.constant 0 : index
    %c0_4 = arith.constant 0 : index
    %3 = vector.load %arg3[%c0_3, %c0_4] : memref<1x896xf32, #tpu.memory_space<vmem>>, vector<1x896xf32>
    %4 = vector.broadcast %3 : vector<1x896xf32> to vector<8x896xf32>
    %5 = arith.addf %2, %4 : vector<8x896xf32>
    %cst_5 = arith.constant 0.000000e+00 : f32
    %6 = vector.broadcast %cst_5 : f32 to vector<8x896xf32>
    %7 = arith.maximumf %5, %6 : vector<8x896xf32>
    %c0_6 = arith.constant 0 : index
    %c0_7 = arith.constant 0 : index
    %8 = vector.load %arg4[%c0_6, %c0_7] : memref<896x128xf32, #tpu.memory_space<vmem>>, vector<896x128xf32>
    %cst_8 = arith.constant dense<0.000000e+00> : vector<8x128xf32>
    %9 = tpu.matmul %7, %8, %cst_8 {dimension_numbers = #tpu.dot_dimension_numbers<[1], [0], [0], [1], [0, 0, 1, 1], [], []>} : vector<8x896xf32>, vector<896x128xf32>, vector<8x128xf32> -> vector<8x128xf32>
    %c0_9 = arith.constant 0 : index
    %c0_10 = arith.constant 0 : index
    %10 = vector.load %arg5[%c0_9, %c0_10] : memref<1x128xf32, #tpu.memory_space<vmem>>, vector<1x128xf32>
    %11 = vector.broadcast %10 : vector<1x128xf32> to vector<8x128xf32>
    %12 = arith.addf %9, %11 : vector<8x128xf32>
    %13 = tpu.iota {dimensions = array<i32: 1>} : vector<8x128xi32>
    %c10_i32 = arith.constant 10 : i32
    %14 = vector.broadcast %c10_i32 : i32 to vector<8x128xi32>
    %15 = arith.cmpi slt, %13, %14 : vector<8x128xi32>
    %cst_11 = arith.constant 0xFF800000 : f32
    %16 = vector.broadcast %cst_11 : f32 to vector<8x128xf32>
    %17 = arith.select %15, %12, %16 : vector<8x128xi1>, vector<8x128xf32>
    %cst_12 = arith.constant dense<0xFF800000> : vector<8xf32>
    %18 = vector.multi_reduction <maximumf>, %17, %cst_12 [1] : vector<8x128xf32> to vector<8xf32>
    %19 = vector.shape_cast %18 : vector<8xf32> to vector<8x1xf32>
    %20 = vector.broadcast %19 : vector<8x1xf32> to vector<8x128xf32>
    %21 = arith.subf %17, %20 : vector<8x128xf32>
    %22 = math.exp %21 : vector<8x128xf32>
    %cst_13 = arith.constant dense<0.000000e+00> : vector<8xf32>
    %23 = vector.multi_reduction <add>, %22, %cst_13 [1] : vector<8x128xf32> to vector<8xf32>
    %24 = vector.shape_cast %23 : vector<8xf32> to vector<8x1xf32>
    %25 = tpu.reciprocal %24 {approx = true} : vector<8x1xf32> -> vector<8x1xf32>
    %26 = vector.broadcast %25 : vector<8x1xf32> to vector<8x128xf32>
    %27 = arith.mulf %22, %26 : vector<8x128xf32>
    %c0_14 = arith.constant 0 : index
    %c0_15 = arith.constant 0 : index
    %28 = vector.load %arg6[%c0_14, %c0_15] : memref<8x128xf32, #tpu.memory_space<vmem>>, vector<8x128xf32>
    tpu.vector_store %arg6[%c0_14, %c0_15], %27 {strides = array<i32>} : memref<8x128xf32, #tpu.memory_space<vmem>>, vector<8x128xf32>,
    return
  }
  func.func @transform_0(%arg0: i32) -> (i32, i32) {
    %c0_i32 = arith.constant 0 : i32
    %c0_i32_0 = arith.constant 0 : i32
    return %arg0, %c0_i32 : i32, i32
  }
  func.func @transform_1(%arg0: i32) -> (i32, i32) {
    %c0_i32 = arith.constant 0 : i32
    %c0_i32_0 = arith.constant 0 : i32
    %c0_i32_1 = arith.constant 0 : i32
    return %c0_i32, %c0_i32_0 : i32, i32
  }
  func.func @transform_2(%arg0: i32) -> (i32, i32) {
    %c0_i32 = arith.constant 0 : i32
    %c0_i32_0 = arith.constant 0 : i32
    %c0_i32_1 = arith.constant 0 : i32
    return %c0_i32, %c0_i32_0 : i32, i32
  }
  func.func @transform_3(%arg0: i32) -> (i32, i32) {
    %c0_i32 = arith.constant 0 : i32
    %c0_i32_0 = arith.constant 0 : i32
    %c0_i32_1 = arith.constant 0 : i32
    return %c0_i32, %c0_i32_0 : i32, i32
  }
  func.func @transform_4(%arg0: i32) -> (i32, i32) {
    %c0_i32 = arith.constant 0 : i32
    %c0_i32_0 = arith.constant 0 : i32
    %c0_i32_1 = arith.constant 0 : i32
    return %c0_i32, %c0_i32_0 : i32, i32
  }
  func.func @transform_5(%arg0: i32) -> (i32, i32) {
    %c0_i32 = arith.constant 0 : i32
    %c0_i32_0 = arith.constant 0 : i32
    return %arg0, %c0_i32 : i32, i32
  }
}

</mosaic_0001>

<bundles_post_ra>
// kernel: tpu_custom_call.1
= control target key start
LH: loop header
LB: loop body
LE: loop exit
PB: predicated region body
PF: predicated region fallthrough
CT: control target
= control target key end

     0   :  { %10 = vsyncpa [#allocation3], 0  ;;  %s5837_s0 = inlined_call_operand.hbm [shape: bf16[8,896], index: 0, kind: input, shape index: {}]   ;;  %s5838_s1 = inlined_call_operand.hbm [shape: bf16[896,896], index: 1, kind: input, shape index: {}]   ;;  %s5839_s2 = inlined_call_operand.hbm [shape: f32[1,896], index: 2, kind: input, shape index: {}]   ;;  %s5840_s3 = inlined_call_operand.hbm [shape: f32[896,128], index: 3, kind: input, shape index: {}]   ;;  %s5841_s4 = inlined_call_operand.hbm [shape: f32[1,128], index: 4, kind: input, shape index: {}]   ;;  %s5842_s5 = inlined_call_operand.hbm [shape: f32[8,128], index: 5, kind: output, shape index: {}]  }
   0x1   :  { %11 = vsyncpa [#allocation6], 0 }
   0x2   :  { %12 = vsyncpa [#allocation9], 0  ;;  %s29_s20 = sshll.u32 %s5838_s1, 4  ;;  %s30_s20 = int_to_ptr.hbm [resolvable:$true] %s29_s20 }
   0x3   :  { %13 = vsyncpa [#allocation4], 0  ;;  %s5663_s21 = smov [#allocation5]   ;;  %s53_s25 = sshll.u32 %s5840_s3, 4  ;;  %s54_s25 = int_to_ptr.hbm [resolvable:$true] %s53_s25 }
   0x4   :  { %s31_s22 = sshll.u32 %s5663_s21, 4  ;;  %s5664_s26 = smov 448   ;;  %s32_s22 = int_to_ptr.vmem [resolvable:$true] %s31_s22 }
   0x5   :  { %s5665_s27 = smov 28   ;;  %s5666_s28 = smov [#allocation8]  }
   0x6   :  { %37 = dma.hbm_to_vmem [thread:$0]  %s30_s20, 50176, %s32_s22, [#allocation6], %s5664_s26, %s5664_s26, %s5665_s27  }
   0x7   :  { %s55_s29 = sshll.u32 %s5666_s28, 4  ;;  %s5667_s30 = smov 128   ;;  %s56_s29 = int_to_ptr.vmem [resolvable:$true] %s55_s29 }
   0x8   :  { %s5668_s6 = smov 8   ;;  %s19_s8 = sshll.u32 %s5837_s0, 4  ;;  %s20_s8 = int_to_ptr.hbm [resolvable:$true] %s19_s8 }
   0x9   :  { %61 = dma.hbm_to_vmem [thread:$0]  %s54_s25, 14336, %s56_s29, [#allocation9], %s5667_s30, %s5667_s30, %s5668_s6  }
   0xa   :  { %s5669_s9 = smov [#allocation2]   ;;  %s43_s12 = sshll.u32 %s5839_s2, 4  ;;  %s44_s12 = int_to_ptr.hbm [resolvable:$true] %s43_s12 }
   0xb   :  { %s21_s10 = sshll.u32 %s5669_s9, 4  ;;  %s5670_s13 = smov [#allocation7]   ;;  %s22_s10 = int_to_ptr.vmem [resolvable:$true] %s21_s10 }
   0xc   :  { %24 = dma.hbm_to_vmem [thread:$0]  %s20_s8, 448, %s22_s10, [#allocation3]  }
   0xd   :  { %s45_s14 = sshll.u32 %s5670_s13, 4  ;;  %s67_s17 = sshll.u32 %s5841_s4, 4  ;;  %s46_s14 = int_to_ptr.vmem [resolvable:$true] %s45_s14  ;;  %s68_s17 = int_to_ptr.hbm [resolvable:$true] %s67_s17 }
   0xe   :  { %48 = dma.hbm_to_vmem [thread:$0]  %s44_s12, 112, %s46_s14, [#allocation6]  }
   0xf   :  { %s5671_s0 = smov [#allocation10]  }
  0x10   :  { %s69_s18 = sshll.u32 %s5671_s0, 4  ;;  %s70_s18 = int_to_ptr.vmem [resolvable:$true] %s69_s18 }
  0x11   :  { %72 = dma.hbm_to_vmem [thread:$0]  %s68_s17, 16, %s70_s18, [#allocation9]  }
  0x12   :  { %5655 = dma.done.wait [#allocation3], 448  }
  0x13   :  { %5656 = vsyncadd [#allocation3], 4294966848 }
  0x14   :  { %5657 = dma.done.wait [#allocation6], 50288  }
  0x15   :  { %5658 = vsyncadd [#allocation6], 4294917008 }
  0x16   :  { %5659 = dma.done.wait [#allocation9], 14352  }
  0x17   :  { %5660 = vsyncadd [#allocation9], 4294952944  ;;  %v3733_v0 = vld [vmem:[#allocation5 + $0x188] sm:$0xf]  ;;  %v5155_v1 = vld [vmem:[#allocation5 + $0x1a0] sm:$0xf0] }
  0x18   :  { %v3957_v2 = vld [vmem:[#allocation5 + $0x348] sm:$0xf]  ;;  %v3734_v3 = vor.u32 %v5155_v1, %v3733_v0  ;;  %v5211_v4 = vld [vmem:[#allocation5 + $0x360] sm:$0xf0]  ;;  %v3705_v11 = vld [vmem:[#allocation5 + $0x150] sm:$0xf] }
  0x19   :  { %v4181_v5 = vld [vmem:[#allocation5 + $0x508] sm:$0xf]  ;;  %v5267_v6 = vld [vmem:[#allocation5 + $0x520] sm:$0xf0]  ;;  %v3958_v7 = vor.u32 %v5211_v4, %v3957_v2  ;;  %v5148_v13 = vld [vmem:[#allocation5 + $0x168] sm:$0xf0] }
  0x1a   :  { %v4182_v8 = vor.u32 %v5267_v6, %v4181_v5  ;;  %v4405_v9 = vld [vmem:[#allocation5 + $0x6c8] sm:$0xf]  ;;  %v5323_v10 = vld [vmem:[#allocation5 + $0x6e0] sm:$0xf0]  ;;  %2602 = vmatpush.bf16.msra.mxu0 %v3734_v3  ;;  %v3929_v14 = vld [vmem:[#allocation5 + $0x310] sm:$0xf]  ;;  %v3706_v16 = vor.u32 %v5148_v13, %v3705_v11 }
  0x1b   :  { %v4406_v12 = vor.u32 %v5323_v10, %v4405_v9  ;;  %v5204_v15 = vld [vmem:[#allocation5 + $0x328] sm:$0xf0]  ;;  %2615 = vmatpush.bf16.msra.mxu1 %v3958_v7  ;;  %v4153_v18 = vld [vmem:[#allocation5 + $0x4d0] sm:$0xf]  ;;  %v3677_v23 = vld [vmem:[#allocation5 + $0x118] sm:$0xf] }
  0x1c   :  { %2628 = vmatpush.bf16.msra.mxu2 %v4182_v8  ;;  %v3930_v17 = vor.u32 %v5204_v15, %v3929_v14  ;;  %v5260_v19 = vld [vmem:[#allocation5 + $0x4e8] sm:$0xf0]  ;;  %v4377_v20 = vld [vmem:[#allocation5 + $0x690] sm:$0xf]  ;;  %v5141_v24 = vld [vmem:[#allocation5 + $0x130] sm:$0xf0] }
  0x1d   :  { %2641 = vmatpush.bf16.msra.mxu3 %v4406_v12  ;;  %v4154_v21 = vor.u32 %v5260_v19, %v4153_v18  ;;  %v5316_v22 = vld [vmem:[#allocation5 + $0x6a8] sm:$0xf0]  ;;  %v3901_v26 = vld [vmem:[#allocation5 + $0x2d8] sm:$0xf]  ;;  %v5197_v27 = vld [vmem:[#allocation5 + $0x2f0] sm:$0xf0]  ;;  %v3678_v29 = vor.u32 %v5141_v24, %v3677_v23 }
  0x1e   :  { %v4378_v25 = vor.u32 %v5316_v22, %v4377_v20  ;;  %v4125_v28 = vld [vmem:[#allocation5 + $0x498] sm:$0xf]  ;;  %2603 = vmatpush.bf16.msra.mxu0 %v3706_v16  ;;  %v5253_v30 = vld [vmem:[#allocation5 + $0x4b0] sm:$0xf0]  ;;  %v3902_v33 = vor.u32 %v5197_v27, %v3901_v26  ;;  %v3649_v35 = vld [vmem:[#allocation5 + $0xe0] sm:$0xf] }
  0x1f   :  { %v4349_v31 = vld [vmem:[#allocation5 + $0x658] sm:$0xf]  ;;  %v5309_v32 = vld [vmem:[#allocation5 + $0x670] sm:$0xf0]  ;;  %2616 = vmatpush.bf16.msra.mxu1 %v3930_v17  ;;  %v4126_v34 = vor.u32 %v5253_v30, %v4125_v28  ;;  %v5134_v36 = vld [vmem:[#allocation5 + $0xf8] sm:$0xf0] }
  0x20   :  { %2629 = vmatpush.bf16.msra.mxu2 %v4154_v21  ;;  %v3873_v37 = vld [vmem:[#allocation5 + $0x2a0] sm:$0xf]  ;;  %v4350_v38 = vor.u32 %v5309_v32, %v4349_v31  ;;  %v5190_v39 = vld [vmem:[#allocation5 + $0x2b8] sm:$0xf0]  ;;  %v3650_v44 = vor.u32 %v5134_v36, %v3649_v35  ;;  %v3621_v47 = vld [vmem:[#allocation5 + $0xa8] sm:$0xf] }
  0x21   :  { %2642 = vmatpush.bf16.msra.mxu3 %v4378_v25  ;;  %v4097_v40 = vld [vmem:[#allocation5 + $0x460] sm:$0xf]  ;;  %v5246_v41 = vld [vmem:[#allocation5 + $0x478] sm:$0xf0]  ;;  %v3874_v45 = vor.u32 %v5190_v39, %v3873_v37  ;;  %v5127_v48 = vld [vmem:[#allocation5 + $0xc0] sm:$0xf0] }
  0x22   :  { %v4321_v42 = vld [vmem:[#allocation5 + $0x620] sm:$0xf]  ;;  %v5302_v43 = vld [vmem:[#allocation5 + $0x638] sm:$0xf0]  ;;  %2604 = vmatpush.bf16.msra.mxu0 %v3678_v29  ;;  %v4098_v46 = vor.u32 %v5246_v41, %v4097_v40  ;;  %v3845_v49 = vld [vmem:[#allocation5 + $0x268] sm:$0xf]  ;;  %v3622_v56 = vor.u32 %v5127_v48, %v3621_v47 }
  0x23   :  { %2617 = vmatpush.bf16.msra.mxu1 %v3902_v33  ;;  %v4322_v50 = vor.u32 %v5302_v43, %v4321_v42  ;;  %v5183_v51 = vld [vmem:[#allocation5 + $0x280] sm:$0xf0]  ;;  %v4069_v52 = vld [vmem:[#allocation5 + $0x428] sm:$0xf]  ;;  %v3593_v59 = vld [vmem:[#allocation5 + $0x70] sm:$0xf] }
  0x24   :  { %2630 = vmatpush.bf16.msra.mxu2 %v4126_v34  ;;  %v5239_v53 = vld [vmem:[#allocation5 + $0x440] sm:$0xf0]  ;;  %v4293_v54 = vld [vmem:[#allocation5 + $0x5e8] sm:$0xf]  ;;  %v3846_v57 = vor.u32 %v5183_v51, %v3845_v49  ;;  %v5120_v60 = vld [vmem:[#allocation5 + $0x88] sm:$0xf0] }
  0x25   :  { %2643 = vmatpush.bf16.msra.mxu3 %v4350_v38  ;;  %v5295_v55 = vld [vmem:[#allocation5 + $0x600] sm:$0xf0]  ;;  %v4070_v58 = vor.u32 %v5239_v53, %v4069_v52  ;;  %v3817_v61 = vld [vmem:[#allocation5 + $0x230] sm:$0xf]  ;;  %v5176_v63 = vld [vmem:[#allocation5 + $0x248] sm:$0xf0]  ;;  %v3594_v4 = vor.u32 %v5120_v60, %v3593_v59 }
  0x26   :  { %2605 = vmatpush.bf16.msra.mxu0 %v3650_v44  ;;  %v4294_v62 = vor.u32 %v5295_v55, %v4293_v54  ;;  %v4041_v0 = vld [vmem:[#allocation5 + $0x3f0] sm:$0xf]  ;;  %v5232_v1 = vld [vmem:[#allocation5 + $0x408] sm:$0xf0]  ;;  %v3818_v5 = vor.u32 %v5176_v63, %v3817_v61  ;;  %v3565_v7 = vld [vmem:[#allocation5 + $0x38] sm:$0xf] }
  0x27   :  { %2618 = vmatpush.bf16.msra.mxu1 %v3874_v45  ;;  %v4265_v2 = vld [vmem:[#allocation5 + $0x5b0] sm:$0xf]  ;;  %v5288_v3 = vld [vmem:[#allocation5 + $0x5c8] sm:$0xf0]  ;;  %v4042_v6 = vor.u32 %v5232_v1, %v4041_v0  ;;  %v5113_v8 = vld [vmem:[#allocation5 + $0x50] sm:$0xf0] }
  0x28   :  { %2631 = vmatpush.bf16.msra.mxu2 %v4098_v46  ;;  %v3789_v9 = vld [vmem:[#allocation5 + $0x1f8] sm:$0xf]  ;;  %v4266_v10 = vor.u32 %v5288_v3, %v4265_v2  ;;  %v5169_v11 = vld [vmem:[#allocation5 + $0x210] sm:$0xf0]  ;;  %v3566_v16 = vor.u32 %v5113_v8, %v3565_v7  ;;  %v3537_v17 = vld [vmem:[#allocation5] sm:$0xf] }
  0x29   :  { %2644 = vmatpush.bf16.msra.mxu3 %v4322_v50  ;;  %v4013_v12 = vld [vmem:[#allocation5 + $0x3b8] sm:$0xf]  ;;  %v5225_v13 = vld [vmem:[#allocation5 + $0x3d0] sm:$0xf0]  ;;  %v5106_v18 = vld [vmem:[#allocation5 + $0x18] sm:$0xf0]  ;;  %v3790_v19 = vor.u32 %v5169_v11, %v3789_v9 }
  0x2a   :  { %2606 = vmatpush.bf16.msra.mxu0 %v3622_v56  ;;  %v4237_v14 = vld [vmem:[#allocation5 + $0x578] sm:$0xf]  ;;  %v5281_v15 = vld [vmem:[#allocation5 + $0x590] sm:$0xf0]  ;;  %v4014_v20 = vor.u32 %v5225_v13, %v4013_v12  ;;  %v3761_v21 = vld [vmem:[#allocation5 + $0x1c0] sm:$0xf]  ;;  %v3538_v31 = vor.u32 %v5106_v18, %v3537_v17 }
  0x2b   :  { %2619 = vmatpush.bf16.msra.mxu1 %v3846_v57  ;;  %v5162_v22 = vld [vmem:[#allocation5 + $0x1d8] sm:$0xf0]  ;;  %v3985_v23 = vld [vmem:[#allocation5 + $0x380] sm:$0xf]  ;;  %v4238_v24 = vor.u32 %v5281_v15, %v4237_v14  ;;  %v4629_v28 = vld [vmem:[#allocation5 + $0x888] sm:$0xf] }
  0x2c   :  { %2632 = vmatpush.bf16.msra.mxu2 %v4070_v58  ;;  %v5218_v25 = vld [vmem:[#allocation5 + $0x398] sm:$0xf0]  ;;  %v4209_v26 = vld [vmem:[#allocation5 + $0x540] sm:$0xf]  ;;  %v5379_v29 = vld [vmem:[#allocation5 + $0x8a0] sm:$0xf0]  ;;  %v3762_v35 = vor.u32 %v5162_v22, %v3761_v21 }
  0x2d   :  { %2645 = vmatpush.bf16.msra.mxu3 %v4294_v62  ;;  %v5274_v27 = vld [vmem:[#allocation5 + $0x558] sm:$0xf0]  ;;  %v4853_v30 = vld [vmem:[#allocation5 + $0xa48] sm:$0xf]  ;;  %v5435_v32 = vld [vmem:[#allocation5 + $0xa60] sm:$0xf0]  ;;  %v3986_v36 = vor.u32 %v5218_v25, %v3985_v23  ;;  %v4630_v40 = vor.u32 %v5379_v29, %v4629_v28 }
  0x2e   :  { %2607 = vmatpush.bf16.msra.mxu0 %v3594_v4  ;;  %v5077_v33 = vld [vmem:[#allocation5 + $0xc08] sm:$0xf]  ;;  %v5491_v34 = vld [vmem:[#allocation5 + $0xc20] sm:$0xf0]  ;;  %v5152_v37 = vld [vmem:[#allocation5 + $0x18c] sm:$0xf]  ;;  %v4210_v39 = vor.u32 %v5274_v27, %v4209_v26  ;;  %v4854_v41 = vor.u32 %v5435_v32, %v4853_v30 }
  0x2f   :  { %2620 = vmatpush.bf16.msra.mxu1 %v3818_v5  ;;  %v3735_v38 = vld [vmem:[#allocation5 + $0x1a4] sm:$0xf0]  ;;  %v5078_v42 = vor.u32 %v5491_v34, %v5077_v33  ;;  %v4601_v43 = vld [vmem:[#allocation5 + $0x850] sm:$0xf]  ;;  %v5372_v44 = vld [vmem:[#allocation5 + $0x868] sm:$0xf0] }
  0x30   :  { %2633 = vmatpush.bf16.msra.mxu2 %v4042_v6  ;;  %v4825_v45 = vld [vmem:[#allocation5 + $0xa10] sm:$0xf]  ;;  %v3738_v46 = vor.u32 %v5152_v37, %v3735_v38  ;;  %v5428_v47 = vld [vmem:[#allocation5 + $0xa28] sm:$0xf0]  ;;  %v5145_v50 = vld [vmem:[#allocation5 + $0x154] sm:$0xf]  ;;  %v4602_v52 = vor.u32 %v5372_v44, %v4601_v43 }
  0x31   :  { %2646 = vmatpush.bf16.msra.mxu3 %v4266_v10  ;;  %v5049_v48 = vld [vmem:[#allocation5 + $0xbd0] sm:$0xf]  ;;  %v5484_v49 = vld [vmem:[#allocation5 + $0xbe8] sm:$0xf0]  ;;  %v4573_v53 = vld [vmem:[#allocation5 + $0x818] sm:$0xf]  ;;  %v4826_v54 = vor.u32 %v5428_v47, %v4825_v45 }
  0x32   :  { %2608 = vmatpush.bf16.msra.mxu0 %v3566_v16  ;;  %v3707_v51 = vld [vmem:[#allocation5 + $0x16c] sm:$0xf0]  ;;  %v5050_v55 = vor.u32 %v5484_v49, %v5049_v48  ;;  %v5365_v56 = vld [vmem:[#allocation5 + $0x830] sm:$0xf0]  ;;  %v4797_v57 = vld [vmem:[#allocation5 + $0x9d8] sm:$0xf] }
  0x33   :  { %2621 = vmatpush.bf16.msra.mxu1 %v3790_v19  ;;  %v94_v58 = vld [vmem:[#allocation2 + $0x8] sm:$0xff]  ;;  %v3710_v59 = vor.u32 %v5145_v50, %v3707_v51  ;;  %v5421_v60 = vld [vmem:[#allocation5 + $0x9f0] sm:$0xf0]  ;;  %v5021_v61 = vld [vmem:[#allocation5 + $0xb98] sm:$0xf]  ;;  %v4574_v3 = vor.u32 %v5365_v56, %v4573_v53  ;;  %s5672_s2 = smov [#allocation11]  }
  0x34   :  { %2634 = vmatpush.bf16.msra.mxu2 %v4014_v20  ;;  %v5477_v62 = vld [vmem:[#allocation5 + $0xbb0] sm:$0xf0]  ;;  %v567_v63 = vunpack.c.l.b16 %v94_v58  ;;  %v568_v0 = vunpack.c.h.b16 %v94_v58  ;;  %v5138_v1 = vld [vmem:[#allocation5 + $0x11c] sm:$0xf]  ;;  %v3679_v2 = vld [vmem:[#allocation5 + $0x134] sm:$0xf0]  ;;  %v4798_v7 = vor.u32 %v5421_v60, %v4797_v57 }
  0x35   :  { %2647 = vmatpush.bf16.msra.mxu3 %v4238_v24  ;;  %v93_v5 = vld [vmem:[#allocation2] sm:$0xff]  ;;  %v5022_v8 = vor.u32 %v5477_v62, %v5021_v61  ;;  %v4545_v9 = vld [vmem:[#allocation5 + $0x7e0] sm:$0xf]  ;;  %v5358_v10 = vld [vmem:[#allocation5 + $0x7f8] sm:$0xf0]  ;;  %v3682_v14 = vor.u32 %v5138_v1, %v3679_v2  ;;  %s3521_s4 = sshll.u32 %s5672_s2, 4  ;;  %s3522_s4 = int_to_ptr.vmem [resolvable:$true] %s3521_s4 }
  0x36   :  { %2609 = vmatpush.bf16.msra.mxu0 %v3538_v31  ;;  %v5718_v4 = vpack.c.b16 %v567_v63, %v567_v63  ;;  %v5720_v6 = vpack.c.b16 %v568_v0, %v568_v0  ;;  %v4769_v11 = vld [vmem:[#allocation5 + $0x9a0] sm:$0xf]  ;;  %v565_v12 = vunpack.c.l.b16 %v93_v5  ;;  %v566_v13 = vunpack.c.h.b16 %v93_v5  ;;  %v5414_v15 = vld [vmem:[#allocation5 + $0x9b8] sm:$0xf0]  ;;  %v5131_v18 = vld [vmem:[#allocation5 + $0xe4] sm:$0xf] }
  0x37   :  { %2622 = vmatpush.bf16.msra.mxu1 %v3762_v35  ;;  %v4993_v16 = vld [vmem:[#allocation5 + $0xb60] sm:$0xf]  ;;  %v5470_v17 = vld [vmem:[#allocation5 + $0xb78] sm:$0xf0]  ;;  %v4546_v22 = vor.u32 %v5358_v10, %v4545_v9  ;;  %v4770_v23 = vor.u32 %v5414_v15, %v4769_v11  ;;  %v4517_v25 = vld [vmem:[#allocation5 + $0x7a8] sm:$0xf] }
  0x38   :  { %2635 = vmatpush.bf16.msra.mxu2 %v3986_v36  ;;  %v3651_v19 = vld [vmem:[#allocation5 + $0xfc] sm:$0xf0]  ;;  %v5723_v20 = vpack.c.b16 %v565_v12, %v565_v12  ;;  %v5725_v21 = vpack.c.b16 %v566_v13, %v566_v13  ;;  %v4994_v24 = vor.u32 %v5470_v17, %v4993_v16  ;;  %v5351_v26 = vld [vmem:[#allocation5 + $0x7c0] sm:$0xf0]  ;;  %v4741_v27 = vld [vmem:[#allocation5 + $0x968] sm:$0xf] }
  0x39   :  { %2648 = vmatpush.bf16.msra.mxu3 %v4210_v39  ;;  %v3654_v28 = vor.u32 %v5131_v18, %v3651_v19  ;;  %v5407_v29 = vld [vmem:[#allocation5 + $0x980] sm:$0xf0]  ;;  %v4965_v30 = vld [vmem:[#allocation5 + $0xb28] sm:$0xf]  ;;  %v5124_v32 = vld [vmem:[#allocation5 + $0xac] sm:$0xf]  ;;  %v4518_v34 = vor.u32 %v5351_v26, %v4517_v25 }
  0x3a   :  { %2654 = vmatpush.bf16.msrb.mxu0 %v4630_v40  ;;  %v5463_v31 = vld [vmem:[#allocation5 + $0xb40] sm:$0xf0]  ;;  %v3623_v33 = vld [vmem:[#allocation5 + $0xc4] sm:$0xf0]  ;;  %2623 = vmatmul.bf16.vlgmr.msra.gmra.mxu1 %v5725_v21  ;;  %v4742_v35 = vor.u32 %v5407_v29, %v4741_v27  ;;  %v4489_v37 = vld [vmem:[#allocation5 + $0x770] sm:$0xf] }
  0x3b   :  { %2667 = vmatpush.bf16.msrb.mxu1 %v4854_v41  ;;  %2636 = vmatmul.bf16.vlgmr.msra.gmra.mxu2 %v5718_v4  ;;  %v4966_v36 = vor.u32 %v5463_v31, %v4965_v30  ;;  %v5344_v38 = vld [vmem:[#allocation5 + $0x788] sm:$0xf0]  ;;  %v4713_v39 = vld [vmem:[#allocation5 + $0x930] sm:$0xf]  ;;  %v3626_v40 = vor.u32 %v5124_v32, %v3623_v33  ;;  %v5117_v44 = vld [vmem:[#allocation5 + $0x74] sm:$0xf] }
  0x3c   :  { %2680 = vmatpush.bf16.msrb.mxu2 %v5078_v42  ;;  %2649 = vmatmul.bf16.vlgmr.msra.gmra.mxu3 %v5720_v6  ;;  %v5400_v41 = vld [vmem:[#allocation5 + $0x948] sm:$0xf0]  ;;  %v4937_v42 = vld [vmem:[#allocation5 + $0xaf0] sm:$0xf]  ;;  %v4461_v49 = vld [vmem:[#allocation5 + $0x738] sm:$0xf] }
  0x3d   :  { %2693 = vmatpush.bf16.msrb.mxu3 %v3738_v46  ;;  %2610 = vmatmul.bf16.vlgmr.msra.gmra.mxu0 %v5723_v20  ;;  %v5456_v43 = vld [vmem:[#allocation5 + $0xb08] sm:$0xf0]  ;;  %v3595_v45 = vld [vmem:[#allocation5 + $0x8c] sm:$0xf0]  ;;  %v4490_v46 = vor.u32 %v5344_v38, %v4489_v37  ;;  %v4714_v47 = vor.u32 %v5400_v41, %v4713_v39  ;;  %v5337_v50 = vld [vmem:[#allocation5 + $0x750] sm:$0xf0] }
  0x3e   :  { %2655 = vmatpush.bf16.msrb.mxu0 %v4602_v52  ;;  %v4938_v48 = vor.u32 %v5456_v43, %v4937_v42  ;;  %v4685_v51 = vld [vmem:[#allocation5 + $0x8f8] sm:$0xf]  ;;  %v3598_v52 = vor.u32 %v5117_v44, %v3595_v45  ;;  %v5393_v53 = vld [vmem:[#allocation5 + $0x910] sm:$0xf0]  ;;  %v5110_v56 = vld [vmem:[#allocation5 + $0x3c] sm:$0xf] }
  0x3f   :  { %2668 = vmatpush.bf16.msrb.mxu1 %v4826_v54  ;;  %v4909_v54 = vld [vmem:[#allocation5 + $0xab8] sm:$0xf]  ;;  %v4433_v58 = vld [vmem:[#allocation5 + $0x700] sm:$0xf]  ;;  %v5330_v60 = vld [vmem:[#allocation5 + $0x718] sm:$0xf0]  ;;  %v4686_v63 = vor.u32 %v5393_v53, %v4685_v51 }
  0x40   :  { %2681 = vmatpush.bf16.msrb.mxu2 %v5050_v55  ;;  %v5449_v55 = vld [vmem:[#allocation5 + $0xad0] sm:$0xf0]  ;;  %v3567_v57 = vld [vmem:[#allocation5 + $0x54] sm:$0xf0]  ;;  %v4657_v61 = vld [vmem:[#allocation5 + $0x8c0] sm:$0xf]  ;;  %v4434_v13 = vor.u32 %v5330_v60, %v4433_v58 }
  0x41   :  { %2694 = vmatpush.bf16.msrb.mxu3 %v3710_v59  ;;  %v4462_v59 = vor.u32 %v5337_v50, %v4461_v49  ;;  %v5386_v62 = vld [vmem:[#allocation5 + $0x8d8] sm:$0xf0]  ;;  %v4910_v0 = vor.u32 %v5449_v55, %v4909_v54  ;;  %v4881_v1 = vld [vmem:[#allocation5 + $0xa80] sm:$0xf]  ;;  %v3570_v5 = vor.u32 %v5110_v56, %v3567_v57  ;;  %v95_v9 = vld [vmem:[#allocation2 + $0x10] sm:$0xff]  ;;  %s3523_s21 = sshll.u32 %s5842_s5, 4  ;;  %s3524_s21 = int_to_ptr.hbm [resolvable:$true] %s3523_s21 }
  0x42   :  { %2656 = vmatpush.bf16.msrb.mxu0 %v4574_v3  ;;  %v5442_v2 = vld [vmem:[#allocation5 + $0xa98] sm:$0xf0]  ;;  %v5208_v10 = vld [vmem:[#allocation5 + $0x34c] sm:$0xf]  ;;  %v3959_v11 = vld [vmem:[#allocation5 + $0x364] sm:$0xf0]  ;;  %v4658_v18 = vor.u32 %v5386_v62, %v4657_v61  ;;  %v570_v25 = vunpack.c.h.b16 %v95_v9 }
  0x43   :  { %2669 = vmatpush.bf16.msrb.mxu1 %v4798_v7  ;;  %v96_v3 = vld [vmem:[#allocation2 + $0x18] sm:$0xf]  ;;  %v5103_v7 = vld [vmem:[#allocation5 + $0x4] sm:$0xf]  ;;  %v5264_v12 = vld [vmem:[#allocation5 + $0x50c] sm:$0xf]  ;;  %v4882_v19 = vor.u32 %v5442_v2, %v4881_v1  ;;  %v3962_v27 = vor.u32 %v5208_v10, %v3959_v11 }
  0x44   :  { %2682 = vmatpush.bf16.msrb.mxu2 %v5022_v8  ;;  %v3539_v8 = vld [vmem:[#allocation5 + $0x1c] sm:$0xf0]  ;;  %v5320_v15 = vld [vmem:[#allocation5 + $0x6cc] sm:$0xf]  ;;  %v4407_v16 = vld [vmem:[#allocation5 + $0x6e4] sm:$0xf0]  ;;  %v571_v17 = vunpack.c.l.b16 %v96_v3  ;;  %v5734_v41 = vpack.c.b16 %v570_v25, %v570_v25 }
  0x45   :  { %2695 = vmatpush.bf16.msrb.mxu3 %v3682_v14  ;;  %v4183_v14 = vld [vmem:[#allocation5 + $0x524] sm:$0xf0]  ;;  %v3542_v26 = vor.u32 %v5103_v7, %v3539_v8  ;;  %v4410_v29 = vor.u32 %v5320_v15, %v4407_v16  ;;  %v5201_v30 = vld [vmem:[#allocation5 + $0x314] sm:$0xf]  ;;  %v3931_v31 = vld [vmem:[#allocation5 + $0x32c] sm:$0xf0] }
  0x46   :  { %2657 = vmatpush.bf16.msrb.mxu0 %v4546_v22  ;;  %v5376_v22 = vld [vmem:[#allocation5 + $0x88c] sm:$0xf]  ;;  %v5257_v32 = vld [vmem:[#allocation5 + $0x4d4] sm:$0xf]  ;;  %v5730_v37 = vpack.c.b16 %v571_v17, %v571_v17  ;;  %v4603_v39 = vld [vmem:[#allocation5 + $0x86c] sm:$0xf0]  ;;  %v3934_v42 = vor.u32 %v5201_v30, %v3931_v31 }
  0x47   :  { %2670 = vmatpush.bf16.msrb.mxu1 %v4770_v23  ;;  %v4631_v23 = vld [vmem:[#allocation5 + $0x8a4] sm:$0xf0]  ;;  %v5369_v38 = vld [vmem:[#allocation5 + $0x854] sm:$0xf]  ;;  %v5194_v45 = vld [vmem:[#allocation5 + $0x2dc] sm:$0xf] }
  0x48   :  { %2683 = vmatpush.bf16.msrb.mxu2 %v4994_v24  ;;  %v569_v24 = vunpack.c.l.b16 %v95_v9  ;;  %v4634_v33 = vor.u32 %v5376_v22, %v4631_v23  ;;  %v4127_v49 = vld [vmem:[#allocation5 + $0x4b4] sm:$0xf0]  ;;  %v5306_v50 = vld [vmem:[#allocation5 + $0x65c] sm:$0xf]  ;;  %v5187_v57 = vld [vmem:[#allocation5 + $0x2a4] sm:$0xf] }
  0x49   :  { %2696 = vmatpush.bf16.msrb.mxu3 %v3654_v28  ;;  %v4186_v28 = vor.u32 %v5264_v12, %v4183_v14  ;;  %v4351_v51 = vld [vmem:[#allocation5 + $0x674] sm:$0xf0]  ;;  %v3875_v58 = vld [vmem:[#allocation5 + $0x2bc] sm:$0xf0]  ;;  %v5299_v62 = vld [vmem:[#allocation5 + $0x624] sm:$0xf] }
  0x4a   :  { %2658 = vmatpush.bf16.msrb.mxu0 %v4518_v34  ;;  %v4155_v34 = vld [vmem:[#allocation5 + $0x4ec] sm:$0xf0]  ;;  %v4575_v53 = vld [vmem:[#allocation5 + $0x834] sm:$0xf0]  ;;  %v4354_v56 = vor.u32 %v5306_v50, %v4351_v51  ;;  %v4099_v61 = vld [vmem:[#allocation5 + $0x47c] sm:$0xf0]  ;;  %v3878_v2 = vor.u32 %v5187_v57, %v3875_v58 }
  0x4b   :  { %2671 = vmatpush.bf16.msrb.mxu1 %v4742_v35  ;;  %v5313_v35 = vld [vmem:[#allocation5 + $0x694] sm:$0xf]  ;;  %v4158_v43 = vor.u32 %v5257_v32, %v4155_v34  ;;  %v4547_v1 = vld [vmem:[#allocation5 + $0x7fc] sm:$0xf0]  ;;  %v5180_v7 = vld [vmem:[#allocation5 + $0x26c] sm:$0xf] }
  0x4c   :  { %2684 = vmatpush.bf16.msrb.mxu2 %v4966_v36  ;;  %v4379_v36 = vld [vmem:[#allocation5 + $0x6ac] sm:$0xf0]  ;;  %v3847_v8 = vld [vmem:[#allocation5 + $0x284] sm:$0xf0]  ;;  %v5236_v9 = vld [vmem:[#allocation5 + $0x42c] sm:$0xf] }
  0x4d   :  { %2697 = vmatpush.bf16.msrb.mxu3 %v3626_v40  ;;  %v5732_v40 = vpack.c.b16 %v569_v24, %v569_v24  ;;  %v4382_v44 = vor.u32 %v5313_v35, %v4379_v36  ;;  %v4071_v11 = vld [vmem:[#allocation5 + $0x444] sm:$0xf0]  ;;  %v5292_v12 = vld [vmem:[#allocation5 + $0x5ec] sm:$0xf]  ;;  %v3850_v16 = vor.u32 %v5180_v7, %v3847_v8  ;;  %v3819_v22 = vld [vmem:[#allocation5 + $0x24c] sm:$0xf0] }
  0x4e   :  { %2659 = vmatpush.bf16.msrb.mxu0 %v4490_v46  ;;  %v3903_v46 = vld [vmem:[#allocation5 + $0x2f4] sm:$0xf0]  ;;  %v5348_v14 = vld [vmem:[#allocation5 + $0x7ac] sm:$0xf]  ;;  %v4519_v15 = vld [vmem:[#allocation5 + $0x7c4] sm:$0xf0]  ;;  %v4074_v17 = vor.u32 %v5236_v9, %v4071_v11 }
  0x4f   :  { %2672 = vmatpush.bf16.msrb.mxu1 %v4714_v47  ;;  %v5250_v47 = vld [vmem:[#allocation5 + $0x49c] sm:$0xf]  ;;  %v3906_v54 = vor.u32 %v5194_v45, %v3903_v46  ;;  %v5229_v23 = vld [vmem:[#allocation5 + $0x3f4] sm:$0xf]  ;;  %v4522_v24 = vor.u32 %v5348_v14, %v4519_v15  ;;  %v4043_v25 = vld [vmem:[#allocation5 + $0x40c] sm:$0xf0] }
  0x50   :  { %2685 = vmatpush.bf16.msrb.mxu2 %v4938_v48  ;;  %v4606_v48 = vor.u32 %v5369_v38, %v4603_v39  ;;  %v4130_v55 = vor.u32 %v5250_v47, %v4127_v49  ;;  %v4046_v31 = vor.u32 %v5229_v23, %v4043_v25  ;;  %v3791_v34 = vld [vmem:[#allocation5 + $0x214] sm:$0xf0]  ;;  %v5222_v35 = vld [vmem:[#allocation5 + $0x3bc] sm:$0xf]  ;;  %v5159_v46 = vld [vmem:[#allocation5 + $0x1c4] sm:$0xf] }
  0x51   :  { %2698 = vmatpush.bf16.msrb.mxu3 %v3598_v52  ;;  %v5362_v52 = vld [vmem:[#allocation5 + $0x81c] sm:$0xf]  ;;  %v4015_v38 = vld [vmem:[#allocation5 + $0x3d4] sm:$0xf0]  ;;  %v3763_v47 = vld [vmem:[#allocation5 + $0x1dc] sm:$0xf0] }
  0x52   :  { %2660 = vmatpush.bf16.msrb.mxu0 %v4462_v59  ;;  %v5243_v59 = vld [vmem:[#allocation5 + $0x464] sm:$0xf]  ;;  %v4578_v60 = vor.u32 %v5362_v52, %v4575_v53  ;;  %v5278_v39 = vld [vmem:[#allocation5 + $0x57c] sm:$0xf]  ;;  %v3987_v51 = vld [vmem:[#allocation5 + $0x39c] sm:$0xf0] }
  0x53   :  { %2673 = vmatpush.bf16.msrb.mxu1 %v4686_v63  ;;  %v4323_v63 = vld [vmem:[#allocation5 + $0x63c] sm:$0xf0]  ;;  %v4102_v3 = vor.u32 %v5243_v59, %v4099_v61  ;;  %v5215_v50 = vld [vmem:[#allocation5 + $0x384] sm:$0xf]  ;;  %v5432_v57 = vld [vmem:[#allocation5 + $0xa4c] sm:$0xf] }
  0x54   :  { %2686 = vmatpush.bf16.msrb.mxu2 %v4910_v0  ;;  %v5355_v0 = vld [vmem:[#allocation5 + $0x7e4] sm:$0xf]  ;;  %v4855_v58 = vld [vmem:[#allocation5 + $0xa64] sm:$0xf0]  ;;  %v5488_v59 = vld [vmem:[#allocation5 + $0xc0c] sm:$0xf] }
  0x55   :  { %2699 = vmatpush.bf16.msrb.mxu3 %v3570_v5  ;;  %v4326_v5 = vor.u32 %v5299_v62, %v4323_v63  ;;  %v4550_v10 = vor.u32 %v5355_v0, %v4547_v1  ;;  %v5271_v52 = vld [vmem:[#allocation5 + $0x544] sm:$0xf]  ;;  %v5079_v61 = vld [vmem:[#allocation5 + $0xc24] sm:$0xf0]  ;;  %v3741_v62 = vld [vmem:[#allocation5 + $0x190] sm:$0xf]  ;;  %v3990_v0 = vor.u32 %v5215_v50, %v3987_v51  ;;  %v4858_v7 = vor.u32 %v5432_v57, %v4855_v58 }
  0x56   :  { %2661 = vmatpush.bf16.msrb.mxu0 %v4434_v13  ;;  %v4295_v13 = vld [vmem:[#allocation5 + $0x604] sm:$0xf0]  ;;  %v5156_v63 = vld [vmem:[#allocation5 + $0x1a8] sm:$0xf0]  ;;  %v5082_v8 = vor.u32 %v5488_v59, %v5079_v61  ;;  %v4827_v11 = vld [vmem:[#allocation5 + $0xa2c] sm:$0xf0] }
  0x57   :  { %2674 = vmatpush.bf16.msrb.mxu1 %v4658_v18  ;;  %v4298_v18 = vor.u32 %v5292_v12, %v4295_v13  ;;  %v3742_v9 = vor.u32 %v5156_v63, %v3741_v62  ;;  %v5481_v12 = vld [vmem:[#allocation5 + $0xbd4] sm:$0xf]  ;;  %v5051_v14 = vld [vmem:[#allocation5 + $0xbec] sm:$0xf0]  ;;  %v3713_v15 = vld [vmem:[#allocation5 + $0x158] sm:$0xf] }
  0x58   :  { %2687 = vmatpush.bf16.msrb.mxu2 %v4882_v19  ;;  %v5173_v19 = vld [vmem:[#allocation5 + $0x234] sm:$0xf]  ;;  %v4799_v25 = vld [vmem:[#allocation5 + $0x9f4] sm:$0xf0]  ;;  %v5404_v51 = vld [vmem:[#allocation5 + $0x96c] sm:$0xf] }
  0x59   :  { %2700 = vmatpush.bf16.msrb.mxu3 %v3542_v26  ;;  %2662 = vmatmul.bf16.vlgmr.msrb.gmra.mxu0 %v5732_v40  ;;  %v5285_v26 = vld [vmem:[#allocation5 + $0x5b4] sm:$0xf]  ;;  %v3822_v30 = vor.u32 %v5173_v19, %v3819_v22  ;;  %v5054_v22 = vor.u32 %v5481_v12, %v5051_v14  ;;  %v5128_v57 = vld [vmem:[#allocation5 + $0xc8] sm:$0xf0]  ;;  %v3853_v58 = vld [vmem:[#allocation5 + $0x270] sm:$0xf] }
  0x5a   :  { %2706 = vmatpush.bf16.msra.mxu0 %v3962_v27  ;;  %2675 = vmatmul.bf16.vlgmr.msrb.gmra.mxu1 %v5734_v41  ;;  %v4267_v27 = vld [vmem:[#allocation5 + $0x5cc] sm:$0xf0]  ;;  %v5184_v59 = vld [vmem:[#allocation5 + $0x288] sm:$0xf0]  ;;  %v5397_v63 = vld [vmem:[#allocation5 + $0x934] sm:$0xf] }
  0x5b   :  { %2719 = vmatpush.bf16.msra.mxu1 %v4186_v28  ;;  %2688 = vmatmul.bf16.vlgmr.msrb.gmra.mxu2 %v5730_v37  ;;  %v5341_v28 = vld [vmem:[#allocation5 + $0x774] sm:$0xf]  ;;  %v4270_v32 = vor.u32 %v5285_v26, %v4267_v27  ;;  %v5474_v26 = vld [vmem:[#allocation5 + $0xb9c] sm:$0xf]  ;;  %v4687_v14 = vld [vmem:[#allocation5 + $0x914] sm:$0xf0] }
  0x5c   :  { %2732 = vmatpush.bf16.msra.mxu2 %v4410_v29  ;;  %2701 = vmatmul.bf16.vlgmr.msrb.gmra.mxu3 %v5723_v20  ;;  %v4491_v29 = vld [vmem:[#allocation5 + $0x78c] sm:$0xf0] }
  0x5d   :  { %2745 = vmatpush.bf16.msra.mxu3 %v4634_v33  ;;  %v5166_v33 = vld [vmem:[#allocation5 + $0x1fc] sm:$0xf]  ;;  %v4494_v36 = vor.u32 %v5341_v28, %v4491_v29  ;;  %v5023_v28 = vld [vmem:[#allocation5 + $0xbb4] sm:$0xf0]  ;;  %v3685_v29 = vld [vmem:[#allocation5 + $0x120] sm:$0xf] }
  0x5e   :  { %2707 = vmatpush.bf16.msra.mxu0 %v3934_v42  ;;  %v4239_v42 = vld [vmem:[#allocation5 + $0x594] sm:$0xf0]  ;;  %v3794_v45 = vor.u32 %v5166_v33, %v3791_v34  ;;  %v5026_v34 = vor.u32 %v5474_v26, %v5023_v28  ;;  %v4659_v26 = vld [vmem:[#allocation5 + $0x8dc] sm:$0xf0] }
  0x5f   :  { %2720 = vmatpush.bf16.msra.mxu1 %v4158_v43  ;;  %v5334_v43 = vld [vmem:[#allocation5 + $0x73c] sm:$0xf]  ;;  %v4242_v49 = vor.u32 %v5278_v39, %v4239_v42  ;;  %v5467_v39 = vld [vmem:[#allocation5 + $0xb64] sm:$0xf] }
  0x60   :  { %2733 = vmatpush.bf16.msra.mxu2 %v4382_v44  ;;  %v4463_v44 = vld [vmem:[#allocation5 + $0x754] sm:$0xf0] }
  0x61   :  { %2746 = vmatpush.bf16.msra.mxu3 %v4606_v48  ;;  %v4018_v48 = vor.u32 %v5222_v35, %v4015_v38  ;;  %v4466_v53 = vor.u32 %v5334_v43, %v4463_v44  ;;  %v4771_v38 = vld [vmem:[#allocation5 + $0x9bc] sm:$0xf0]  ;;  %v3657_v44 = vld [vmem:[#allocation5 + $0xe8] sm:$0xf] }
  0x62   :  { %2708 = vmatpush.bf16.msra.mxu0 %v3906_v54  ;;  %v4211_v54 = vld [vmem:[#allocation5 + $0x55c] sm:$0xf0] }
  0x63   :  { %2721 = vmatpush.bf16.msra.mxu1 %v4130_v55  ;;  %v5327_v55 = vld [vmem:[#allocation5 + $0x704] sm:$0xf]  ;;  %v4214_v1 = vor.u32 %v5271_v52, %v4211_v54  ;;  %v4995_v43 = vld [vmem:[#allocation5 + $0xb7c] sm:$0xf0]  ;;  %v4743_v52 = vld [vmem:[#allocation5 + $0x984] sm:$0xf0] }
  0x64   :  { %2734 = vmatpush.bf16.msra.mxu2 %v4354_v56  ;;  %v4435_v56 = vld [vmem:[#allocation5 + $0x71c] sm:$0xf0] }
  0x65   :  { %2747 = vmatpush.bf16.msra.mxu3 %v4578_v60  ;;  %v3766_v60 = vor.u32 %v5159_v46, %v3763_v47  ;;  %v3881_v46 = vld [vmem:[#allocation5 + $0x2a8] sm:$0xf]  ;;  %v5191_v47 = vld [vmem:[#allocation5 + $0x2c0] sm:$0xf0] }
  0x66   :  { %2709 = vmatpush.bf16.msra.mxu0 %v3878_v2  ;;  %v3965_v2 = vld [vmem:[#allocation5 + $0x350] sm:$0xf]  ;;  %v3882_v54 = vor.u32 %v5191_v47, %v3881_v46 }
  0x67   :  { %2722 = vmatpush.bf16.msra.mxu1 %v4102_v3  ;;  %v5212_v3 = vld [vmem:[#allocation5 + $0x368] sm:$0xf0] }
  0x68   :  { %2735 = vmatpush.bf16.msra.mxu2 %v4326_v5  ;;  %v4438_v5 = vor.u32 %v5327_v55, %v4435_v56  ;;  %v3966_v13 = vor.u32 %v5212_v3, %v3965_v2  ;;  %v4967_v55 = vld [vmem:[#allocation5 + $0xb44] sm:$0xf0]  ;;  %v3629_v56 = vld [vmem:[#allocation5 + $0xb0] sm:$0xf]  ;;  %v3854_v2 = vor.u32 %v5184_v59, %v3853_v58  ;;  %v5317_v58 = vld [vmem:[#allocation5 + $0x6b0] sm:$0xf0] }
  0x69   :  { %2748 = vmatpush.bf16.msra.mxu3 %v4550_v10  ;;  %v5425_v10 = vld [vmem:[#allocation5 + $0xa14] sm:$0xf]  ;;  %v3630_v62 = vor.u32 %v5128_v57, %v3629_v56  ;;  %v4939_v3 = vld [vmem:[#allocation5 + $0xb0c] sm:$0xf0]  ;;  %v4385_v56 = vld [vmem:[#allocation5 + $0x698] sm:$0xf] }
  0x6a   :  { %2710 = vmatpush.bf16.msra.mxu0 %v3850_v16  ;;  %v5149_v16 = vld [vmem:[#allocation5 + $0x170] sm:$0xf0]  ;;  %v4830_v19 = vor.u32 %v5425_v10, %v4827_v11  ;;  %v4609_v59 = vld [vmem:[#allocation5 + $0x858] sm:$0xf] }
  0x6b   :  { %2723 = vmatpush.bf16.msra.mxu1 %v4074_v17  ;;  %v3937_v17 = vld [vmem:[#allocation5 + $0x318] sm:$0xf]  ;;  %v3714_v23 = vor.u32 %v5149_v16, %v3713_v15  ;;  %v5446_v15 = vld [vmem:[#allocation5 + $0xabc] sm:$0xf] }
  0x6c   :  { %2736 = vmatpush.bf16.msra.mxu2 %v4298_v18  ;;  %v5205_v18 = vld [vmem:[#allocation5 + $0x330] sm:$0xf0] }
  0x6d   :  { %2749 = vmatpush.bf16.msra.mxu3 %v4522_v24  ;;  %v5418_v24 = vld [vmem:[#allocation5 + $0x9dc] sm:$0xf]  ;;  %v3938_v27 = vor.u32 %v5205_v18, %v3937_v17  ;;  %v4911_v17 = vld [vmem:[#allocation5 + $0xad4] sm:$0xf0]  ;;  %v3573_v18 = vld [vmem:[#allocation5 + $0x40] sm:$0xf] }
  0x6e   :  { %2711 = vmatpush.bf16.msra.mxu0 %v3822_v30  ;;  %v5142_v30 = vld [vmem:[#allocation5 + $0x138] sm:$0xf0]  ;;  %v4802_v33 = vor.u32 %v5418_v24, %v4799_v25  ;;  %v5383_v25 = vld [vmem:[#allocation5 + $0x8c4] sm:$0xf] }
  0x6f   :  { %2724 = vmatpush.bf16.msra.mxu1 %v4046_v31  ;;  %v3909_v31 = vld [vmem:[#allocation5 + $0x2e0] sm:$0xf]  ;;  %v3686_v35 = vor.u32 %v5142_v30, %v3685_v29  ;;  %v5439_v29 = vld [vmem:[#allocation5 + $0xa84] sm:$0xf] }
  0x70   :  { %2737 = vmatpush.bf16.msra.mxu2 %v4270_v32  ;;  %v5198_v32 = vld [vmem:[#allocation5 + $0x2f8] sm:$0xf0]  ;;  %v4883_v30 = vld [vmem:[#allocation5 + $0xa9c] sm:$0xf0] }
  0x71   :  { %2750 = vmatpush.bf16.msra.mxu3 %v4494_v36  ;;  %v5411_v36 = vld [vmem:[#allocation5 + $0x9a4] sm:$0xf]  ;;  %v3910_v42 = vor.u32 %v5198_v32, %v3909_v31  ;;  %v3545_v31 = vld [vmem:[#allocation5 + $0x8] sm:$0xf]  ;;  %v4886_v46 = vor.u32 %v5439_v29, %v4883_v30  ;;  %v4077_v30 = vld [vmem:[#allocation5 + $0x430] sm:$0xf] }
  0x72   :  { %2712 = vmatpush.bf16.msra.mxu0 %v3794_v45  ;;  %v5135_v45 = vld [vmem:[#allocation5 + $0x100] sm:$0xf0] }
  0x73   :  { %2725 = vmatpush.bf16.msra.mxu1 %v4018_v48  ;;  %v4774_v48 = vor.u32 %v5411_v36, %v4771_v38  ;;  %v3658_v50 = vor.u32 %v5135_v45, %v3657_v44  ;;  %v4189_v36 = vld [vmem:[#allocation5 + $0x510] sm:$0xf]  ;;  %v5268_v38 = vld [vmem:[#allocation5 + $0x528] sm:$0xf0] }
  0x74   :  { %2738 = vmatpush.bf16.msra.mxu2 %v4242_v49  ;;  %v4998_v49 = vor.u32 %v5467_v39, %v4995_v43  ;;  %v4413_v39 = vld [vmem:[#allocation5 + $0x6d0] sm:$0xf]  ;;  %v5324_v43 = vld [vmem:[#allocation5 + $0x6e8] sm:$0xf0] }
  0x75   :  { %2751 = vmatpush.bf16.msra.mxu3 %v4466_v53  ;;  %v5460_v53 = vld [vmem:[#allocation5 + $0xb2c] sm:$0xf]  ;;  %v4637_v44 = vld [vmem:[#allocation5 + $0x890] sm:$0xf] }
  0x76   :  { %2713 = vmatpush.bf16.msra.mxu0 %v3766_v60  ;;  %v4746_v60 = vor.u32 %v5404_v51, %v4743_v52  ;;  %v4970_v61 = vor.u32 %v5460_v53, %v4967_v55  ;;  %v5380_v45 = vld [vmem:[#allocation5 + $0x8a8] sm:$0xf0]  ;;  %v4190_v51 = vor.u32 %v5268_v38, %v4189_v36  ;;  %v4414_v52 = vor.u32 %v5324_v43, %v4413_v39  ;;  %v5261_v55 = vld [vmem:[#allocation5 + $0x4f0] sm:$0xf0]  ;;  %v4749_v38 = vld [vmem:[#allocation5 + $0x970] sm:$0xf] }
  0x77   :  { %2726 = vmatpush.bf16.msra.mxu1 %v3990_v0  ;;  %v4715_v0 = vld [vmem:[#allocation5 + $0x94c] sm:$0xf0]  ;;  %v4638_v53 = vor.u32 %v5380_v45, %v4637_v44  ;;  %v5352_v36 = vld [vmem:[#allocation5 + $0x7c8] sm:$0xf0]  ;;  %v4049_v45 = vld [vmem:[#allocation5 + $0x3f8] sm:$0xf] }
  0x78   :  { %2739 = vmatpush.bf16.msra.mxu2 %v4214_v1  ;;  %v5453_v1 = vld [vmem:[#allocation5 + $0xaf4] sm:$0xf]  ;;  %v4718_v10 = vor.u32 %v5397_v63, %v4715_v0  ;;  %v4386_v0 = vor.u32 %v5317_v58, %v4385_v56  ;;  %v5408_v39 = vld [vmem:[#allocation5 + $0x988] sm:$0xf0]  ;;  %v5226_v58 = vld [vmem:[#allocation5 + $0x3d8] sm:$0xf0] }
  0x79   :  { %2752 = vmatpush.bf16.msra.mxu3 %v4438_v5  ;;  %2714 = vmatmul.bf16.vlgmr.msra.gmra.mxu0 %v5725_v21  ;;  %v3601_v5 = vld [vmem:[#allocation5 + $0x78] sm:$0xf]  ;;  %v4942_v11 = vor.u32 %v5453_v1, %v4939_v3  ;;  %v5254_v3 = vld [vmem:[#allocation5 + $0x4b8] sm:$0xf0] }
  0x7a   :  { %2758 = vmatpush.bf16.msrb.mxu0 %v4858_v7  ;;  %2727 = vmatmul.bf16.vlgmr.msra.gmra.mxu1 %v5718_v4  ;;  %v5121_v7 = vld [vmem:[#allocation5 + $0x90] sm:$0xf0] }
  0x7b   :  { %2771 = vmatpush.bf16.msrb.mxu1 %v5082_v8  ;;  %2740 = vmatmul.bf16.vlgmr.msra.gmra.mxu2 %v5720_v6  ;;  %v3825_v8 = vld [vmem:[#allocation5 + $0x238] sm:$0xf]  ;;  %v3602_v12 = vor.u32 %v5121_v7, %v3601_v5  ;;  %v4357_v5 = vld [vmem:[#allocation5 + $0x660] sm:$0xf] }
  0x7c   :  { %2784 = vmatpush.bf16.msrb.mxu2 %v3742_v9  ;;  %2753 = vmatmul.bf16.vlgmr.msra.gmra.mxu3 %v5732_v40  ;;  %v5177_v9 = vld [vmem:[#allocation5 + $0x250] sm:$0xf0] }
  0x7d   :  { %2797 = vmatpush.bf16.msrb.mxu3 %v3966_v13  ;;  %v5390_v13 = vld [vmem:[#allocation5 + $0x8fc] sm:$0xf]  ;;  %v3826_v16 = vor.u32 %v5177_v9, %v3825_v8  ;;  %v4581_v9 = vld [vmem:[#allocation5 + $0x820] sm:$0xf] }
  0x7e   :  { %2759 = vmatpush.bf16.msrb.mxu0 %v4830_v19  ;;  %v5114_v19 = vld [vmem:[#allocation5 + $0x58] sm:$0xf0]  ;;  %v4690_v24 = vor.u32 %v5390_v13, %v4687_v14 }
  0x7f   :  { %2772 = vmatpush.bf16.msrb.mxu1 %v5054_v22  ;;  %v3797_v22 = vld [vmem:[#allocation5 + $0x200] sm:$0xf]  ;;  %v3574_v28 = vor.u32 %v5114_v19, %v3573_v18  ;;  %v5310_v8 = vld [vmem:[#allocation5 + $0x678] sm:$0xf0]  ;;  %v4329_v18 = vld [vmem:[#allocation5 + $0x628] sm:$0xf] }
  0x80   :  { %2785 = vmatpush.bf16.msrb.mxu2 %v3714_v23  ;;  %v5170_v23 = vld [vmem:[#allocation5 + $0x218] sm:$0xf0]  ;;  %v4358_v14 = vor.u32 %v5310_v8, %v4357_v5  ;;  %v5219_v5 = vld [vmem:[#allocation5 + $0x3a0] sm:$0xf0] }
  0x81   :  { %2798 = vmatpush.bf16.msrb.mxu3 %v3938_v27  ;;  %v4914_v27 = vor.u32 %v5446_v15, %v4911_v17  ;;  %v3798_v32 = vor.u32 %v5170_v23, %v3797_v22  ;;  %v5247_v17 = vld [vmem:[#allocation5 + $0x480] sm:$0xf0]  ;;  %v4553_v23 = vld [vmem:[#allocation5 + $0x7e8] sm:$0xf] }
  0x82   :  { %2760 = vmatpush.bf16.msrb.mxu0 %v4802_v33  ;;  %v5107_v33 = vld [vmem:[#allocation5 + $0x20] sm:$0xf0] }
  0x83   :  { %2773 = vmatpush.bf16.msrb.mxu1 %v5026_v34  ;;  %v3769_v34 = vld [vmem:[#allocation5 + $0x1c8] sm:$0xf]  ;;  %v3546_v47 = vor.u32 %v5107_v33, %v3545_v31  ;;  %v5303_v22 = vld [vmem:[#allocation5 + $0x640] sm:$0xf0]  ;;  %v5240_v31 = vld [vmem:[#allocation5 + $0x448] sm:$0xf0] }
  0x84   :  { %2786 = vmatpush.bf16.msrb.mxu2 %v3686_v35  ;;  %v5163_v35 = vld [vmem:[#allocation5 + $0x1e0] sm:$0xf0] }
  0x85   :  { %2799 = vmatpush.bf16.msrb.mxu3 %v3910_v42  ;;  %v4662_v42 = vor.u32 %v5383_v25, %v4659_v26  ;;  %v4777_v25 = vld [vmem:[#allocation5 + $0x9a8] sm:$0xf]  ;;  %v5415_v26 = vld [vmem:[#allocation5 + $0x9c0] sm:$0xf0] }
  0x86   :  { %2761 = vmatpush.bf16.msrb.mxu0 %v4774_v48  ;;  %v4861_v48 = vld [vmem:[#allocation5 + $0xa50] sm:$0xf]  ;;  %v4778_v33 = vor.u32 %v5415_v26, %v4777_v25 }
  0x87   :  { %2774 = vmatpush.bf16.msrb.mxu1 %v4998_v49  ;;  %v5436_v49 = vld [vmem:[#allocation5 + $0xa68] sm:$0xf0] }
  0x88   :  { %2787 = vmatpush.bf16.msrb.mxu2 %v3658_v50  ;;  %v3770_v50 = vor.u32 %v5163_v35, %v3769_v34  ;;  %v4862_v57 = vor.u32 %v5436_v49, %v4861_v48  ;;  %v5296_v34 = vld [vmem:[#allocation5 + $0x608] sm:$0xf0]  ;;  %v4525_v35 = vld [vmem:[#allocation5 + $0x7b0] sm:$0xf]  ;;  %v4750_v48 = vor.u32 %v5408_v39, %v4749_v38  ;;  %v5289_v49 = vld [vmem:[#allocation5 + $0x5d0] sm:$0xf0] }
  0x89   :  { %2800 = vmatpush.bf16.msrb.mxu3 %v3882_v54  ;;  %v4161_v54 = vld [vmem:[#allocation5 + $0x4d8] sm:$0xf]  ;;  %v4526_v44 = vor.u32 %v5352_v36, %v4525_v35  ;;  %v5146_v35 = vld [vmem:[#allocation5 + $0x15c] sm:$0xf] }
  0x8a   :  { %2762 = vmatpush.bf16.msrb.mxu0 %v4746_v60  ;;  %v5373_v60 = vld [vmem:[#allocation5 + $0x870] sm:$0xf0]  ;;  %v4162_v63 = vor.u32 %v5261_v55, %v4161_v54  ;;  %v3715_v38 = vld [vmem:[#allocation5 + $0x174] sm:$0xf0]  ;;  %v5202_v39 = vld [vmem:[#allocation5 + $0x31c] sm:$0xf] }
  0x8b   :  { %2775 = vmatpush.bf16.msrb.mxu1 %v4970_v61  ;;  %v4833_v61 = vld [vmem:[#allocation5 + $0xa18] sm:$0xf]  ;;  %v4610_v1 = vor.u32 %v5373_v60, %v4609_v59  ;;  %v4245_v59 = vld [vmem:[#allocation5 + $0x580] sm:$0xf] }
  0x8c   :  { %2788 = vmatpush.bf16.msrb.mxu2 %v3630_v62  ;;  %v5429_v62 = vld [vmem:[#allocation5 + $0xa30] sm:$0xf0] }
  0x8d   :  { %2801 = vmatpush.bf16.msrb.mxu3 %v3854_v2  ;;  %v4133_v2 = vld [vmem:[#allocation5 + $0x4a0] sm:$0xf]  ;;  %v4834_v7 = vor.u32 %v5429_v62, %v4833_v61  ;;  %v5282_v61 = vld [vmem:[#allocation5 + $0x598] sm:$0xf0] }
  0x8e   :  { %2763 = vmatpush.bf16.msrb.mxu0 %v4718_v10  ;;  %v5366_v10 = vld [vmem:[#allocation5 + $0x838] sm:$0xf0]  ;;  %v4134_v13 = vor.u32 %v5254_v3, %v4133_v2  ;;  %v4469_v62 = vld [vmem:[#allocation5 + $0x740] sm:$0xf]  ;;  %v3993_v3 = vld [vmem:[#allocation5 + $0x388] sm:$0xf] }
  0x8f   :  { %2776 = vmatpush.bf16.msrb.mxu1 %v4942_v11  ;;  %v4805_v11 = vld [vmem:[#allocation5 + $0x9e0] sm:$0xf]  ;;  %v4582_v15 = vor.u32 %v5366_v10, %v4581_v9  ;;  %v4217_v9 = vld [vmem:[#allocation5 + $0x548] sm:$0xf]  ;;  %v5275_v10 = vld [vmem:[#allocation5 + $0x560] sm:$0xf0] }
  0x90   :  { %2789 = vmatpush.bf16.msrb.mxu2 %v3602_v12  ;;  %v5422_v12 = vld [vmem:[#allocation5 + $0x9f8] sm:$0xf0]  ;;  %v4218_v25 = vor.u32 %v5275_v10, %v4217_v9  ;;  %v4973_v10 = vld [vmem:[#allocation5 + $0xb30] sm:$0xf] }
  0x91   :  { %2802 = vmatpush.bf16.msrb.mxu3 %v3826_v16  ;;  %v4105_v16 = vld [vmem:[#allocation5 + $0x468] sm:$0xf]  ;;  %v4806_v19 = vor.u32 %v5422_v12, %v4805_v11 }
  0x92   :  { %2764 = vmatpush.bf16.msrb.mxu0 %v4690_v24  ;;  %v5359_v24 = vld [vmem:[#allocation5 + $0x800] sm:$0xf0]  ;;  %v4441_v11 = vld [vmem:[#allocation5 + $0x708] sm:$0xf] }
  0x93   :  { %2777 = vmatpush.bf16.msrb.mxu1 %v4914_v27  ;;  %v4106_v27 = vor.u32 %v5247_v17, %v4105_v16  ;;  %v4554_v29 = vor.u32 %v5359_v24, %v4553_v23  ;;  %v5085_v16 = vld [vmem:[#allocation5 + $0xc10] sm:$0xf]  ;;  %v5492_v17 = vld [vmem:[#allocation5 + $0xc28] sm:$0xf0]  ;;  %v5209_v23 = vld [vmem:[#allocation5 + $0x354] sm:$0xf] }
  0x94   :  { %2790 = vmatpush.bf16.msrb.mxu2 %v3574_v28  ;;  %v4330_v28 = vor.u32 %v5303_v22, %v4329_v18  ;;  %v5153_v18 = vld [vmem:[#allocation5 + $0x194] sm:$0xf]  ;;  %v3743_v22 = vld [vmem:[#allocation5 + $0x1ac] sm:$0xf0] }
  0x95   :  { %2803 = vmatpush.bf16.msrb.mxu3 %v3798_v32  ;;  %v4301_v32 = vld [vmem:[#allocation5 + $0x5f0] sm:$0xf] }
  0x96   :  { %2765 = vmatpush.bf16.msrb.mxu0 %v4662_v42  ;;  %v4078_v42 = vor.u32 %v5240_v31, %v4077_v30  ;;  %v4302_v43 = vor.u32 %v5296_v34, %v4301_v32  ;;  %v3967_v24 = vld [vmem:[#allocation5 + $0x36c] sm:$0xf0]  ;;  %v5086_v30 = vor.u32 %v5492_v17, %v5085_v16  ;;  %v3746_v31 = vor.u32 %v5153_v18, %v3743_v22  ;;  %v5485_v34 = vld [vmem:[#allocation5 + $0xbf0] sm:$0xf0] }
  0x97   :  { %2778 = vmatpush.bf16.msrb.mxu1 %v4886_v46  ;;  %v5233_v46 = vld [vmem:[#allocation5 + $0x410] sm:$0xf0]  ;;  %v3970_v32 = vor.u32 %v5209_v23, %v3967_v24  ;;  %v3855_v16 = vld [vmem:[#allocation5 + $0x28c] sm:$0xf0]  ;;  %v4945_v24 = vld [vmem:[#allocation5 + $0xaf8] sm:$0xf] }
  0x98   :  { %2791 = vmatpush.bf16.msrb.mxu2 %v3546_v47  ;;  %v4273_v47 = vld [vmem:[#allocation5 + $0x5b8] sm:$0xf]  ;;  %v4050_v54 = vor.u32 %v5233_v46, %v4049_v45  ;;  %v3718_v46 = vor.u32 %v5146_v35, %v3715_v38  ;;  %v5237_v17 = vld [vmem:[#allocation5 + $0x434] sm:$0xf]  ;;  %v4079_v18 = vld [vmem:[#allocation5 + $0x44c] sm:$0xf0] }
  0x99   :  { %2804 = vmatpush.bf16.msrb.mxu3 %v3770_v50  ;;  %2766 = vmatmul.bf16.vlgmr.msrb.gmra.mxu0 %v5734_v41  ;;  %v4497_v50 = vld [vmem:[#allocation5 + $0x778] sm:$0xf]  ;;  %v4274_v55 = vor.u32 %v5289_v49, %v4273_v47  ;;  %v5478_v49 = vld [vmem:[#allocation5 + $0xbb8] sm:$0xf0]  ;;  %v5752_v35 = vld [vmem:[#allocation7] sm:$0xff] }
  0x9a   :  { %2810 = vmatpush.bf16.msra.mxu0 %v4190_v51  ;;  %2779 = vmatmul.bf16.vlgmr.msrb.gmra.mxu1 %v5730_v37  ;;  %v5345_v51 = vld [vmem:[#allocation5 + $0x790] sm:$0xf0] }
  0x9b   :  { %2823 = vmatpush.bf16.msra.mxu1 %v4414_v52  ;;  %2792 = vmatmul.bf16.vlgmr.msrb.gmra.mxu2 %v5723_v20  ;;  %v4721_v52 = vld [vmem:[#allocation5 + $0x938] sm:$0xf]  ;;  %v4498_v56 = vor.u32 %v5345_v51, %v4497_v50  ;;  %v5139_v50 = vld [vmem:[#allocation5 + $0x124] sm:$0xf] }
  0x9c   :  { %2836 = vmatpush.bf16.msra.mxu2 %v4638_v53  ;;  %2805 = vmatmul.bf16.vlgmr.msrb.gmra.mxu3 %v5725_v21  ;;  %v5401_v53 = vld [vmem:[#allocation5 + $0x950] sm:$0xf0] }
  0x9d   :  { %2849 = vmatpush.bf16.msra.mxu3 %v4862_v57  ;;  %v4021_v57 = vld [vmem:[#allocation5 + $0x3c0] sm:$0xf]  ;;  %v4722_v60 = vor.u32 %v5401_v53, %v4721_v52  ;;  %v5195_v53 = vld [vmem:[#allocation5 + $0x2e4] sm:$0xf] }
  0x9e   :  { %2811 = vmatpush.bf16.msra.mxu0 %v4162_v63  ;;  %v5338_v63 = vld [vmem:[#allocation5 + $0x758] sm:$0xf0]  ;;  %v4022_v2 = vor.u32 %v5226_v58, %v4021_v57  ;;  %v3687_v52 = vld [vmem:[#allocation5 + $0x13c] sm:$0xf0] }
  0x9f   :  { %2824 = vmatpush.bf16.msra.mxu1 %v4386_v0  ;;  %v4693_v0 = vld [vmem:[#allocation5 + $0x900] sm:$0xf]  ;;  %v4470_v8 = vor.u32 %v5338_v63, %v4469_v62  ;;  %v3690_v58 = vor.u32 %v5139_v50, %v3687_v52  ;;  %v5132_v62 = vld [vmem:[#allocation5 + $0xec] sm:$0xf] }
  0xa0   :  { %2837 = vmatpush.bf16.msra.mxu2 %v4610_v1  ;;  %v5394_v1 = vld [vmem:[#allocation5 + $0x918] sm:$0xf0]  ;;  %v4023_v52 = vld [vmem:[#allocation5 + $0x3dc] sm:$0xf0] }
  0xa1   :  { %2850 = vmatpush.bf16.msra.mxu3 %v4834_v7  ;;  %v4246_v7 = vor.u32 %v5282_v61, %v4245_v59  ;;  %v4694_v12 = vor.u32 %v5394_v1, %v4693_v0  ;;  %v5471_v61 = vld [vmem:[#allocation5 + $0xb80] sm:$0xf0]  ;;  %v3659_v0 = vld [vmem:[#allocation5 + $0x104] sm:$0xf0]  ;;  %v5188_v1 = vld [vmem:[#allocation5 + $0x2ac] sm:$0xf] }
  0xa2   :  { %2812 = vmatpush.bf16.msra.mxu0 %v4134_v13  ;;  %v5331_v13 = vld [vmem:[#allocation5 + $0x720] sm:$0xf0] }
  0xa3   :  { %2825 = vmatpush.bf16.msra.mxu1 %v4358_v14  ;;  %v4665_v14 = vld [vmem:[#allocation5 + $0x8c8] sm:$0xf]  ;;  %v4442_v26 = vor.u32 %v5331_v13, %v4441_v11  ;;  %v5464_v11 = vld [vmem:[#allocation5 + $0xb48] sm:$0xf0] }
  0xa4   :  { %2838 = vmatpush.bf16.msra.mxu2 %v4582_v15  ;;  %v5387_v15 = vld [vmem:[#allocation5 + $0x8e0] sm:$0xf0] }
  0xa5   :  { %2851 = vmatpush.bf16.msra.mxu3 %v4806_v19  ;;  %v3994_v19 = vor.u32 %v5219_v5, %v3993_v3  ;;  %v5244_v3 = vld [vmem:[#allocation5 + $0x46c] sm:$0xf]  ;;  %v4107_v5 = vld [vmem:[#allocation5 + $0x484] sm:$0xf0] }
  0xa6   :  { %2813 = vmatpush.bf16.msra.mxu0 %v4106_v27  ;;  %v5265_v27 = vld [vmem:[#allocation5 + $0x514] sm:$0xf]  ;;  %v4110_v13 = vor.u32 %v5244_v3, %v4107_v5  ;;  %v4415_v3 = vld [vmem:[#allocation5 + $0x6ec] sm:$0xf0] }
  0xa7   :  { %2826 = vmatpush.bf16.msra.mxu1 %v4330_v28  ;;  %v4191_v28 = vld [vmem:[#allocation5 + $0x52c] sm:$0xf0]  ;;  %v5377_v5 = vld [vmem:[#allocation5 + $0x894] sm:$0xf] }
  0xa8   :  { %2839 = vmatpush.bf16.msra.mxu2 %v4554_v29  ;;  %v4666_v29 = vor.u32 %v5387_v15, %v4665_v14  ;;  %v4194_v36 = vor.u32 %v5265_v27, %v4191_v28  ;;  %v3631_v14 = vld [vmem:[#allocation5 + $0xcc] sm:$0xf0]  ;;  %v5181_v15 = vld [vmem:[#allocation5 + $0x274] sm:$0xf]  ;;  %v4082_v27 = vor.u32 %v5237_v17, %v4079_v18  ;;  %v3603_v28 = vld [vmem:[#allocation5 + $0x94] sm:$0xf0] }
  0xa9   :  { %2852 = vmatpush.bf16.msra.mxu3 %v4778_v33  ;;  %v5057_v33 = vld [vmem:[#allocation5 + $0xbd8] sm:$0xf]  ;;  %v3858_v23 = vor.u32 %v5181_v15, %v3855_v16  ;;  %v5489_v16 = vld [vmem:[#allocation5 + $0xc14] sm:$0xf]  ;;  %v5087_v17 = vld [vmem:[#allocation5 + $0xc2c] sm:$0xf0] }
  0xaa   :  { %2814 = vmatpush.bf16.msra.mxu0 %v4078_v42  ;;  %v3939_v42 = vld [vmem:[#allocation5 + $0x334] sm:$0xf0]  ;;  %v5058_v45 = vor.u32 %v5485_v34, %v5057_v33 }
  0xab   :  { %2827 = vmatpush.bf16.msra.mxu1 %v4302_v43  ;;  %v5258_v43 = vld [vmem:[#allocation5 + $0x4dc] sm:$0xf]  ;;  %v3942_v47 = vor.u32 %v5202_v39, %v3939_v42  ;;  %v4917_v42 = vld [vmem:[#allocation5 + $0xac0] sm:$0xf] }
  0xac   :  { %2840 = vmatpush.bf16.msra.mxu2 %v4526_v44  ;;  %v4163_v44 = vld [vmem:[#allocation5 + $0x4f4] sm:$0xf0] }
  0xad   :  { %2853 = vmatpush.bf16.msra.mxu3 %v4750_v48  ;;  %v5029_v48 = vld [vmem:[#allocation5 + $0xba0] sm:$0xf]  ;;  %v4166_v51 = vor.u32 %v5258_v43, %v4163_v44  ;;  %v5450_v43 = vld [vmem:[#allocation5 + $0xad8] sm:$0xf0]  ;;  %v5111_v44 = vld [vmem:[#allocation5 + $0x44] sm:$0xf] }
  0xae   :  { %2815 = vmatpush.bf16.msra.mxu0 %v4050_v54  ;;  %v3911_v54 = vld [vmem:[#allocation5 + $0x2fc] sm:$0xf0]  ;;  %v5030_v57 = vor.u32 %v5478_v49, %v5029_v48  ;;  %v5167_v48 = vld [vmem:[#allocation5 + $0x204] sm:$0xf] }
  0xaf   :  { %2828 = vmatpush.bf16.msra.mxu1 %v4274_v55  ;;  %v5251_v55 = vld [vmem:[#allocation5 + $0x4a4] sm:$0xf]  ;;  %v3914_v59 = vor.u32 %v5195_v53, %v3911_v54  ;;  %v3799_v49 = vld [vmem:[#allocation5 + $0x21c] sm:$0xf0]  ;;  %v547_v53 = vperm.slane %v5752_v35, 0  ;;  %v4918_v54 = vor.u32 %v5450_v43, %v4917_v42 }
  0xb0   :  { %2841 = vmatpush.bf16.msra.mxu2 %v4498_v56  ;;  %v4135_v56 = vld [vmem:[#allocation5 + $0x4bc] sm:$0xf0] }
  0xb1   :  { %2854 = vmatpush.bf16.msra.mxu3 %v4722_v60  ;;  %v5001_v60 = vld [vmem:[#allocation5 + $0xb68] sm:$0xf]  ;;  %v4138_v63 = vor.u32 %v5251_v55, %v4135_v56  ;;  %v5443_v56 = vld [vmem:[#allocation5 + $0xaa0] sm:$0xf0] }
  0xb2   :  { %2816 = vmatpush.bf16.msra.mxu0 %v4022_v2  ;;  %v3883_v2 = vld [vmem:[#allocation5 + $0x2c4] sm:$0xf0] }
  0xb3   :  { %2829 = vmatpush.bf16.msra.mxu1 %v4246_v7  ;;  %v5002_v7 = vor.u32 %v5471_v61, %v5001_v60  ;;  %v3886_v9 = vor.u32 %v5188_v1, %v3883_v2  ;;  %v4889_v55 = vld [vmem:[#allocation5 + $0xa88] sm:$0xf]  ;;  %v5160_v61 = vld [vmem:[#allocation5 + $0x1cc] sm:$0xf]  ;;  %v5321_v2 = vld [vmem:[#allocation5 + $0x6d4] sm:$0xf] }
  0xb4   :  { %2842 = vmatpush.bf16.msra.mxu2 %v4470_v8  ;;  %v3662_v8 = vor.u32 %v5132_v62, %v3659_v0  ;;  %v3547_v60 = vld [vmem:[#allocation5 + $0x24] sm:$0xf0]  ;;  %v5216_v0 = vld [vmem:[#allocation5 + $0x38c] sm:$0xf] }
  0xb5   :  { %2855 = vmatpush.bf16.msra.mxu3 %v4694_v12  ;;  %v5125_v12 = vld [vmem:[#allocation5 + $0xb4] sm:$0xf]  ;;  %v3995_v1 = vld [vmem:[#allocation5 + $0x3a4] sm:$0xf0] }
  0xb6   :  { %2817 = vmatpush.bf16.msra.mxu0 %v3994_v19  ;;  %v4974_v19 = vor.u32 %v5464_v11, %v4973_v10  ;;  %v3634_v22 = vor.u32 %v5125_v12, %v3631_v14  ;;  %v4639_v10 = vld [vmem:[#allocation5 + $0x8ac] sm:$0xf0]  ;;  %v5433_v11 = vld [vmem:[#allocation5 + $0xa54] sm:$0xf] }
  0xb7   :  { %2830 = vmatpush.bf16.msra.mxu1 %v4218_v25  ;;  %v5457_v25 = vld [vmem:[#allocation5 + $0xb10] sm:$0xf0]  ;;  %v4863_v12 = vld [vmem:[#allocation5 + $0xa6c] sm:$0xf0] }
  0xb8   :  { %2843 = vmatpush.bf16.msra.mxu2 %v4442_v26  ;;  %v5118_v26 = vld [vmem:[#allocation5 + $0x7c] sm:$0xf]  ;;  %v4946_v34 = vor.u32 %v5457_v25, %v4945_v24  ;;  %v4642_v24 = vor.u32 %v5377_v5, %v4639_v10  ;;  %v4866_v25 = vor.u32 %v5433_v11, %v4863_v12  ;;  %v5293_v10 = vld [vmem:[#allocation5 + $0x5f4] sm:$0xf]  ;;  %v4303_v11 = vld [vmem:[#allocation5 + $0x60c] sm:$0xf0] }
  0xb9   :  { %2856 = vmatpush.bf16.msra.mxu3 %v4666_v29  ;;  %2818 = vmatmul.bf16.vlgmr.msra.gmra.mxu0 %v5718_v4  ;;  %v5174_v29 = vld [vmem:[#allocation5 + $0x23c] sm:$0xf]  ;;  %v3606_v38 = vor.u32 %v5118_v26, %v3603_v28  ;;  %v4387_v28 = vld [vmem:[#allocation5 + $0x6b4] sm:$0xf0]  ;;  %v5349_v12 = vld [vmem:[#allocation5 + $0x7b4] sm:$0xf] }
  0xba   :  { %2862 = vmatpush.bf16.msrb.mxu0 %v5086_v30  ;;  %2831 = vmatmul.bf16.vlgmr.msra.gmra.mxu1 %v5720_v6  ;;  %v3827_v30 = vld [vmem:[#allocation5 + $0x254] sm:$0xf0]  ;;  %v2611_v33 = vpop.f32.mrf.mxu0 }
  0xbb   :  { %2875 = vmatpush.bf16.msrb.mxu1 %v3746_v31  ;;  %2844 = vmatmul.bf16.vlgmr.msra.gmra.mxu2 %v5732_v40  ;;  %v5230_v31 = vld [vmem:[#allocation5 + $0x3fc] sm:$0xf]  ;;  %v3830_v39 = vor.u32 %v5174_v29, %v3827_v30  ;;  %v5090_v30 = vor.u32 %v5489_v16, %v5087_v17  ;;  %v4751_v16 = vld [vmem:[#allocation5 + $0x98c] sm:$0xf0]  ;;  %v5461_v17 = vld [vmem:[#allocation5 + $0xb34] sm:$0xf] }
  0xbc   :  { %2888 = vmatpush.bf16.msrb.mxu2 %v3970_v32  ;;  %2857 = vmatmul.bf16.vlgmr.msra.gmra.mxu3 %v5734_v41  ;;  %v4051_v32 = vld [vmem:[#allocation5 + $0x414] sm:$0xf0]  ;;  %v5370_v29 = vld [vmem:[#allocation5 + $0x85c] sm:$0xf] }
  0xbd   :  { %2901 = vmatpush.bf16.msrb.mxu3 %v4194_v36  ;;  %v2624_v36 = vpop.f32.mrf.mxu1 }
  0xbe   :  { %2863 = vmatpush.bf16.msrb.mxu0 %v5058_v45  ;;  %v5754_v45 = vpop.f32.mrf.mxu2 }
  0xbf   :  { %2876 = vmatpush.bf16.msrb.mxu1 %v3718_v46  ;;  %v4054_v46 = vor.u32 %v5230_v31, %v4051_v32  ;;  %v5756_v50 = vpop.f32.mrf.mxu3  ;;  %v4611_v31 = vld [vmem:[#allocation5 + $0x874] sm:$0xf0]  ;;  %v5426_v32 = vld [vmem:[#allocation5 + $0xa1c] sm:$0xf] }
  0xc0   :  { %2889 = vmatpush.bf16.msrb.mxu2 %v3942_v47  ;;  %v3575_v47 = vld [vmem:[#allocation5 + $0x5c] sm:$0xf0]  ;;  %v4614_v42 = vor.u32 %v5370_v29, %v4611_v31  ;;  %v5398_v31 = vld [vmem:[#allocation5 + $0x93c] sm:$0xf] }
  0xc1   :  { %2902 = vmatpush.bf16.msrb.mxu3 %v4166_v51  ;;  %v5223_v51 = vld [vmem:[#allocation5 + $0x3c4] sm:$0xf] }
  0xc2   :  { %2864 = vmatpush.bf16.msrb.mxu0 %v5030_v57  ;;  %v3578_v57 = vor.u32 %v5111_v44, %v3575_v47  ;;  %v4026_v62 = vor.u32 %v5223_v51, %v4023_v52  ;;  %v5307_v44 = vld [vmem:[#allocation5 + $0x664] sm:$0xf]  ;;  %v4807_v52 = vld [vmem:[#allocation5 + $0x9fc] sm:$0xf0] }
  0xc3   :  { %2877 = vmatpush.bf16.msrb.mxu1 %v3690_v58  ;;  %v3802_v58 = vor.u32 %v5167_v48, %v3799_v49  ;;  %v5363_v47 = vld [vmem:[#allocation5 + $0x824] sm:$0xf]  ;;  %v4583_v49 = vld [vmem:[#allocation5 + $0x83c] sm:$0xf0] }
  0xc4   :  { %2890 = vmatpush.bf16.msrb.mxu2 %v3914_v59  ;;  %v5104_v59 = vld [vmem:[#allocation5 + $0xc] sm:$0xf]  ;;  %v5419_v51 = vld [vmem:[#allocation5 + $0x9e4] sm:$0xf] }
  0xc5   :  { %2903 = vmatpush.bf16.msrb.mxu3 %v4138_v63  ;;  %v3771_v63 = vld [vmem:[#allocation5 + $0x1e4] sm:$0xf0]  ;;  %v3550_v14 = vor.u32 %v5104_v59, %v3547_v60  ;;  %v5356_v59 = vld [vmem:[#allocation5 + $0x7ec] sm:$0xf] }
  0xc6   :  { %2865 = vmatpush.bf16.msrb.mxu0 %v5002_v7  ;;  %v2612_v7 = vadd.f32 %v2611_v33, %v547_v53  ;;  %v3774_v15 = vor.u32 %v5160_v61, %v3771_v63  ;;  %v2639_v18 = vpop.f32.mrf.mxu2  ;;  %v4835_v33 = vld [vmem:[#allocation5 + $0xa34] sm:$0xf0]  ;;  %v5475_v53 = vld [vmem:[#allocation5 + $0xba4] sm:$0xf]  ;;  %v5412_v63 = vld [vmem:[#allocation5 + $0x9ac] sm:$0xf] }
  0xc7   :  { %2878 = vmatpush.bf16.msrb.mxu1 %v3662_v8  ;;  %v2613_v8 = vpop.f32.mrf.mxu0  ;;  %v4838_v43 = vor.u32 %v5426_v32, %v4835_v33  ;;  %v4975_v18 = vld [vmem:[#allocation5 + $0xb4c] sm:$0xf0]  ;;  %v4723_v32 = vld [vmem:[#allocation5 + $0x954] sm:$0xf0] }
  0xc8   :  { %2891 = vmatpush.bf16.msrb.mxu2 %v3886_v9  ;;  %v4890_v9 = vor.u32 %v5443_v56, %v4889_v55  ;;  %v2625_v26 = vadd.f32 %v2624_v36, %v2612_v7  ;;  %v4810_v56 = vor.u32 %v5419_v51, %v4807_v52  ;;  %v4978_v29 = vor.u32 %v5461_v17, %v4975_v18  ;;  %v4471_v51 = vld [vmem:[#allocation5 + $0x75c] sm:$0xf0]  ;;  %v5391_v52 = vld [vmem:[#allocation5 + $0x904] sm:$0xf] }
  0xc9   :  { %2904 = vmatpush.bf16.msrb.mxu3 %v4110_v13  ;;  %v2626_v13 = vpop.f32.mrf.mxu1 }
  0xca   :  { %2866 = vmatpush.bf16.msrb.mxu0 %v4974_v19  ;;  %v3998_v19 = vor.u32 %v5216_v0, %v3995_v1  ;;  %v2638_v36 = vadd.f32 %v5754_v45, %v2625_v26  ;;  %v4586_v45 = vor.u32 %v5363_v47, %v4583_v49  ;;  %v4779_v0 = vld [vmem:[#allocation5 + $0x9c4] sm:$0xf0]  ;;  %v5468_v1 = vld [vmem:[#allocation5 + $0xb6c] sm:$0xf]  ;;  %v4275_v26 = vld [vmem:[#allocation5 + $0x5d4] sm:$0xf0] }
  0xcb   :  { %2879 = vmatpush.bf16.msrb.mxu1 %v3634_v22  ;;  %v4418_v22 = vor.u32 %v5321_v2, %v4415_v3  ;;  %v5003_v2 = vld [vmem:[#allocation5 + $0xb84] sm:$0xf0]  ;;  %v4247_v47 = vld [vmem:[#allocation5 + $0x59c] sm:$0xf0] }
  0xcc   :  { %2892 = vmatpush.bf16.msrb.mxu2 %v3858_v23  ;;  %v2652_v23 = vpop.f32.mrf.mxu3  ;;  %v2651_v60 = vadd.f32 %v5756_v50, %v2638_v36  ;;  %v5006_v50 = vor.u32 %v5468_v1, %v5003_v2  ;;  %v4667_v1 = vld [vmem:[#allocation5 + $0x8e4] sm:$0xf0]  ;;  %v5440_v2 = vld [vmem:[#allocation5 + $0xa8c] sm:$0xf] }
  0xcd   :  { %2905 = vmatpush.bf16.msrb.mxu3 %v4082_v27  ;;  %v5314_v27 = vld [vmem:[#allocation5 + $0x69c] sm:$0xf] }
  0xce   :  { %2867 = vmatpush.bf16.msrb.mxu0 %v4946_v34  ;;  %v5482_v34 = vld [vmem:[#allocation5 + $0xbdc] sm:$0xf] }
  0xcf   :  { %2880 = vmatpush.bf16.msrb.mxu1 %v3606_v38  ;;  %v5059_v38 = vld [vmem:[#allocation5 + $0xbf4] sm:$0xf0] }
  0xd0   :  { %2893 = vmatpush.bf16.msrb.mxu2 %v3830_v39  ;;  %v4390_v39 = vor.u32 %v5314_v27, %v4387_v28  ;;  %v5062_v48 = vor.u32 %v5482_v34, %v5059_v38  ;;  %v5342_v27 = vld [vmem:[#allocation5 + $0x77c] sm:$0xf]  ;;  %v4947_v38 = vld [vmem:[#allocation5 + $0xb14] sm:$0xf0] }
  0xd1   :  { %2906 = vmatpush.bf16.msrb.mxu3 %v4054_v46  ;;  %v4359_v46 = vld [vmem:[#allocation5 + $0x67c] sm:$0xf0]  ;;  %v5454_v34 = vld [vmem:[#allocation5 + $0xafc] sm:$0xf] }
  0xd2   :  { %2868 = vmatpush.bf16.msrb.mxu0 %v4918_v54  ;;  %v5031_v54 = vld [vmem:[#allocation5 + $0xbbc] sm:$0xf0]  ;;  %v4362_v55 = vor.u32 %v5307_v44, %v4359_v46  ;;  %v4726_v44 = vor.u32 %v5398_v31, %v4723_v32  ;;  %v5279_v46 = vld [vmem:[#allocation5 + $0x584] sm:$0xf]  ;;  %v4950_v49 = vor.u32 %v5454_v34, %v4947_v38  ;;  %v5318_v31 = vld [vmem:[#allocation5 + $0x6b8] sm:$0xf0] }
  0xd3   :  { %2881 = vmatpush.bf16.msrb.mxu1 %v3578_v57  ;;  %v5300_v57 = vld [vmem:[#allocation5 + $0x62c] sm:$0xf]  ;;  %v5034_v61 = vor.u32 %v5475_v53, %v5031_v54  ;;  %v4695_v53 = vld [vmem:[#allocation5 + $0x91c] sm:$0xf0]  ;;  %v5447_v54 = vld [vmem:[#allocation5 + $0xac4] sm:$0xf] }
  0xd4   :  { %2894 = vmatpush.bf16.msrb.mxu2 %v3802_v58  ;;  %v4331_v58 = vld [vmem:[#allocation5 + $0x644] sm:$0xf0]  ;;  %v548_v34 = vperm.slane %v5752_v35, 1 }
  0xd5   :  { %2907 = vmatpush.bf16.msrb.mxu3 %v4026_v62  ;;  %v4555_v62 = vld [vmem:[#allocation5 + $0x804] sm:$0xf0]  ;;  %v4334_v3 = vor.u32 %v5300_v57, %v4331_v58 }
  0xd6   :  { %2869 = vmatpush.bf16.msrb.mxu0 %v4890_v9  ;;  %v2663_v5 = vpop.f32.mrf.mxu0  ;;  %v4558_v8 = vor.u32 %v5356_v59, %v4555_v62  ;;  %v4782_v9 = vor.u32 %v5412_v63, %v4779_v0  ;;  %v4219_v57 = vld [vmem:[#allocation5 + $0x564] sm:$0xf0]  ;;  %v4698_v59 = vor.u32 %v5391_v52, %v4695_v53  ;;  %v5384_v62 = vld [vmem:[#allocation5 + $0x8cc] sm:$0xf]  ;;  %v5311_v52 = vld [vmem:[#allocation5 + $0x680] sm:$0xf0] }
  0xd7   :  { %2882 = vmatpush.bf16.msrb.mxu1 %v3550_v14  ;;  %v2676_v7 = vpop.f32.mrf.mxu1  ;;  %v2664_v13 = vadd.f32 %v2663_v5, %v2651_v60  ;;  %v4527_v14 = vld [vmem:[#allocation5 + $0x7cc] sm:$0xf0]  ;;  %v5328_v60 = vld [vmem:[#allocation5 + $0x70c] sm:$0xf]  ;;  %v3749_v5 = vld [vmem:[#allocation5 + $0x198] sm:$0xf] }
  0xd8   :  { %2895 = vmatpush.bf16.msrb.mxu2 %v3774_v15  ;;  %v5405_v15 = vld [vmem:[#allocation5 + $0x974] sm:$0xf]  ;;  %v4530_v23 = vor.u32 %v5349_v12, %v4527_v14  ;;  %v4670_v14 = vor.u32 %v5384_v62, %v4667_v1  ;;  %v5248_v62 = vld [vmem:[#allocation5 + $0x488] sm:$0xf0] }
  0xd9   :  { %2908 = vmatpush.bf16.msrb.mxu3 %v3998_v19  ;;  %2870 = vmatmul.bf16.vlgmr.msrb.gmra.mxu0 %v5730_v37  ;;  %v2677_v19 = vadd.f32 %v2676_v7, %v2664_v13  ;;  %v5157_v7 = vld [vmem:[#allocation5 + $0x1b0] sm:$0xf0] }
  0xda   :  { %2914 = vmatpush.bf16.msra.mxu0 %v4418_v22  ;;  %2883 = vmatmul.bf16.vlgmr.msrb.gmra.mxu1 %v5723_v20  ;;  %v4306_v22 = vor.u32 %v5293_v10, %v4303_v11  ;;  %v5213_v10 = vld [vmem:[#allocation5 + $0x370] sm:$0xf0]  ;;  %v4197_v11 = vld [vmem:[#allocation5 + $0x518] sm:$0xf]  ;;  %v3750_v18 = vor.u32 %v5157_v7, %v3749_v5 }
  0xdb   :  { %2927 = vmatpush.bf16.msra.mxu1 %v4642_v24  ;;  %2896 = vmatmul.bf16.vlgmr.msrb.gmra.mxu2 %v5725_v21  ;;  %v4754_v24 = vor.u32 %v5405_v15, %v4751_v16  ;;  %v5269_v12 = vld [vmem:[#allocation5 + $0x530] sm:$0xf0]  ;;  %v4421_v15 = vld [vmem:[#allocation5 + $0x6d8] sm:$0xf] }
  0xdc   :  { %2940 = vmatpush.bf16.msra.mxu2 %v4866_v25  ;;  %2909 = vmatmul.bf16.vlgmr.msrb.gmra.mxu3 %v5718_v4  ;;  %v5286_v25 = vld [vmem:[#allocation5 + $0x5bc] sm:$0xf]  ;;  %v5325_v16 = vld [vmem:[#allocation5 + $0x6f0] sm:$0xf0] }
  0xdd   :  { %2953 = vmatpush.bf16.msra.mxu3 %v5090_v30  ;;  %v4499_v30 = vld [vmem:[#allocation5 + $0x794] sm:$0xf0] }
  0xde   :  { %2915 = vmatpush.bf16.msra.mxu0 %v4390_v39  ;;  %v2689_v28 = vpop.f32.mrf.mxu2  ;;  %v4278_v39 = vor.u32 %v5286_v25, %v4275_v26  ;;  %v4502_v36 = vor.u32 %v5342_v27, %v4499_v30  ;;  %v3945_v25 = vld [vmem:[#allocation5 + $0x320] sm:$0xf]  ;;  %v4422_v26 = vor.u32 %v5325_v16, %v4421_v15  ;;  %v5206_v27 = vld [vmem:[#allocation5 + $0x338] sm:$0xf0]  ;;  %v4309_v16 = vld [vmem:[#allocation5 + $0x5f8] sm:$0xf] }
  0xdf   :  { %2928 = vmatpush.bf16.msra.mxu1 %v4614_v42  ;;  %v5765_v33 = vadd.f32 %v2689_v28, %v2677_v19  ;;  %v2665_v42 = vpop.f32.mrf.mxu0  ;;  %v2702_v13 = vpop.f32.mrf.mxu3  ;;  %v4169_v28 = vld [vmem:[#allocation5 + $0x4e0] sm:$0xf]  ;;  %v3946_v38 = vor.u32 %v5206_v27, %v3945_v25  ;;  %v5178_v27 = vld [vmem:[#allocation5 + $0x258] sm:$0xf0] }
  0xe0   :  { %2941 = vmatpush.bf16.msra.mxu2 %v4838_v43  ;;  %v2678_v43 = vpop.f32.mrf.mxu1  ;;  %v4393_v30 = vld [vmem:[#allocation5 + $0x6a0] sm:$0xf]  ;;  %v3693_v42 = vld [vmem:[#allocation5 + $0x128] sm:$0xf] }
  0xe1   :  { %2954 = vmatpush.bf16.msra.mxu3 %v5062_v48  ;;  %v5335_v48 = vld [vmem:[#allocation5 + $0x744] sm:$0xf]  ;;  %v3833_v25 = vld [vmem:[#allocation5 + $0x240] sm:$0xf] }
  0xe2   :  { %2916 = vmatpush.bf16.msra.mxu0 %v4362_v55  ;;  %v4919_v55 = vld [vmem:[#allocation5 + $0xadc] sm:$0xf0]  ;;  %v4474_v58 = vor.u32 %v5335_v48, %v4471_v51  ;;  %v5143_v43 = vld [vmem:[#allocation5 + $0x140] sm:$0xf0]  ;;  %v4365_v51 = vld [vmem:[#allocation5 + $0x668] sm:$0xf] }
  0xe3   :  { %2929 = vmatpush.bf16.msra.mxu1 %v4586_v45  ;;  %v4250_v45 = vor.u32 %v5279_v46, %v4247_v47  ;;  %v4922_v0 = vor.u32 %v5447_v54, %v4919_v55  ;;  %v5199_v46 = vld [vmem:[#allocation5 + $0x300] sm:$0xf0]  ;;  %v4141_v47 = vld [vmem:[#allocation5 + $0x4a8] sm:$0xf]  ;;  %v3694_v53 = vor.u32 %v5143_v43, %v3693_v42  ;;  %v2703_v54 = vadd.f32 %v2702_v13, %v548_v34  ;;  %v5185_v13 = vld [vmem:[#allocation5 + $0x290] sm:$0xf0] }
  0xe4   :  { %2942 = vmatpush.bf16.msra.mxu2 %v4810_v56  ;;  %v5272_v56 = vld [vmem:[#allocation5 + $0x54c] sm:$0xf]  ;;  %v5255_v48 = vld [vmem:[#allocation5 + $0x4c0] sm:$0xf0] }
  0xe5   :  { %2955 = vmatpush.bf16.msra.mxu3 %v5034_v61  ;;  %v4443_v61 = vld [vmem:[#allocation5 + $0x724] sm:$0xf0] }
  0xe6   :  { %2917 = vmatpush.bf16.msra.mxu0 %v4334_v3  ;;  %v2691_v63 = vpop.f32.mrf.mxu2  ;;  %v4891_v3 = vld [vmem:[#allocation5 + $0xaa4] sm:$0xf0] }
  0xe7   :  { %2930 = vmatpush.bf16.msra.mxu1 %v4558_v8  ;;  %v3973_v8 = vld [vmem:[#allocation5 + $0x358] sm:$0xf]  ;;  %v4894_v17 = vor.u32 %v5440_v2, %v4891_v3  ;;  %v4337_v63 = vld [vmem:[#allocation5 + $0x630] sm:$0xf] }
  0xe8   :  { %2943 = vmatpush.bf16.msra.mxu2 %v4782_v9  ;;  %v4222_v9 = vor.u32 %v5272_v56, %v4219_v57  ;;  %v3974_v19 = vor.u32 %v5213_v10, %v3973_v8  ;;  %v3665_v56 = vld [vmem:[#allocation5 + $0xf0] sm:$0xf]  ;;  %v5136_v57 = vld [vmem:[#allocation5 + $0x108] sm:$0xf0]  ;;  %v5129_v10 = vld [vmem:[#allocation5 + $0xd0] sm:$0xf0] }
  0xe9   :  { %2956 = vmatpush.bf16.msra.mxu3 %v5006_v50  ;;  %v4446_v50 = vor.u32 %v5328_v60, %v4443_v61  ;;  %v5192_v60 = vld [vmem:[#allocation5 + $0x2c8] sm:$0xf0]  ;;  %v4113_v61 = vld [vmem:[#allocation5 + $0x470] sm:$0xf]  ;;  %v3666_v2 = vor.u32 %v5136_v57, %v3665_v56 }
  0xea   :  { %2918 = vmatpush.bf16.msra.mxu0 %v4306_v22  ;;  %v4198_v22 = vor.u32 %v5269_v12, %v4197_v11  ;;  %v4114_v8 = vor.u32 %v5248_v62, %v4113_v61  ;;  %v3861_v11 = vld [vmem:[#allocation5 + $0x278] sm:$0xf]  ;;  %v3553_v57 = vld [vmem:[#allocation5 + $0x10] sm:$0xf]  ;;  %v5164_v62 = vld [vmem:[#allocation5 + $0x1e8] sm:$0xf0] }
  0xeb   :  { %2931 = vmatpush.bf16.msra.mxu1 %v4530_v23  ;;  %v3721_v23 = vld [vmem:[#allocation5 + $0x160] sm:$0xf]  ;;  %v3777_v61 = vld [vmem:[#allocation5 + $0x1d0] sm:$0xf] }
  0xec   :  { %2944 = vmatpush.bf16.msra.mxu2 %v4754_v24  ;;  %v5150_v24 = vld [vmem:[#allocation5 + $0x178] sm:$0xf0] }
  0xed   :  { %2957 = vmatpush.bf16.msra.mxu3 %v4978_v29  ;;  %v5262_v29 = vld [vmem:[#allocation5 + $0x4f8] sm:$0xf0]  ;;  %v3722_v32 = vor.u32 %v5150_v24, %v3721_v23  ;;  %v3609_v23 = vld [vmem:[#allocation5 + $0x80] sm:$0xf] }
  0xee   :  { %2919 = vmatpush.bf16.msra.mxu0 %v4278_v39  ;;  %v4170_v39 = vor.u32 %v5262_v29, %v4169_v28  ;;  %v5122_v24 = vld [vmem:[#allocation5 + $0x98] sm:$0xf0]  ;;  %v4057_v28 = vld [vmem:[#allocation5 + $0x400] sm:$0xf] }
  0xef   :  { %2932 = vmatpush.bf16.msra.mxu1 %v4502_v36  ;;  %v3917_v36 = vld [vmem:[#allocation5 + $0x2e8] sm:$0xf]  ;;  %v5234_v29 = vld [vmem:[#allocation5 + $0x418] sm:$0xf0]  ;;  %v3610_v42 = vor.u32 %v5122_v24, %v3609_v23  ;;  %v4617_v24 = vld [vmem:[#allocation5 + $0x860] sm:$0xf] }
  0xf0   :  { %2945 = vmatpush.bf16.msra.mxu2 %v4726_v44  ;;  %v4394_v44 = vor.u32 %v5318_v31, %v4393_v30  ;;  %v3918_v55 = vor.u32 %v5199_v46, %v3917_v36  ;;  %v4281_v31 = vld [vmem:[#allocation5 + $0x5c0] sm:$0xf]  ;;  %v3834_v36 = vor.u32 %v5178_v27, %v3833_v25  ;;  %v3581_v46 = vld [vmem:[#allocation5 + $0x48] sm:$0xf]  ;;  %v5374_v25 = vld [vmem:[#allocation5 + $0x878] sm:$0xf0] }
  0xf1   :  { %2958 = vmatpush.bf16.msra.mxu3 %v4950_v49  ;;  %v2704_v49 = vpop.f32.mrf.mxu3 }
  0xf2   :  { %2920 = vmatpush.bf16.msra.mxu0 %v4250_v45  ;;  %v4142_v45 = vor.u32 %v5255_v48, %v4141_v47  ;;  %v5115_v47 = vld [vmem:[#allocation5 + $0x60] sm:$0xf0]  ;;  %v3805_v48 = vld [vmem:[#allocation5 + $0x208] sm:$0xf] }
  0xf3   :  { %2933 = vmatpush.bf16.msra.mxu1 %v4474_v58  ;;  %v3889_v58 = vld [vmem:[#allocation5 + $0x2b0] sm:$0xf]  ;;  %v3582_v56 = vor.u32 %v5115_v47, %v3581_v46  ;;  %v5423_v46 = vld [vmem:[#allocation5 + $0xa00] sm:$0xf0]  ;;  %v5037_v47 = vld [vmem:[#allocation5 + $0xba8] sm:$0xf] }
  0xf4   :  { %2946 = vmatpush.bf16.msra.mxu2 %v4698_v59  ;;  %v4366_v59 = vor.u32 %v5311_v52, %v4365_v51  ;;  %v3890_v7 = vor.u32 %v5192_v60, %v3889_v58  ;;  %v5171_v52 = vld [vmem:[#allocation5 + $0x220] sm:$0xf0]  ;;  %v5108_v58 = vld [vmem:[#allocation5 + $0x28] sm:$0xf0] }
  0xf5   :  { %2959 = vmatpush.bf16.msra.mxu3 %v4922_v0  ;;  %v5304_v0 = vld [vmem:[#allocation5 + $0x648] sm:$0xf0] }
  0xf6   :  { %2921 = vmatpush.bf16.msra.mxu0 %v4222_v9  ;;  %v2715_v1 = vpop.f32.mrf.mxu0  ;;  %v3637_v9 = vld [vmem:[#allocation5 + $0xb8] sm:$0xf]  ;;  %v4338_v12 = vor.u32 %v5304_v0, %v4337_v63  ;;  %v4001_v63 = vld [vmem:[#allocation5 + $0x390] sm:$0xf] }
  0xf7   :  { %2934 = vmatpush.bf16.msra.mxu1 %v4446_v50  ;;  %v2716_v3 = vadd.f32 %v2715_v1, %v2703_v54  ;;  %v2728_v5 = vpop.f32.mrf.mxu1  ;;  %v4085_v50 = vld [vmem:[#allocation5 + $0x438] sm:$0xf]  ;;  %v5227_v54 = vld [vmem:[#allocation5 + $0x3e0] sm:$0xf0]  ;;  %v5220_v1 = vld [vmem:[#allocation5 + $0x3a8] sm:$0xf0] }
  0xf8   :  { %2947 = vmatpush.bf16.msra.mxu2 %v4670_v14  ;;  %v5241_v14 = vld [vmem:[#allocation5 + $0x450] sm:$0xf0] }
  0xf9   :  { %2960 = vmatpush.bf16.msra.mxu3 %v4894_v17  ;;  %2922 = vmatmul.bf16.vlgmr.msra.gmra.mxu0 %v5720_v6  ;;  %v2729_v15 = vadd.f32 %v2728_v5, %v2716_v3  ;;  %v5297_v17 = vld [vmem:[#allocation5 + $0x610] sm:$0xf0]  ;;  %v5276_v3 = vld [vmem:[#allocation5 + $0x568] sm:$0xf0] }
  0xfa   :  { %2966 = vmatpush.bf16.msrb.mxu0 %v3750_v18  ;;  %2935 = vmatmul.bf16.vlgmr.msra.gmra.mxu1 %v5732_v40  ;;  %v3638_v18 = vor.u32 %v5129_v10, %v3637_v9  ;;  %v4869_v9 = vld [vmem:[#allocation5 + $0xa58] sm:$0xf] }
  0xfb   :  { %2979 = vmatpush.bf16.msrb.mxu1 %v3974_v19  ;;  %2948 = vmatmul.bf16.vlgmr.msra.gmra.mxu2 %v5734_v41  ;;  %v3862_v19 = vor.u32 %v5185_v13, %v3861_v11  ;;  %v3554_v11 = vor.u32 %v5108_v58, %v3553_v57  ;;  %v5093_v13 = vld [vmem:[#allocation5 + $0xc18] sm:$0xf]  ;;  %v4785_v57 = vld [vmem:[#allocation5 + $0x9b0] sm:$0xf] }
  0xfc   :  { %2992 = vmatpush.bf16.msrb.mxu2 %v4198_v22  ;;  %2961 = vmatmul.bf16.vlgmr.msra.gmra.mxu3 %v5730_v37  ;;  %v4086_v22 = vor.u32 %v5241_v14, %v4085_v50  ;;  %v5493_v50 = vld [vmem:[#allocation5 + $0xc30] sm:$0xf0]  ;;  %v3778_v14 = vor.u32 %v5164_v62, %v3777_v61  ;;  %v5472_v61 = vld [vmem:[#allocation5 + $0xb88] sm:$0xf0] }
  0xfd   :  { %3005 = vmatpush.bf16.msrb.mxu3 %v4422_v26  ;;  %v4310_v26 = vor.u32 %v5297_v17, %v4309_v16  ;;  %v5154_v16 = vld [vmem:[#allocation5 + $0x19c] sm:$0xf]  ;;  %v3751_v17 = vld [vmem:[#allocation5 + $0x1b4] sm:$0xf0]  ;;  %v5094_v23 = vor.u32 %v5493_v50, %v5093_v13  ;;  %v5133_v62 = vld [vmem:[#allocation5 + $0xf4] sm:$0xf] }
  0xfe   :  { %2967 = vmatpush.bf16.msrb.mxu0 %v3722_v32  ;;  %v2741_v30 = vpop.f32.mrf.mxu2  ;;  %v5290_v32 = vld [vmem:[#allocation5 + $0x5d8] sm:$0xf0]  ;;  %v2717_v34 = vpop.f32.mrf.mxu0  ;;  %v3754_v27 = vor.u32 %v5154_v16, %v3751_v17  ;;  %v4981_v13 = vld [vmem:[#allocation5 + $0xb38] sm:$0xf]  ;;  %v5465_v50 = vld [vmem:[#allocation5 + $0xb50] sm:$0xf0] }
  0xff   :  { %2980 = vmatpush.bf16.msrb.mxu1 %v3946_v38  ;;  %v2742_v38 = vadd.f32 %v2741_v30, %v2729_v15  ;;  %v2730_v43 = vpop.f32.mrf.mxu1  ;;  %v4282_v51 = vor.u32 %v5290_v32, %v4281_v31  ;;  %v4002_v15 = vor.u32 %v5220_v1, %v4001_v63  ;;  %v5486_v30 = vld [vmem:[#allocation5 + $0xbf8] sm:$0xf0]  ;;  %v5147_v31 = vld [vmem:[#allocation5 + $0x164] sm:$0xf]  ;;  %v3723_v32 = vld [vmem:[#allocation5 + $0x17c] sm:$0xf0]  ;;  %v4618_v34 = vor.u32 %v5374_v25, %v4617_v24 }
 0x100   :  { %2993 = vmatpush.bf16.msrb.mxu2 %v4170_v39  ;;  %v2754_v39 = vpop.f32.mrf.mxu3  ;;  %v5367_v43 = vld [vmem:[#allocation5 + $0x840] sm:$0xf0]  ;;  %v3667_v63 = vld [vmem:[#allocation5 + $0x10c] sm:$0xf0]  ;;  %v3639_v16 = vld [vmem:[#allocation5 + $0xd4] sm:$0xf0] }
 0x101   :  { %3006 = vmatpush.bf16.msrb.mxu3 %v4394_v44  ;;  %v4058_v44 = vor.u32 %v5234_v29, %v4057_v28  ;;  %v5772_v49 = vadd.f32 %v2754_v39, %v2742_v38  ;;  %v5430_v28 = vld [vmem:[#allocation5 + $0xa38] sm:$0xf0]  ;;  %v5065_v29 = vld [vmem:[#allocation5 + $0xbe0] sm:$0xf] }
 0x102   :  { %2968 = vmatpush.bf16.msrb.mxu0 %v3694_v53  ;;  %v4029_v53 = vld [vmem:[#allocation5 + $0x3c8] sm:$0xf]  ;;  %v5066_v39 = vor.u32 %v5486_v30, %v5065_v29  ;;  %v5402_v25 = vld [vmem:[#allocation5 + $0x958] sm:$0xf0]  ;;  %v3611_v29 = vld [vmem:[#allocation5 + $0x9c] sm:$0xf0] }
 0x103   :  { %2981 = vmatpush.bf16.msrb.mxu1 %v3918_v55  ;;  %v4253_v55 = vld [vmem:[#allocation5 + $0x588] sm:$0xf]  ;;  %v4030_v60 = vor.u32 %v5227_v54, %v4029_v53 }
 0x104   :  { %2994 = vmatpush.bf16.msrb.mxu2 %v4142_v45  ;;  %v5283_v45 = vld [vmem:[#allocation5 + $0x5a0] sm:$0xf0] }
 0x105   :  { %3007 = vmatpush.bf16.msrb.mxu3 %v4366_v59  ;;  %v3806_v59 = vor.u32 %v5171_v52, %v3805_v48  ;;  %v4254_v0 = vor.u32 %v5283_v45, %v4253_v55  ;;  %v5479_v48 = vld [vmem:[#allocation5 + $0xbc0] sm:$0xf0]  ;;  %v3695_v52 = vld [vmem:[#allocation5 + $0x144] sm:$0xf0]  ;;  %v4561_v45 = vld [vmem:[#allocation5 + $0x7f0] sm:$0xf] }
 0x106   :  { %2969 = vmatpush.bf16.msrb.mxu0 %v3666_v2  ;;  %v4225_v2 = vld [vmem:[#allocation5 + $0x550] sm:$0xf]  ;;  %v2743_v5 = vpop.f32.mrf.mxu2  ;;  %v5038_v55 = vor.u32 %v5479_v48, %v5037_v47  ;;  %v5451_v47 = vld [vmem:[#allocation5 + $0xae0] sm:$0xf0]  ;;  %v5112_v48 = vld [vmem:[#allocation5 + $0x4c] sm:$0xf] }
 0x107   :  { %2982 = vmatpush.bf16.msrb.mxu1 %v3890_v7  ;;  %v4645_v7 = vld [vmem:[#allocation5 + $0x898] sm:$0xf] }
 0x108   :  { %2995 = vmatpush.bf16.msrb.mxu2 %v4114_v8  ;;  %v5381_v8 = vld [vmem:[#allocation5 + $0x8b0] sm:$0xf0]  ;;  %v2756_v10 = vpop.f32.mrf.mxu3 }
 0x109   :  { %3008 = vmatpush.bf16.msrb.mxu3 %v4338_v12  ;;  %v5437_v12 = vld [vmem:[#allocation5 + $0xa70] sm:$0xf0]  ;;  %v4757_v10 = vld [vmem:[#allocation5 + $0x978] sm:$0xf] }
 0x10a   :  { %2970 = vmatpush.bf16.msrb.mxu0 %v3638_v18  ;;  %v4226_v18 = vor.u32 %v5276_v3, %v4225_v2 }
 0x10b   :  { %2983 = vmatpush.bf16.msrb.mxu1 %v3862_v19  ;;  %v4646_v19 = vor.u32 %v5381_v8, %v4645_v7  ;;  %v4533_v8 = vld [vmem:[#allocation5 + $0x7b8] sm:$0xf] }
 0x10c   :  { %2996 = vmatpush.bf16.msrb.mxu2 %v4086_v22  ;;  %v4870_v22 = vor.u32 %v5437_v12, %v4869_v9  ;;  %v5353_v9 = vld [vmem:[#allocation5 + $0x7d0] sm:$0xf0] }
 0x10d   :  { %3009 = vmatpush.bf16.msrb.mxu3 %v4310_v26  ;;  %v4841_v26 = vld [vmem:[#allocation5 + $0xa20] sm:$0xf]  ;;  %v5409_v12 = vld [vmem:[#allocation5 + $0x990] sm:$0xf0]  ;;  %v4534_v17 = vor.u32 %v5353_v9, %v4533_v8  ;;  %v549_v8 = vperm.slane %v5752_v35, 2 }
 0x10e   :  { %2971 = vmatpush.bf16.msrb.mxu0 %v3610_v42  ;;  %v4842_v38 = vor.u32 %v5430_v28, %v4841_v26  ;;  %v4589_v42 = vld [vmem:[#allocation5 + $0x828] sm:$0xf]  ;;  %v4953_v26 = vld [vmem:[#allocation5 + $0xb00] sm:$0xf]  ;;  %v5119_v28 = vld [vmem:[#allocation5 + $0x84] sm:$0xf] }
 0x10f   :  { %2984 = vmatpush.bf16.msrb.mxu1 %v3834_v36  ;;  %v4813_v36 = vld [vmem:[#allocation5 + $0x9e8] sm:$0xf]  ;;  %v4590_v53 = vor.u32 %v5367_v43, %v4589_v42  ;;  %v5339_v42 = vld [vmem:[#allocation5 + $0x760] sm:$0xf0]  ;;  %v4171_v35 = vld [vmem:[#allocation5 + $0x4fc] sm:$0xf0] }
 0x110   :  { %2997 = vmatpush.bf16.msrb.mxu2 %v4058_v44  ;;  %v3726_v44 = vor.u32 %v5147_v31, %v3723_v32  ;;  %v4814_v54 = vor.u32 %v5423_v46, %v4813_v36  ;;  %v4701_v43 = vld [vmem:[#allocation5 + $0x908] sm:$0xf]  ;;  %v3614_v36 = vor.u32 %v5119_v28, %v3611_v29  ;;  %v5371_v28 = vld [vmem:[#allocation5 + $0x864] sm:$0xf]  ;;  %v4619_v29 = vld [vmem:[#allocation5 + $0x87c] sm:$0xf0] }
 0x111   :  { %3010 = vmatpush.bf16.msrb.mxu3 %v4282_v51  ;;  %v5140_v51 = vld [vmem:[#allocation5 + $0x12c] sm:$0xf]  ;;  %v4925_v46 = vld [vmem:[#allocation5 + $0xac8] sm:$0xf] }
 0x112   :  { %2972 = vmatpush.bf16.msrb.mxu0 %v3582_v56  ;;  %v5360_v56 = vld [vmem:[#allocation5 + $0x808] sm:$0xf0]  ;;  %v3698_v58 = vor.u32 %v5140_v51, %v3695_v52  ;;  %v3583_v51 = vld [vmem:[#allocation5 + $0x64] sm:$0xf0] }
 0x113   :  { %2985 = vmatpush.bf16.msrb.mxu1 %v3806_v59  ;;  %v5416_v59 = vld [vmem:[#allocation5 + $0x9c8] sm:$0xf0]  ;;  %v4562_v1 = vor.u32 %v5360_v56, %v4561_v45  ;;  %v4926_v56 = vor.u32 %v5451_v47, %v4925_v46 }
 0x114   :  { %2998 = vmatpush.bf16.msrb.mxu2 %v4030_v60  ;;  %v5009_v60 = vld [vmem:[#allocation5 + $0xb70] sm:$0xf]  ;;  %v4786_v5 = vor.u32 %v5416_v59, %v4785_v57  ;;  %v5388_v57 = vld [vmem:[#allocation5 + $0x8e8] sm:$0xf0] }
 0x115   :  { %3011 = vmatpush.bf16.msrb.mxu3 %v4254_v0  ;;  %v5010_v7 = vor.u32 %v5472_v61, %v5009_v60  ;;  %v5444_v59 = vld [vmem:[#allocation5 + $0xaa8] sm:$0xf0]  ;;  %v3586_v60 = vor.u32 %v5112_v48, %v3583_v51  ;;  %v5105_v61 = vld [vmem:[#allocation5 + $0x14] sm:$0xf]  ;;  %v4591_v51 = vld [vmem:[#allocation5 + $0x844] sm:$0xf0] }
 0x116   :  { %2973 = vmatpush.bf16.msrb.mxu0 %v3554_v11  ;;  %v2767_v0 = vpop.f32.mrf.mxu0  ;;  %v3670_v11 = vor.u32 %v5133_v62, %v3667_v63  ;;  %v3555_v62 = vld [vmem:[#allocation5 + $0x2c] sm:$0xf0]  ;;  %v5210_v63 = vld [vmem:[#allocation5 + $0x35c] sm:$0xf]  ;;  %v5364_v48 = vld [vmem:[#allocation5 + $0x82c] sm:$0xf] }
 0x117   :  { %2986 = vmatpush.bf16.msrb.mxu1 %v3778_v14  ;;  %v2768_v2 = vadd.f32 %v2767_v0, %v5772_v49  ;;  %v2780_v3 = vpop.f32.mrf.mxu1  ;;  %v4758_v49 = vor.u32 %v5409_v12, %v4757_v10  ;;  %v3975_v0 = vld [vmem:[#allocation5 + $0x374] sm:$0xf0] }
 0x118   :  { %2999 = vmatpush.bf16.msrb.mxu2 %v4002_v15  ;;  %v5126_v15 = vld [vmem:[#allocation5 + $0xbc] sm:$0xf] }
 0x119   :  { %3012 = vmatpush.bf16.msrb.mxu3 %v4226_v18  ;;  %2974 = vmatmul.bf16.vlgmr.msrb.gmra.mxu0 %v5723_v20  ;;  %v5779_v14 = vadd.f32 %v2780_v3, %v2768_v2  ;;  %v4982_v18 = vor.u32 %v5465_v50, %v4981_v13  ;;  %v3642_v24 = vor.u32 %v5126_v15, %v3639_v16  ;;  %v4199_v2 = vld [vmem:[#allocation5 + $0x534] sm:$0xf0]  ;;  %v5378_v13 = vld [vmem:[#allocation5 + $0x89c] sm:$0xf] }
 0x11a   :  { %3018 = vmatpush.bf16.msra.mxu0 %v4646_v19  ;;  %2987 = vmatmul.bf16.vlgmr.msrb.gmra.mxu1 %v5725_v21  ;;  %v4505_v19 = vld [vmem:[#allocation5 + $0x780] sm:$0xf]  ;;  %v4647_v50 = vld [vmem:[#allocation5 + $0x8b4] sm:$0xf0]  ;;  %v3558_v15 = vor.u32 %v5105_v61, %v3555_v62  ;;  %v3978_v16 = vor.u32 %v5210_v63, %v3975_v0  ;;  %v5357_v61 = vld [vmem:[#allocation5 + $0x7f4] sm:$0xf] }
 0x11b   :  { %3031 = vmatpush.bf16.msra.mxu1 %v4870_v22  ;;  %3000 = vmatmul.bf16.vlgmr.msrb.gmra.mxu2 %v5718_v4  ;;  %v5346_v22 = vld [vmem:[#allocation5 + $0x798] sm:$0xf0]  ;;  %v4563_v62 = vld [vmem:[#allocation5 + $0x80c] sm:$0xf0] }
 0x11c   :  { %3044 = vmatpush.bf16.msra.mxu2 %v5094_v23  ;;  %3013 = vmatmul.bf16.vlgmr.msrb.gmra.mxu3 %v5720_v6  ;;  %v4729_v23 = vld [vmem:[#allocation5 + $0x940] sm:$0xf]  ;;  %v4506_v31 = vor.u32 %v5346_v22, %v4505_v19  ;;  %v5203_v19 = vld [vmem:[#allocation5 + $0x324] sm:$0xf] }
 0x11d   :  { %3057 = vmatpush.bf16.msra.mxu3 %v3754_v27  ;;  %v5458_v27 = vld [vmem:[#allocation5 + $0xb18] sm:$0xf0]  ;;  %v3947_v22 = vld [vmem:[#allocation5 + $0x33c] sm:$0xf0] }
 0x11e   :  { %3019 = vmatpush.bf16.msra.mxu0 %v4618_v34  ;;  %v2769_v30 = vpop.f32.mrf.mxu0  ;;  %v4730_v34 = vor.u32 %v5402_v25, %v4729_v23  ;;  %v2793_v9 = vpop.f32.mrf.mxu2  ;;  %v5259_v23 = vld [vmem:[#allocation5 + $0x4e4] sm:$0xf] }
 0x11f   :  { %3032 = vmatpush.bf16.msra.mxu1 %v4842_v38  ;;  %v2782_v32 = vpop.f32.mrf.mxu1  ;;  %v4954_v38 = vor.u32 %v5458_v27, %v4953_v26  ;;  %v2806_v10 = vpop.f32.mrf.mxu3  ;;  %v5315_v25 = vld [vmem:[#allocation5 + $0x6a4] sm:$0xf]  ;;  %v4395_v26 = vld [vmem:[#allocation5 + $0x6bc] sm:$0xf0]  ;;  %v3950_v30 = vor.u32 %v5203_v19, %v3947_v22 }
 0x120   :  { %3045 = vmatpush.bf16.msra.mxu2 %v5066_v39  ;;  %v4477_v39 = vld [vmem:[#allocation5 + $0x748] sm:$0xf]  ;;  %v4398_v32 = vor.u32 %v5315_v25, %v4395_v26  ;;  %v5175_v19 = vld [vmem:[#allocation5 + $0x244] sm:$0xf]  ;;  %v3835_v22 = vld [vmem:[#allocation5 + $0x25c] sm:$0xf0] }
 0x121   :  { %3058 = vmatpush.bf16.msra.mxu3 %v3726_v44  ;;  %v5395_v44 = vld [vmem:[#allocation5 + $0x920] sm:$0xf0]  ;;  %v4478_v52 = vor.u32 %v5339_v42, %v4477_v39  ;;  %v5252_v39 = vld [vmem:[#allocation5 + $0x4ac] sm:$0xf]  ;;  %v4622_v42 = vor.u32 %v5371_v28, %v4619_v29  ;;  %v4283_v26 = vld [vmem:[#allocation5 + $0x5dc] sm:$0xf0] }
 0x122   :  { %3020 = vmatpush.bf16.msra.mxu0 %v4590_v53  ;;  %v4449_v53 = vld [vmem:[#allocation5 + $0x710] sm:$0xf]  ;;  %v4702_v45 = vor.u32 %v5395_v44, %v4701_v43  ;;  %v4143_v43 = vld [vmem:[#allocation5 + $0x4c4] sm:$0xf0]  ;;  %v5287_v25 = vld [vmem:[#allocation5 + $0x5c4] sm:$0xf] }
 0x123   :  { %3033 = vmatpush.bf16.msra.mxu1 %v4814_v54  ;;  %v5332_v54 = vld [vmem:[#allocation5 + $0x728] sm:$0xf0]  ;;  %v4367_v44 = vld [vmem:[#allocation5 + $0x684] sm:$0xf0]  ;;  %v5343_v28 = vld [vmem:[#allocation5 + $0x784] sm:$0xf] }
 0x124   :  { %3046 = vmatpush.bf16.msra.mxu2 %v5038_v55  ;;  %v4673_v55 = vld [vmem:[#allocation5 + $0x8d0] sm:$0xf]  ;;  %v4450_v3 = vor.u32 %v5332_v54, %v4449_v53  ;;  %v4146_v53 = vor.u32 %v5252_v39, %v4143_v43  ;;  %v4507_v29 = vld [vmem:[#allocation5 + $0x79c] sm:$0xf0]  ;;  %v5168_v43 = vld [vmem:[#allocation5 + $0x20c] sm:$0xf] }
 0x125   :  { %3059 = vmatpush.bf16.msra.mxu3 %v3698_v58  ;;  %v4897_v58 = vld [vmem:[#allocation5 + $0xa90] sm:$0xf] }
 0x126   :  { %3021 = vmatpush.bf16.msra.mxu0 %v4562_v1  ;;  %v5266_v1 = vld [vmem:[#allocation5 + $0x51c] sm:$0xf]  ;;  %v4898_v12 = vor.u32 %v5444_v59, %v4897_v58  ;;  %v2795_v46 = vpop.f32.mrf.mxu2  ;;  %v4115_v58 = vld [vmem:[#allocation5 + $0x48c] sm:$0xf0]  ;;  %v5301_v59 = vld [vmem:[#allocation5 + $0x634] sm:$0xf] }
 0x127   :  { %3034 = vmatpush.bf16.msra.mxu1 %v4786_v5  ;;  %v5322_v5 = vld [vmem:[#allocation5 + $0x6dc] sm:$0xf]  ;;  %v2808_v47 = vpop.f32.mrf.mxu3 }
 0x128   :  { %3047 = vmatpush.bf16.msra.mxu2 %v5010_v7  ;;  %v4423_v7 = vld [vmem:[#allocation5 + $0x6f4] sm:$0xf0]  ;;  %v4510_v47 = vor.u32 %v5343_v28, %v4507_v29  ;;  %v3953_v28 = vld [vmem:[#allocation5 + $0x328] sm:$0xf]  ;;  %v5207_v29 = vld [vmem:[#allocation5 + $0x340] sm:$0xf0] }
 0x129   :  { %3060 = vmatpush.bf16.msra.mxu3 %v3670_v11  ;;  %v4674_v11 = vor.u32 %v5388_v57, %v4673_v55  ;;  %v5189_v55 = vld [vmem:[#allocation5 + $0x2b4] sm:$0xf]  ;;  %v4594_v57 = vor.u32 %v5364_v48, %v4591_v51  ;;  %v4031_v48 = vld [vmem:[#allocation5 + $0x3e4] sm:$0xf0]  ;;  %v5280_v51 = vld [vmem:[#allocation5 + $0x58c] sm:$0xf] }
 0x12a   :  { %3022 = vmatpush.bf16.msra.mxu0 %v4534_v17  ;;  %v2794_v17 = vadd.f32 %v2793_v9, %v549_v8  ;;  %v3863_v8 = vld [vmem:[#allocation5 + $0x294] sm:$0xf0]  ;;  %v5238_v9 = vld [vmem:[#allocation5 + $0x43c] sm:$0xf] }
 0x12b   :  { %3035 = vmatpush.bf16.msra.mxu1 %v4758_v49  ;;  %v4202_v49 = vor.u32 %v5266_v1, %v4199_v2 }
 0x12c   :  { %3048 = vmatpush.bf16.msra.mxu2 %v4982_v18  ;;  %v4426_v18 = vor.u32 %v5322_v5, %v4423_v7  ;;  %v2807_v27 = vadd.f32 %v2806_v10, %v2794_v17  ;;  %v5182_v7 = vld [vmem:[#allocation5 + $0x27c] sm:$0xf]  ;;  %v4566_v10 = vor.u32 %v5357_v61, %v4563_v62  ;;  %v5273_v61 = vld [vmem:[#allocation5 + $0x554] sm:$0xf] }
 0x12d   :  { %3061 = vmatpush.bf16.msra.mxu3 %v3642_v24  ;;  %v4650_v24 = vor.u32 %v5378_v13, %v4647_v50  ;;  %v4311_v13 = vld [vmem:[#allocation5 + $0x614] sm:$0xf0]  ;;  %v3866_v17 = vor.u32 %v5182_v7, %v3863_v8  ;;  %v5490_v7 = vld [vmem:[#allocation5 + $0xc1c] sm:$0xf] }
 0x12e   :  { %3023 = vmatpush.bf16.msra.mxu0 %v4506_v31  ;;  %v4174_v31 = vor.u32 %v5259_v23, %v4171_v35  ;;  %v5231_v23 = vld [vmem:[#allocation5 + $0x404] sm:$0xf]  ;;  %v4059_v35 = vld [vmem:[#allocation5 + $0x41c] sm:$0xf0] }
 0x12f   :  { %3036 = vmatpush.bf16.msra.mxu1 %v4730_v34  ;;  %v5196_v34 = vld [vmem:[#allocation5 + $0x2ec] sm:$0xf]  ;;  %v4062_v39 = vor.u32 %v5231_v23, %v4059_v35  ;;  %v4843_v23 = vld [vmem:[#allocation5 + $0xa3c] sm:$0xf0] }
 0x130   :  { %3049 = vmatpush.bf16.msra.mxu2 %v4954_v38  ;;  %v3919_v38 = vld [vmem:[#allocation5 + $0x304] sm:$0xf0] }
 0x131   :  { %3062 = vmatpush.bf16.msra.mxu3 %v3614_v36  ;;  %v5308_v36 = vld [vmem:[#allocation5 + $0x66c] sm:$0xf] }
 0x132   :  { %3024 = vmatpush.bf16.msra.mxu0 %v4478_v52  ;;  %v3922_v52 = vor.u32 %v5196_v34, %v3919_v38  ;;  %v4370_v54 = vor.u32 %v5308_v36, %v4367_v44  ;;  %v3838_v34 = vor.u32 %v5175_v19, %v3835_v22  ;;  %v3807_v36 = vld [vmem:[#allocation5 + $0x224] sm:$0xf0]  ;;  %v5224_v44 = vld [vmem:[#allocation5 + $0x3cc] sm:$0xf]  ;;  %v5427_v22 = vld [vmem:[#allocation5 + $0xa24] sm:$0xf] }
 0x133   :  { %3037 = vmatpush.bf16.msra.mxu1 %v4702_v45  ;;  %v3891_v45 = vld [vmem:[#allocation5 + $0x2cc] sm:$0xf0] }
 0x134   :  { %3050 = vmatpush.bf16.msra.mxu2 %v4926_v56  ;;  %v5245_v56 = vld [vmem:[#allocation5 + $0x474] sm:$0xf]  ;;  %v3894_v0 = vor.u32 %v5189_v55, %v3891_v45  ;;  %v3810_v55 = vor.u32 %v5168_v43, %v3807_v36  ;;  %v5039_v43 = vld [vmem:[#allocation5 + $0xbc4] sm:$0xf0]  ;;  %v3701_v36 = vld [vmem:[#allocation5 + $0x130] sm:$0xf] }
 0x135   :  { %3063 = vmatpush.bf16.msra.mxu3 %v3586_v60  ;;  %v4339_v60 = vld [vmem:[#allocation5 + $0x64c] sm:$0xf0]  ;;  %v5161_v45 = vld [vmem:[#allocation5 + $0x1d4] sm:$0xf] }
 0x136   :  { %3025 = vmatpush.bf16.msra.mxu0 %v4450_v3  ;;  %v2819_v63 = vpop.f32.mrf.mxu0  ;;  %v4118_v3 = vor.u32 %v5245_v56, %v4115_v58  ;;  %v4342_v5 = vor.u32 %v5301_v59, %v4339_v60  ;;  %v3779_v56 = vld [vmem:[#allocation5 + $0x1ec] sm:$0xf0]  ;;  %v5217_v59 = vld [vmem:[#allocation5 + $0x394] sm:$0xf] }
 0x137   :  { %3038 = vmatpush.bf16.msra.mxu1 %v4674_v11  ;;  %v2820_v1 = vadd.f32 %v2819_v63, %v2807_v27  ;;  %v2832_v2 = vpop.f32.mrf.mxu1  ;;  %v4087_v11 = vld [vmem:[#allocation5 + $0x454] sm:$0xf0]  ;;  %v4003_v60 = vld [vmem:[#allocation5 + $0x3ac] sm:$0xf0] }
 0x138   :  { %3051 = vmatpush.bf16.msra.mxu2 %v4898_v12  ;;  %v5294_v12 = vld [vmem:[#allocation5 + $0x5fc] sm:$0xf]  ;;  %v4227_v63 = vld [vmem:[#allocation5 + $0x56c] sm:$0xf0] }
 0x139   :  { %3064 = vmatpush.bf16.msra.mxu3 %v3558_v15  ;;  %3026 = vmatmul.bf16.vlgmr.msra.gmra.mxu0 %v5732_v40  ;;  %v2833_v50 = vadd.f32 %v2832_v2, %v2820_v1  ;;  %v5350_v15 = vld [vmem:[#allocation5 + $0x7bc] sm:$0xf]  ;;  %v4451_v1 = vld [vmem:[#allocation5 + $0x72c] sm:$0xf0] }
 0x13a   :  { %3070 = vmatpush.bf16.msrb.mxu0 %v3978_v16  ;;  %3039 = vmatmul.bf16.vlgmr.msra.gmra.mxu1 %v5734_v41  ;;  %v4535_v16 = vld [vmem:[#allocation5 + $0x7d4] sm:$0xf0] }
 0x13b   :  { %3083 = vmatpush.bf16.msrb.mxu1 %v4202_v49  ;;  %3052 = vmatmul.bf16.vlgmr.msra.gmra.mxu2 %v5730_v37  ;;  %v4090_v49 = vor.u32 %v5238_v9, %v4087_v11  ;;  %v3782_v9 = vor.u32 %v5161_v45, %v3779_v56  ;;  %v3757_v11 = vld [vmem:[#allocation5 + $0x1a0] sm:$0xf]  ;;  %v5469_v45 = vld [vmem:[#allocation5 + $0xb74] sm:$0xf] }
 0x13c   :  { %3096 = vmatpush.bf16.msrb.mxu2 %v4426_v18  ;;  %3065 = vmatmul.bf16.vlgmr.msra.gmra.mxu3 %v5723_v20  ;;  %v4314_v18 = vor.u32 %v5294_v12, %v4311_v13  ;;  %v5158_v12 = vld [vmem:[#allocation5 + $0x1b8] sm:$0xf0]  ;;  %v4006_v13 = vor.u32 %v5217_v59, %v4003_v60  ;;  %v5137_v59 = vld [vmem:[#allocation5 + $0x110] sm:$0xf0]  ;;  %v3897_v60 = vld [vmem:[#allocation5 + $0x2b8] sm:$0xf] }
 0x13d   :  { %3109 = vmatpush.bf16.msrb.mxu3 %v4650_v24  ;;  %v4538_v24 = vor.u32 %v5350_v15, %v4535_v16  ;;  %v3981_v15 = vld [vmem:[#allocation5 + $0x360] sm:$0xf]  ;;  %v5214_v16 = vld [vmem:[#allocation5 + $0x378] sm:$0xf0]  ;;  %v3758_v19 = vor.u32 %v5158_v12, %v3757_v11 }
 0x13e   :  { %3071 = vmatpush.bf16.msrb.mxu0 %v3950_v30  ;;  %v2845_v27 = vpop.f32.mrf.mxu2  ;;  %v2821_v30 = vpop.f32.mrf.mxu0  ;;  %v3982_v35 = vor.u32 %v5214_v16, %v3981_v15  ;;  %v5130_v11 = vld [vmem:[#allocation5 + $0xd8] sm:$0xf0]  ;;  %v3869_v12 = vld [vmem:[#allocation5 + $0x280] sm:$0xf]  ;;  %v5399_v16 = vld [vmem:[#allocation5 + $0x944] sm:$0xf] }
 0x13f   :  { %3084 = vmatpush.bf16.msrb.mxu1 %v4174_v31  ;;  %v2846_v31 = vadd.f32 %v2845_v27, %v2833_v50  ;;  %v2834_v38 = vpop.f32.mrf.mxu1  ;;  %v4230_v50 = vor.u32 %v5273_v61, %v4227_v63  ;;  %v5151_v27 = vld [vmem:[#allocation5 + $0x180] sm:$0xf0]  ;;  %v4846_v30 = vor.u32 %v5427_v22, %v4843_v23  ;;  %v5193_v61 = vld [vmem:[#allocation5 + $0x2d0] sm:$0xf0]  ;;  %v3617_v22 = vld [vmem:[#allocation5 + $0x88] sm:$0xf] }
 0x140   :  { %3097 = vmatpush.bf16.msrb.mxu2 %v4398_v32  ;;  %v2858_v32 = vpop.f32.mrf.mxu3  ;;  %v4815_v38 = vld [vmem:[#allocation5 + $0xa04] sm:$0xf0]  ;;  %v5123_v23 = vld [vmem:[#allocation5 + $0xa0] sm:$0xf0] }
 0x141   :  { %3110 = vmatpush.bf16.msrb.mxu3 %v4622_v42  ;;  %v4286_v42 = vor.u32 %v5287_v25, %v4283_v26  ;;  %v5786_v46 = vadd.f32 %v2858_v32, %v2846_v31  ;;  %v5067_v25 = vld [vmem:[#allocation5 + $0xbfc] sm:$0xf0]  ;;  %v3729_v26 = vld [vmem:[#allocation5 + $0x168] sm:$0xf] }
 0x142   :  { %3072 = vmatpush.bf16.msrb.mxu0 %v3922_v52  ;;  %v4255_v52 = vld [vmem:[#allocation5 + $0x5a4] sm:$0xf0]  ;;  %v3730_v32 = vor.u32 %v5151_v27, %v3729_v26 }
 0x143   :  { %3085 = vmatpush.bf16.msrb.mxu1 %v4146_v53  ;;  %v5336_v53 = vld [vmem:[#allocation5 + $0x74c] sm:$0xf]  ;;  %v4258_v58 = vor.u32 %v5280_v51, %v4255_v52 }
 0x144   :  { %3098 = vmatpush.bf16.msrb.mxu2 %v4370_v54  ;;  %v4479_v54 = vld [vmem:[#allocation5 + $0x764] sm:$0xf0] }
 0x145   :  { %3111 = vmatpush.bf16.msrb.mxu3 %v4594_v57  ;;  %v4034_v57 = vor.u32 %v5224_v44, %v4031_v48  ;;  %v4482_v62 = vor.u32 %v5336_v53, %v4479_v54  ;;  %v5144_v44 = vld [vmem:[#allocation5 + $0x148] sm:$0xf0]  ;;  %v5413_v54 = vld [vmem:[#allocation5 + $0x9b4] sm:$0xf] }
 0x146   :  { %3073 = vmatpush.bf16.msrb.mxu0 %v3894_v0  ;;  %v5329_v0 = vld [vmem:[#allocation5 + $0x714] sm:$0xf]  ;;  %v2847_v2 = vpop.f32.mrf.mxu2  ;;  %v5200_v48 = vld [vmem:[#allocation5 + $0x308] sm:$0xf0]  ;;  %v3702_v53 = vor.u32 %v5144_v44, %v3701_v36 }
 0x147   :  { %3086 = vmatpush.bf16.msrb.mxu1 %v4118_v3  ;;  %v5434_v3 = vld [vmem:[#allocation5 + $0xa5c] sm:$0xf]  ;;  %v5385_v44 = vld [vmem:[#allocation5 + $0x8d4] sm:$0xf] }
 0x148   :  { %3099 = vmatpush.bf16.msrb.mxu2 %v4342_v5  ;;  %v4871_v5 = vld [vmem:[#allocation5 + $0xa74] sm:$0xf0]  ;;  %v2860_v8 = vpop.f32.mrf.mxu3 }
 0x149   :  { %3112 = vmatpush.bf16.msrb.mxu3 %v4566_v10  ;;  %v5095_v10 = vld [vmem:[#allocation5 + $0xc34] sm:$0xf0]  ;;  %v3898_v8 = vor.u32 %v5193_v61, %v3897_v60  ;;  %v5165_v60 = vld [vmem:[#allocation5 + $0x1f0] sm:$0xf0] }
 0x14a   :  { %3074 = vmatpush.bf16.msrb.mxu0 %v3866_v17  ;;  %v4454_v17 = vor.u32 %v5329_v0, %v4451_v1 }
 0x14b   :  { %3087 = vmatpush.bf16.msrb.mxu1 %v4090_v49  ;;  %v4874_v49 = vor.u32 %v5434_v3, %v4871_v5  ;;  %v5406_v3 = vld [vmem:[#allocation5 + $0x97c] sm:$0xf]  ;;  %v4759_v5 = vld [vmem:[#allocation5 + $0x994] sm:$0xf0] }
 0x14c   :  { %3100 = vmatpush.bf16.msrb.mxu2 %v4314_v18  ;;  %v5098_v18 = vor.u32 %v5490_v7, %v5095_v10  ;;  %v5462_v7 = vld [vmem:[#allocation5 + $0xb3c] sm:$0xf]  ;;  %v3645_v10 = vld [vmem:[#allocation5 + $0xc0] sm:$0xf] }
 0x14d   :  { %3113 = vmatpush.bf16.msrb.mxu3 %v4538_v24  ;;  %v5483_v24 = vld [vmem:[#allocation5 + $0xbe4] sm:$0xf]  ;;  %v3646_v15 = vor.u32 %v5130_v11, %v3645_v10 }
 0x14e   :  { %3075 = vmatpush.bf16.msrb.mxu0 %v3838_v34  ;;  %v5070_v31 = vor.u32 %v5483_v24, %v5067_v25  ;;  %v5420_v34 = vld [vmem:[#allocation5 + $0x9ec] sm:$0xf]  ;;  %v3841_v24 = vld [vmem:[#allocation5 + $0x248] sm:$0xf] }
 0x14f   :  { %3088 = vmatpush.bf16.msrb.mxu1 %v4062_v39  ;;  %v5476_v39 = vld [vmem:[#allocation5 + $0xbac] sm:$0xf]  ;;  %v4818_v51 = vor.u32 %v5420_v34, %v4815_v38  ;;  %v4927_v34 = vld [vmem:[#allocation5 + $0xae4] sm:$0xf0]  ;;  %v3589_v38 = vld [vmem:[#allocation5 + $0x50] sm:$0xf] }
 0x150   :  { %3101 = vmatpush.bf16.msrb.mxu2 %v4286_v42  ;;  %v3954_v42 = vor.u32 %v5207_v29, %v3953_v28  ;;  %v5042_v52 = vor.u32 %v5476_v39, %v5039_v43  ;;  %v3618_v28 = vor.u32 %v5123_v23, %v3617_v22  ;;  %v5392_v29 = vld [vmem:[#allocation5 + $0x90c] sm:$0xf] }
 0x151   :  { %3114 = vmatpush.bf16.msrb.mxu3 %v4510_v47  ;;  %v3925_v47 = vld [vmem:[#allocation5 + $0x2f0] sm:$0xf]  ;;  %v5116_v39 = vld [vmem:[#allocation5 + $0x68] sm:$0xf0] }
 0x152   :  { %3076 = vmatpush.bf16.msrb.mxu0 %v3810_v55  ;;  %v4787_v55 = vld [vmem:[#allocation5 + $0x9cc] sm:$0xf0]  ;;  %v3926_v56 = vor.u32 %v5200_v48, %v3925_v47  ;;  %v5172_v43 = vld [vmem:[#allocation5 + $0x228] sm:$0xf0]  ;;  %v5795_v48 = vld [vmem:[#allocation7] sm:$0xff] }
 0x153   :  { %3089 = vmatpush.bf16.msrb.mxu1 %v4034_v57  ;;  %v5011_v57 = vld [vmem:[#allocation5 + $0xb8c] sm:$0xf0]  ;;  %v4790_v63 = vor.u32 %v5413_v54, %v4787_v55  ;;  %v3590_v54 = vor.u32 %v5116_v39, %v3589_v38  ;;  %v5441_v55 = vld [vmem:[#allocation5 + $0xa94] sm:$0xf] }
 0x154   :  { %3102 = vmatpush.bf16.msrb.mxu2 %v4258_v58  ;;  %v3673_v58 = vld [vmem:[#allocation5 + $0xf8] sm:$0xf]  ;;  %v5014_v1 = vor.u32 %v5469_v45, %v5011_v57  ;;  %v4675_v47 = vld [vmem:[#allocation5 + $0x8ec] sm:$0xf0] }
 0x155   :  { %3115 = vmatpush.bf16.msrb.mxu3 %v4482_v62  ;;  %v3674_v2 = vor.u32 %v5137_v59, %v3673_v58  ;;  %v4899_v45 = vld [vmem:[#allocation5 + $0xaac] sm:$0xf0]  ;;  %v5109_v58 = vld [vmem:[#allocation5 + $0x30] sm:$0xf0]  ;;  %v3785_v59 = vld [vmem:[#allocation5 + $0x1d8] sm:$0xf] }
 0x156   :  { %3077 = vmatpush.bf16.msrb.mxu0 %v3782_v9  ;;  %v2871_v62 = vpop.f32.mrf.mxu0  ;;  %v4983_v9 = vld [vmem:[#allocation5 + $0xb54] sm:$0xf0]  ;;  %v4902_v10 = vor.u32 %v5441_v55, %v4899_v45  ;;  %v4373_v38 = vld [vmem:[#allocation5 + $0x670] sm:$0xf] }
 0x157   :  { %3090 = vmatpush.bf16.msrb.mxu1 %v4006_v13  ;;  %v5793_v0 = vadd.f32 %v2871_v62, %v5786_v46  ;;  %v5186_v13 = vld [vmem:[#allocation5 + $0x298] sm:$0xf0]  ;;  %v4986_v46 = vor.u32 %v5462_v7, %v4983_v9  ;;  %v4205_v62 = vld [vmem:[#allocation5 + $0x520] sm:$0xf]  ;;  %v4121_v45 = vld [vmem:[#allocation5 + $0x478] sm:$0xf] }
 0x158   :  { %3103 = vmatpush.bf16.msrb.mxu2 %v4230_v50  ;;  %v4762_v50 = vor.u32 %v5406_v3, %v4759_v5  ;;  %v5326_v3 = vld [vmem:[#allocation5 + $0x6f8] sm:$0xf0]  ;;  %v4653_v5 = vld [vmem:[#allocation5 + $0x8a0] sm:$0xf] }
 0x159   :  { %3116 = vmatpush.bf16.msrb.mxu3 %v4454_v17  ;;  %3078 = vmatmul.bf16.vlgmr.msrb.gmra.mxu0 %v5725_v21  ;;  %v4731_v17 = vld [vmem:[#allocation5 + $0x95c] sm:$0xf0]  ;;  %v5382_v7 = vld [vmem:[#allocation5 + $0x8b8] sm:$0xf0] }
 0x15a   :  { %3122 = vmatpush.bf16.msra.mxu0 %v4874_v49  ;;  %3091 = vmatmul.bf16.vlgmr.msrb.gmra.mxu1 %v5718_v4  ;;  %v5455_v49 = vld [vmem:[#allocation5 + $0xb04] sm:$0xf]  ;;  %v4734_v26 = vor.u32 %v5399_v16, %v4731_v17  ;;  %v4654_v17 = vor.u32 %v5382_v7, %v4653_v5  ;;  %v4093_v5 = vld [vmem:[#allocation5 + $0x440] sm:$0xf]  ;;  %v5242_v7 = vld [vmem:[#allocation5 + $0x458] sm:$0xf0] }
 0x15b   :  { %3135 = vmatpush.bf16.msra.mxu1 %v5098_v18  ;;  %3104 = vmatmul.bf16.vlgmr.msrb.gmra.mxu2 %v5720_v6  ;;  %v3870_v18 = vor.u32 %v5186_v13, %v3869_v12  ;;  %v4877_v12 = vld [vmem:[#allocation5 + $0xa60] sm:$0xf]  ;;  %v5438_v13 = vld [vmem:[#allocation5 + $0xa78] sm:$0xf0] }
 0x15c   :  { %3148 = vmatpush.bf16.msra.mxu2 %v3758_v19  ;;  %3117 = vmatmul.bf16.vlgmr.msrb.gmra.mxu3 %v5732_v40  ;;  %v4955_v19 = vld [vmem:[#allocation5 + $0xb1c] sm:$0xf0]  ;;  %v4878_v23 = vor.u32 %v5438_v13, %v4877_v12  ;;  %v5354_v12 = vld [vmem:[#allocation5 + $0x7d8] sm:$0xf0] }
 0x15d   :  { %3161 = vmatpush.bf16.msra.mxu3 %v3982_v35  ;;  %v5179_v35 = vld [vmem:[#allocation5 + $0x260] sm:$0xf0]  ;;  %v4958_v27 = vor.u32 %v5455_v49, %v4955_v19  ;;  %v4177_v49 = vld [vmem:[#allocation5 + $0x4e8] sm:$0xf] }
 0x15e   :  { %3123 = vmatpush.bf16.msra.mxu0 %v4846_v30  ;;  %v2873_v25 = vpop.f32.mrf.mxu0  ;;  %v4703_v30 = vld [vmem:[#allocation5 + $0x924] sm:$0xf0] }
 0x15f   :  { %3136 = vmatpush.bf16.msra.mxu1 %v5070_v31  ;;  %v5448_v31 = vld [vmem:[#allocation5 + $0xacc] sm:$0xf]  ;;  %v4706_v36 = vor.u32 %v5392_v29, %v4703_v30  ;;  %v2910_v9 = vpop.f32.mrf.mxu3  ;;  %v4401_v19 = vld [vmem:[#allocation5 + $0x6a8] sm:$0xf]  ;;  %v5375_v25 = vld [vmem:[#allocation5 + $0x880] sm:$0xf0] }
 0x160   :  { %3149 = vmatpush.bf16.msra.mxu2 %v3730_v32  ;;  %v3842_v32 = vor.u32 %v5179_v35, %v3841_v24  ;;  %v5319_v24 = vld [vmem:[#allocation5 + $0x6c0] sm:$0xf0]  ;;  %v4625_v35 = vld [vmem:[#allocation5 + $0x868] sm:$0xf] }
 0x161   :  { %3162 = vmatpush.bf16.msra.mxu3 %v3954_v42  ;;  %v3813_v42 = vld [vmem:[#allocation5 + $0x210] sm:$0xf]  ;;  %v4402_v30 = vor.u32 %v5319_v24, %v4401_v19  ;;  %v5235_v19 = vld [vmem:[#allocation5 + $0x420] sm:$0xf0] }
 0x162   :  { %3124 = vmatpush.bf16.msra.mxu0 %v4818_v51  ;;  %v550_v51 = vperm.slane %v5795_v48, 3  ;;  %v3814_v57 = vor.u32 %v5172_v43, %v3813_v42  ;;  %v5312_v42 = vld [vmem:[#allocation5 + $0x688] sm:$0xf0]  ;;  %v4597_v43 = vld [vmem:[#allocation5 + $0x830] sm:$0xf] }
 0x163   :  { %3137 = vmatpush.bf16.msra.mxu1 %v5042_v52  ;;  %v2884_v52 = vpop.f32.mrf.mxu1  ;;  %v5291_v24 = vld [vmem:[#allocation5 + $0x5e0] sm:$0xf0] }
 0x164   :  { %3150 = vmatpush.bf16.msra.mxu2 %v3702_v53  ;;  %v4930_v53 = vor.u32 %v5448_v31, %v4927_v34  ;;  %v2885_v61 = vadd.f32 %v2884_v52, %v550_v51  ;;  %v4626_v31 = vor.u32 %v5375_v25, %v4625_v35  ;;  %v5256_v34 = vld [vmem:[#allocation5 + $0x4c8] sm:$0xf0]  ;;  %v4821_v51 = vld [vmem:[#allocation5 + $0x9f0] sm:$0xf]  ;;  %v4513_v35 = vld [vmem:[#allocation5 + $0x788] sm:$0xf] }
 0x165   :  { %3163 = vmatpush.bf16.msra.mxu3 %v3926_v56  ;;  %v3561_v56 = vld [vmem:[#allocation5 + $0x18] sm:$0xf]  ;;  %v5424_v52 = vld [vmem:[#allocation5 + $0xa08] sm:$0xf0]  ;;  %v5347_v25 = vld [vmem:[#allocation5 + $0x7a0] sm:$0xf0] }
 0x166   :  { %3125 = vmatpush.bf16.msra.mxu0 %v4790_v63  ;;  %v5270_v63 = vld [vmem:[#allocation5 + $0x538] sm:$0xf0]  ;;  %v3562_v11 = vor.u32 %v5109_v58, %v3561_v56  ;;  %v5249_v56 = vld [vmem:[#allocation5 + $0x490] sm:$0xf0]  ;;  %v4822_v58 = vor.u32 %v5424_v52, %v4821_v51  ;;  %v4485_v51 = vld [vmem:[#allocation5 + $0x750] sm:$0xf] }
 0x167   :  { %3138 = vmatpush.bf16.msra.mxu1 %v5014_v1  ;;  %v4429_v1 = vld [vmem:[#allocation5 + $0x6e0] sm:$0xf]  ;;  %v5340_v52 = vld [vmem:[#allocation5 + $0x768] sm:$0xf0] }
 0x168   :  { %3151 = vmatpush.bf16.msra.mxu2 %v3674_v2  ;;  %v4678_v2 = vor.u32 %v5385_v44, %v4675_v47  ;;  %v4430_v16 = vor.u32 %v5326_v3, %v4429_v1  ;;  %v2912_v47 = vpop.f32.mrf.mxu3 }
 0x169   :  { %3164 = vmatpush.bf16.msra.mxu3 %v3898_v8  ;;  %v2897_v8 = vpop.f32.mrf.mxu2  ;;  %v5284_v47 = vld [vmem:[#allocation5 + $0x5a8] sm:$0xf0] }
 0x16a   :  { %3126 = vmatpush.bf16.msra.mxu0 %v4762_v50  ;;  %v2898_v50 = vadd.f32 %v2897_v8, %v2885_v61  ;;  %v5361_v61 = vld [vmem:[#allocation5 + $0x810] sm:$0xf0]  ;;  %v4317_v8 = vld [vmem:[#allocation5 + $0x600] sm:$0xf] }
 0x16b   :  { %3139 = vmatpush.bf16.msra.mxu1 %v4986_v46  ;;  %v3786_v46 = vor.u32 %v5165_v60, %v3785_v59  ;;  %v5305_v59 = vld [vmem:[#allocation5 + $0x650] sm:$0xf0]  ;;  %v4569_v60 = vld [vmem:[#allocation5 + $0x7f8] sm:$0xf] }
 0x16c   :  { %3152 = vmatpush.bf16.msra.mxu2 %v3646_v15  ;;  %v4206_v15 = vor.u32 %v5270_v63, %v4205_v62  ;;  %v2911_v22 = vadd.f32 %v2910_v9, %v2898_v50  ;;  %v4793_v62 = vld [vmem:[#allocation5 + $0x9b8] sm:$0xf]  ;;  %v5417_v63 = vld [vmem:[#allocation5 + $0x9d0] sm:$0xf0]  ;;  %v4570_v3 = vor.u32 %v5361_v61, %v4569_v60  ;;  %v4765_v50 = vld [vmem:[#allocation5 + $0x980] sm:$0xf] }
 0x16d   :  { %3165 = vmatpush.bf16.msra.mxu3 %v3870_v18  ;;  %v5263_v18 = vld [vmem:[#allocation5 + $0x500] sm:$0xf0]  ;;  %v4794_v9 = vor.u32 %v5417_v63, %v4793_v62  ;;  %v4233_v60 = vld [vmem:[#allocation5 + $0x558] sm:$0xf]  ;;  %v5277_v61 = vld [vmem:[#allocation5 + $0x570] sm:$0xf0] }
 0x16e   :  { %3127 = vmatpush.bf16.msra.mxu0 %v4734_v26  ;;  %v2886_v26 = vpop.f32.mrf.mxu1  ;;  %v4178_v29 = vor.u32 %v5263_v18, %v4177_v49  ;;  %v4065_v18 = vld [vmem:[#allocation5 + $0x408] sm:$0xf]  ;;  %v4457_v63 = vld [vmem:[#allocation5 + $0x718] sm:$0xf] }
 0x16f   :  { %3140 = vmatpush.bf16.msra.mxu1 %v4958_v27  ;;  %v4849_v27 = vld [vmem:[#allocation5 + $0xa28] sm:$0xf] }
 0x170   :  { %3153 = vmatpush.bf16.msra.mxu2 %v3618_v28  ;;  %v5431_v28 = vld [vmem:[#allocation5 + $0xa40] sm:$0xf0] }
 0x171   :  { %3166 = vmatpush.bf16.msra.mxu3 %v3842_v32  ;;  %v4149_v32 = vld [vmem:[#allocation5 + $0x4b0] sm:$0xf]  ;;  %v4850_v39 = vor.u32 %v5431_v28, %v4849_v27  ;;  %v2899_v44 = vpop.f32.mrf.mxu2  ;;  %v4737_v27 = vld [vmem:[#allocation5 + $0x948] sm:$0xf]  ;;  %v5403_v28 = vld [vmem:[#allocation5 + $0x960] sm:$0xf0] }
 0x172   :  { %3128 = vmatpush.bf16.msra.mxu0 %v4706_v36  ;;  %v5368_v36 = vld [vmem:[#allocation5 + $0x848] sm:$0xf0]  ;;  %v4738_v44 = vor.u32 %v5403_v28, %v4737_v27 }
 0x173   :  { %3141 = vmatpush.bf16.msra.mxu1 %v4930_v53  ;;  %v4150_v53 = vor.u32 %v5256_v34, %v4149_v32  ;;  %v4598_v55 = vor.u32 %v5368_v36, %v4597_v43  ;;  %v4066_v32 = vor.u32 %v5235_v19, %v4065_v18  ;;  %v4261_v43 = vld [vmem:[#allocation5 + $0x590] sm:$0xf]  ;;  %v3292_v19 = vld [vmem:[#allocation8 + $0x170] sm:$0xff]  ;;  %v3274_v27 = vld [vmem:[#allocation8 + $0xe0] sm:$0xff] }
 0x174   :  { %3154 = vmatpush.bf16.msra.mxu2 %v3590_v54  ;;  %v4374_v54 = vor.u32 %v5312_v42, %v4373_v38  ;;  %v4514_v38 = vor.u32 %v5347_v25, %v4513_v35  ;;  %v5228_v42 = vld [vmem:[#allocation5 + $0x3e8] sm:$0xf0]  ;;  %v3275_v35 = vld [vmem:[#allocation8 + $0xe8] sm:$0xff] }
 0x175   :  { %3167 = vmatpush.bf16.msra.mxu3 %v3814_v57  ;;  %v4345_v57 = vld [vmem:[#allocation5 + $0x638] sm:$0xf]  ;;  %v3291_v25 = vld [vmem:[#allocation8 + $0x168] sm:$0xff] }
 0x176   :  { %3129 = vmatpush.bf16.msra.mxu0 %v4678_v2  ;;  %v2923_v1 = vpop.f32.mrf.mxu0 }
 0x177   :  { %3142 = vmatpush.bf16.msra.mxu1 %v4902_v10  ;;  %v2924_v2 = vadd.f32 %v2923_v1, %v2911_v22  ;;  %v5298_v10 = vld [vmem:[#allocation5 + $0x618] sm:$0xf0]  ;;  %v2936_v13 = vpop.f32.mrf.mxu1  ;;  %v4289_v22 = vld [vmem:[#allocation5 + $0x5c8] sm:$0xf]  ;;  %v5333_v1 = vld [vmem:[#allocation5 + $0x730] sm:$0xf0] }
 0x178   :  { %3155 = vmatpush.bf16.msra.mxu2 %v3562_v11  ;;  %v4541_v11 = vld [vmem:[#allocation5 + $0x7c0] sm:$0xf]  ;;  %v4290_v34 = vor.u32 %v5291_v24, %v4289_v22  ;;  %v5045_v22 = vld [vmem:[#allocation5 + $0xbb0] sm:$0xf] }
 0x179   :  { %3168 = vmatpush.bf16.msra.mxu3 %v3786_v46  ;;  %3130 = vmatmul.bf16.vlgmr.msra.gmra.mxu0 %v5734_v41  ;;  %v5410_v46 = vld [vmem:[#allocation5 + $0x998] sm:$0xf0]  ;;  %v4542_v49 = vor.u32 %v5354_v12, %v4541_v11  ;;  %v3259_v24 = vld [vmem:[#allocation8 + $0x68] sm:$0xff] }
 0x17a   :  { %3174 = vmatpush.bf16.msrb.mxu0 %v4206_v15  ;;  %3143 = vmatmul.bf16.vlgmr.msra.gmra.mxu1 %v5730_v37  ;;  %v2937_v15 = vadd.f32 %v2936_v13, %v2924_v2  ;;  %v5073_v13 = vld [vmem:[#allocation5 + $0xbe8] sm:$0xf] }
 0x17b   :  { %3187 = vmatpush.bf16.msrb.mxu1 %v4430_v16  ;;  %3156 = vmatmul.bf16.vlgmr.msra.gmra.mxu2 %v5723_v20  ;;  %v4122_v20 = vor.u32 %v5249_v56, %v4121_v45  ;;  %v4094_v16 = vor.u32 %v5242_v7, %v4093_v5  ;;  %v4009_v56 = vld [vmem:[#allocation5 + $0x398] sm:$0xf]  ;;  %v5494_v5 = vld [vmem:[#allocation5 + $0xc38] sm:$0xf0] }
 0x17c   :  { %3200 = vmatpush.bf16.msrb.mxu2 %v4654_v17  ;;  %3169 = vmatmul.bf16.vlgmr.msra.gmra.mxu3 %v5725_v21  ;;  %v4346_v21 = vor.u32 %v5305_v59, %v4345_v57  ;;  %v4318_v17 = vor.u32 %v5298_v10, %v4317_v8  ;;  %v4262_v57 = vor.u32 %v5284_v47, %v4261_v43  ;;  %v5221_v59 = vld [vmem:[#allocation5 + $0x3b0] sm:$0xf0]  ;;  %v3288_v47 = vld [vmem:[#allocation8 + $0x150] sm:$0xff] }
 0x17d   :  { %3213 = vmatpush.bf16.msrb.mxu3 %v4878_v23  ;;  %v4766_v23 = vor.u32 %v5410_v46, %v4765_v50  ;;  %v4010_v8 = vor.u32 %v5221_v59, %v4009_v56  ;;  %v4458_v10 = vor.u32 %v5333_v1, %v4457_v63  ;;  %v5487_v50 = vld [vmem:[#allocation5 + $0xc00] sm:$0xf0]  ;;  %v3252_v1 = vld [vmem:[#allocation8 + $0x30] sm:$0xff] }
 0x17e   :  { %3175 = vmatpush.bf16.msrb.mxu0 %v4178_v29  ;;  %v2949_v26 = vpop.f32.mrf.mxu2  ;;  %v2925_v29 = vpop.f32.mrf.mxu0  ;;  %v3261_v46 = vld [vmem:[#allocation8 + $0x78] sm:$0xff]  ;;  %v5074_v18 = vor.u32 %v5487_v50, %v5073_v13  ;;  %v3266_v13 = vld [vmem:[#allocation8 + $0xa0] sm:$0xff] }
 0x17f   :  { %3188 = vmatpush.bf16.msrb.mxu1 %v4402_v30  ;;  %v2950_v30 = vadd.f32 %v2949_v26, %v2937_v15  ;;  %v3277_v15 = vld [vmem:[#allocation8 + $0xf8] sm:$0xff]  ;;  %v3258_v26 = vld [vmem:[#allocation8 + $0x60] sm:$0xff] }
 0x180   :  { %3201 = vmatpush.bf16.msrb.mxu2 %v4626_v31  ;;  %v2962_v31 = vpop.f32.mrf.mxu3  ;;  %v3290_v29 = vld [vmem:[#allocation8 + $0x160] sm:$0xff]  ;;  %v3253_v59 = vld [vmem:[#allocation8 + $0x38] sm:$0xff] }
 0x181   :  { %3214 = vmatpush.bf16.msrb.mxu3 %v4850_v39  ;;  %v4037_v39 = vld [vmem:[#allocation5 + $0x3d0] sm:$0xf]  ;;  %v5802_v36 = vadd.f32 %v2962_v31, %v2950_v30  ;;  %v5017_v30 = vld [vmem:[#allocation5 + $0xb78] sm:$0xf]  ;;  %v5473_v31 = vld [vmem:[#allocation5 + $0xb90] sm:$0xf0] }
 0x182   :  { %3176 = vmatpush.bf16.msrb.mxu0 %v4150_v53  ;;  %v2938_v53 = vpop.f32.mrf.mxu1  ;;  %v4038_v45 = vor.u32 %v5228_v42, %v4037_v39  ;;  %v3272_v39 = vld [vmem:[#allocation8 + $0xd0] sm:$0xff]  ;;  %v5018_v42 = vor.u32 %v5473_v31, %v5017_v30  ;;  %v3282_v50 = vld [vmem:[#allocation8 + $0x120] sm:$0xff] }
 0x183   :  { %3189 = vmatpush.bf16.msrb.mxu1 %v4374_v54  ;;  %v4709_v54 = vld [vmem:[#allocation5 + $0x910] sm:$0xf]  ;;  %v3262_v30 = vld [vmem:[#allocation8 + $0x80] sm:$0xff] }
 0x184   :  { %3202 = vmatpush.bf16.msrb.mxu2 %v4598_v55  ;;  %v5396_v55 = vld [vmem:[#allocation5 + $0x928] sm:$0xf0]  ;;  %v3255_v53 = vld [vmem:[#allocation8 + $0x48] sm:$0xff] }
 0x185   :  { %3215 = vmatpush.bf16.msrb.mxu3 %v4822_v58  ;;  %v4486_v58 = vor.u32 %v5340_v52, %v4485_v51  ;;  %v4710_v62 = vor.u32 %v5396_v55, %v4709_v54  ;;  %v4989_v51 = vld [vmem:[#allocation5 + $0xb40] sm:$0xf]  ;;  %v5466_v52 = vld [vmem:[#allocation5 + $0xb58] sm:$0xf0]  ;;  %v3287_v54 = vld [vmem:[#allocation8 + $0x148] sm:$0xff] }
 0x186   :  { %3177 = vmatpush.bf16.msrb.mxu0 %v4122_v20  ;;  %v4681_v20 = vld [vmem:[#allocation5 + $0x8d8] sm:$0xf]  ;;  %v2951_v2 = vpop.f32.mrf.mxu2  ;;  %v3254_v55 = vld [vmem:[#allocation8 + $0x40] sm:$0xff]  ;;  %v4990_v56 = vor.u32 %v5466_v52, %v4989_v51 }
 0x187   :  { %3190 = vmatpush.bf16.msrb.mxu1 %v4346_v21  ;;  %v5389_v21 = vld [vmem:[#allocation5 + $0x8f0] sm:$0xf0]  ;;  %v3278_v31 = vld [vmem:[#allocation8 + $0x100] sm:$0xff]  ;;  %v3324_v51 = vld [vmem:[#allocation8 + $0x270] sm:$0xff] }
 0x188   :  { %3203 = vmatpush.bf16.msrb.mxu2 %v4570_v3  ;;  %v5101_v3 = vld [vmem:[#allocation5 + $0xc20] sm:$0xf]  ;;  %v2964_v7 = vpop.f32.mrf.mxu3  ;;  %v4682_v11 = vor.u32 %v5389_v21, %v4681_v20  ;;  %v3268_v21 = vld [vmem:[#allocation8 + $0xb0] sm:$0xff] }
 0x189   :  { %3216 = vmatpush.bf16.msrb.mxu3 %v4794_v9  ;;  %v4234_v9 = vor.u32 %v5277_v61, %v4233_v60  ;;  %v5102_v12 = vor.u32 %v5494_v5, %v5101_v3  ;;  %v4961_v60 = vld [vmem:[#allocation5 + $0xb08] sm:$0xf]  ;;  %v5459_v61 = vld [vmem:[#allocation5 + $0xb20] sm:$0xf0]  ;;  %v3284_v3 = vld [vmem:[#allocation8 + $0x130] sm:$0xff] }
 0x18a   :  { %3178 = vmatpush.bf16.msrb.mxu0 %v4094_v16  ;;  %v3293_v16 = vld [vmem:[#allocation8 + $0x178] sm:$0xff]  ;;  %v4962_v5 = vor.u32 %v5459_v61, %v4961_v60  ;;  %v3251_v7 = vld [vmem:[#allocation8 + $0x28] sm:$0xff]  ;;  %v3340_v52 = vld [vmem:[#allocation8 + $0x2f0] sm:$0xff] }
 0x18b   :  { %3191 = vmatpush.bf16.msrb.mxu1 %v4318_v17  ;;  %v3260_v17 = vld [vmem:[#allocation8 + $0x70] sm:$0xff]  ;;  %v3321_v60 = vld [vmem:[#allocation8 + $0x258] sm:$0xff]  ;;  %v3303_v61 = vld [vmem:[#allocation8 + $0x1c8] sm:$0xff] }
 0x18c   :  { %3204 = vmatpush.bf16.msrb.mxu2 %v4542_v49  ;;  %v3276_v49 = vld [vmem:[#allocation8 + $0xf0] sm:$0xff] }
 0x18d   :  { %3217 = vmatpush.bf16.msrb.mxu3 %v4766_v23  ;;  %v5480_v23 = vld [vmem:[#allocation5 + $0xbc8] sm:$0xf0] }
 0x18e   :  { %3179 = vmatpush.bf16.msrb.mxu0 %v4066_v32  ;;  %v5046_v28 = vor.u32 %v5480_v23, %v5045_v22  ;;  %v3257_v32 = vld [vmem:[#allocation8 + $0x58] sm:$0xff]  ;;  %v3248_v22 = vld [vmem:[#allocation8 + $0x10] sm:$0xff] }
 0x18f   :  { %3192 = vmatpush.bf16.msrb.mxu1 %v4290_v34  ;;  %v3273_v34 = vld [vmem:[#allocation8 + $0xd8] sm:$0xff]  ;;  %v3264_v23 = vld [vmem:[#allocation8 + $0x90] sm:$0xff] }
 0x190   :  { %3205 = vmatpush.bf16.msrb.mxu2 %v4514_v38  ;;  %v3256_v38 = vld [vmem:[#allocation8 + $0x50] sm:$0xff] }
 0x191   :  { %3218 = vmatpush.bf16.msrb.mxu3 %v4738_v44 }
 0x192   :  { %3180 = vmatpush.bf16.msrb.mxu0 %v4038_v45  ;;  %v3270_v45 = vld [vmem:[#allocation8 + $0xc0] sm:$0xff] }
 0x193   :  { %3193 = vmatpush.bf16.msrb.mxu1 %v4262_v57  ;;  %v3286_v57 = vld [vmem:[#allocation8 + $0x140] sm:$0xff] }
 0x194   :  { %3206 = vmatpush.bf16.msrb.mxu2 %v4486_v58 }
 0x195   :  { %3219 = vmatpush.bf16.msrb.mxu3 %v4710_v62  ;;  %v3285_v62 = vld [vmem:[#allocation8 + $0x138] sm:$0xff] }
 0x196   :  { %3181 = vmatpush.bf16.msrb.mxu0 %v4010_v8  ;;  %v5806_v43 = vpop.f32.mrf.mxu0  ;;  %v4933_v8 = vld [vmem:[#allocation5 + $0xad0] sm:$0xf] }
 0x197   :  { %3194 = vmatpush.bf16.msrb.mxu1 %v4234_v9  ;;  %v5808_v44 = vpop.f32.mrf.mxu1  ;;  %v5452_v9 = vld [vmem:[#allocation5 + $0xae8] sm:$0xf0] }
 0x198   :  { %3207 = vmatpush.bf16.msrb.mxu2 %v4458_v10  ;;  %v3267_v10 = vld [vmem:[#allocation8 + $0xa8] sm:$0xff] }
 0x199   :  { %3220 = vmatpush.bf16.msrb.mxu3 %v4682_v11  ;;  %3182 = vmatmul.bf16.vlgmr.msrb.gmra.mxu0 %v5718_v4  ;;  %v3289_v4 = vld [vmem:[#allocation8 + $0x158] sm:$0xff]  ;;  %v3283_v11 = vld [vmem:[#allocation8 + $0x128] sm:$0xff] }
 0x19a   :  { %3226 = vmatpush.bf16.msra.mxu0 %v5102_v12  ;;  %3195 = vmatmul.bf16.vlgmr.msrb.gmra.mxu1 %v5720_v6  ;;  %v3269_v6 = vld [vmem:[#allocation8 + $0xb8] sm:$0xff]  ;;  %v3250_v12 = vld [vmem:[#allocation8 + $0x20] sm:$0xff] }
 0x19b   :  { %3362 = vmatpush.msra.mxu1 %v3261_v46  ;;  %3208 = vmatmul.bf16.vlgmr.msrb.gmra.mxu2 %v5732_v40  ;;  %v3271_v40 = vld [vmem:[#allocation8 + $0xc8] sm:$0xff] }
 0x19c   :  { %3382 = vmatpush.msra.mxu2 %v3277_v15  ;;  %3221 = vmatmul.bf16.vlgmr.msrb.gmra.mxu3 %v5734_v41  ;;  %v4934_v41 = vor.u32 %v5452_v9, %v4933_v8  ;;  %v3249_v15 = vld [vmem:[#allocation8 + $0x18] sm:$0xff] }
 0x19d   :  { %3402 = vmatpush.msra.mxu3 %v3293_v16  ;;  %3363 = vmatpush.msra.mxu1 %v3260_v17  ;;  %v4905_v16 = vld [vmem:[#allocation5 + $0xa98] sm:$0xf]  ;;  %v5445_v17 = vld [vmem:[#allocation5 + $0xab0] sm:$0xf0] }
 0x19e   :  { %3383 = vmatpush.msra.mxu2 %v3276_v49  ;;  %3227 = vmatpush.bf16.msra.mxu0 %v5074_v18  ;;  %v5811_v58 = vpop.f32.mrf.mxu2  ;;  %v2977_v20 = vpop.f32.mrf.mxu0  ;;  %v3265_v49 = vld [vmem:[#allocation8 + $0x98] sm:$0xff] }
 0x19f   :  { %3403 = vmatpush.msra.mxu3 %v3292_v19  ;;  %3364 = vmatpush.msra.mxu1 %v3259_v24  ;;  %v5813_v63 = vpop.f32.mrf.mxu3  ;;  %v2990_v2 = vpop.f32.mrf.mxu1  ;;  %v3281_v18 = vld [vmem:[#allocation8 + $0x118] sm:$0xff]  ;;  %v3280_v24 = vld [vmem:[#allocation8 + $0x110] sm:$0xff] }
 0x1a0   :  { %3384 = vmatpush.msra.mxu2 %v3275_v35  ;;  %v4906_v35 = vor.u32 %v5445_v17, %v4905_v16  ;;  %v3302_v2 = vld [vmem:[#allocation8 + $0x1c0] sm:$0xff] }
 0x1a1   :  { %3404 = vmatpush.msra.mxu3 %v3291_v25  ;;  %3365 = vmatpush.msra.mxu1 %v3258_v26  ;;  %v3247_v25 = vld [vmem:[#allocation8 + $0x8] sm:$0xff]  ;;  %v3298_v17 = vld [vmem:[#allocation8 + $0x1a0] sm:$0xff] }
 0x1a2   :  { %3385 = vmatpush.msra.mxu2 %v3274_v27  ;;  %3228 = vmatpush.bf16.msra.mxu0 %v5046_v28  ;;  %v3263_v26 = vld [vmem:[#allocation8 + $0x88] sm:$0xff]  ;;  %v3309_v28 = vld [vmem:[#allocation8 + $0x1f8] sm:$0xff] }
 0x1a3   :  { %3405 = vmatpush.msra.mxu3 %v3290_v29  ;;  %3366 = vmatpush.msra.mxu1 %v3257_v32  ;;  %v3279_v27 = vld [vmem:[#allocation8 + $0x108] sm:$0xff]  ;;  %v3246_v29 = vld [vmem:[#allocation8] sm:$0xff]  ;;  %v3239_v32 = vmax.f32 %v5765_v33, 0.0  ;;  %v3341_v33 = vld [vmem:[#allocation8 + $0x2f8] sm:$0xff] }
 0x1a4   :  { %3386 = vmatpush.msra.mxu2 %v3273_v34  ;;  %v3240_v34 = vmax.f32 %v5779_v14, 0.0 }
 0x1a5   :  { %3406 = vmatpush.msra.mxu3 %v3289_v4  ;;  %3367 = vmatpush.msra.mxu1 %v3256_v38  ;;  %v3241_v4 = vmax.f32 %v5793_v0, 0.0  ;;  %v551_v38 = vperm.slane %v5795_v48, 4  ;;  %v3306_v0 = vld [vmem:[#allocation8 + $0x1e0] sm:$0xff] }
 0x1a6   :  { %3387 = vmatpush.msra.mxu2 %v3272_v39  ;;  %3229 = vmatpush.bf16.msra.mxu0 %v5018_v42  ;;  %v3003_v46 = vpop.f32.mrf.mxu2  ;;  %v3308_v39 = vld [vmem:[#allocation8 + $0x1f0] sm:$0xff]  ;;  %v3325_v42 = vld [vmem:[#allocation8 + $0x278] sm:$0xff] }
 0x1a7   :  { %3407 = vmatpush.msra.mxu3 %v3288_v47  ;;  %3368 = vmatpush.msra.mxu1 %v3255_v53  ;;  %v3016_v19 = vpop.f32.mrf.mxu3  ;;  %v3307_v47 = vld [vmem:[#allocation8 + $0x1e8] sm:$0xff]  ;;  %v2976_v14 = vadd.f32 %v5806_v43, %v551_v38  ;;  %v3337_v43 = vld [vmem:[#allocation8 + $0x2d8] sm:$0xff] }
 0x1a8   :  { %3388 = vmatpush.msra.mxu2 %v3271_v40  ;;  %v3323_v53 = vld [vmem:[#allocation8 + $0x268] sm:$0xff]  ;;  %v3297_v19 = vld [vmem:[#allocation8 + $0x198] sm:$0xff] }
 0x1a9   :  { %3408 = vmatpush.msra.mxu3 %v3287_v54  ;;  %3369 = vmatpush.msra.mxu1 %v3254_v55  ;;  %v3339_v40 = vld [vmem:[#allocation8 + $0x2e8] sm:$0xff]  ;;  %v3305_v54 = vld [vmem:[#allocation8 + $0x1d8] sm:$0xff]  ;;  %v3322_v55 = vld [vmem:[#allocation8 + $0x260] sm:$0xff] }
 0x1aa   :  { %3389 = vmatpush.msra.mxu2 %v3270_v45  ;;  %3230 = vmatpush.bf16.msra.mxu0 %v4990_v56  ;;  %v3338_v56 = vld [vmem:[#allocation8 + $0x2e0] sm:$0xff] }
 0x1ab   :  { %3409 = vmatpush.msra.mxu3 %v3286_v57  ;;  %3370 = vmatpush.msra.mxu1 %v3253_v59  ;;  %v2989_v57 = vadd.f32 %v5808_v44, %v2976_v14  ;;  %v3304_v59 = vld [vmem:[#allocation8 + $0x1d0] sm:$0xff] }
 0x1ac   :  { %3390 = vmatpush.msra.mxu2 %v3269_v6  ;;  %v3320_v6 = vld [vmem:[#allocation8 + $0x250] sm:$0xff] }
 0x1ad   :  { %3410 = vmatpush.msra.mxu3 %v3285_v62  ;;  %3371 = vmatpush.msra.mxu1 %v3252_v1  ;;  %v3336_v1 = vld [vmem:[#allocation8 + $0x2d0] sm:$0xff]  ;;  %v3002_v20 = vadd.f32 %v5811_v58, %v2989_v57  ;;  %v3317_v58 = vld [vmem:[#allocation8 + $0x238] sm:$0xff] }
 0x1ae   :  { %3391 = vmatpush.msra.mxu2 %v3268_v21  ;;  %3231 = vmatpush.bf16.msra.mxu0 %v4962_v5  ;;  %v3319_v21 = vld [vmem:[#allocation8 + $0x248] sm:$0xff]  ;;  %v3301_v5 = vld [vmem:[#allocation8 + $0x1b8] sm:$0xff] }
 0x1af   :  { %3411 = vmatpush.msra.mxu3 %v3284_v3  ;;  %3372 = vmatpush.msra.mxu1 %v3251_v7  ;;  %v3335_v3 = vld [vmem:[#allocation8 + $0x2c8] sm:$0xff]  ;;  %v3318_v7 = vld [vmem:[#allocation8 + $0x240] sm:$0xff] }
 0x1b0   :  { %3392 = vmatpush.msra.mxu2 %v3267_v10  ;;  %v3334_v10 = vld [vmem:[#allocation8 + $0x2c0] sm:$0xff] }
 0x1b1   :  { %3412 = vmatpush.msra.mxu3 %v3283_v11  ;;  %3373 = vmatpush.msra.mxu1 %v3250_v12  ;;  %v3015_v11 = vadd.f32 %v5813_v63, %v3002_v20  ;;  %v3300_v12 = vld [vmem:[#allocation8 + $0x1b0] sm:$0xff]  ;;  %v3353_v20 = vld [vmem:[#allocation8 + $0x358] sm:$0xff] }
 0x1b2   :  { %3393 = vmatpush.msra.mxu2 %v3266_v13  ;;  %3232 = vmatpush.bf16.msra.mxu0 %v4934_v41  ;;  %v3333_v13 = vld [vmem:[#allocation8 + $0x2b8] sm:$0xff]  ;;  %v3316_v41 = vld [vmem:[#allocation8 + $0x230] sm:$0xff] }
 0x1b3   :  { %3413 = vmatpush.msra.mxu3 %v3282_v50  ;;  %3374 = vmatpush.msra.mxu1 %v3249_v15  ;;  %v3299_v50 = vld [vmem:[#allocation8 + $0x1a8] sm:$0xff]  ;;  %v3332_v15 = vld [vmem:[#allocation8 + $0x2b0] sm:$0xff] }
 0x1b4   :  { %3394 = vmatpush.msra.mxu2 %v3265_v49  ;;  %v3315_v49 = vld [vmem:[#allocation8 + $0x228] sm:$0xff] }
 0x1b5   :  { %3414 = vmatpush.msra.mxu3 %v3281_v18  ;;  %3375 = vmatpush.msra.mxu1 %v3248_v22  ;;  %v3331_v18 = vld [vmem:[#allocation8 + $0x2a8] sm:$0xff]  ;;  %v3314_v22 = vld [vmem:[#allocation8 + $0x220] sm:$0xff] }
 0x1b6   :  { %3395 = vmatpush.msra.mxu2 %v3264_v23  ;;  %3233 = vmatpush.bf16.msra.mxu0 %v4906_v35  ;;  %v3330_v23 = vld [vmem:[#allocation8 + $0x2a0] sm:$0xff]  ;;  %v3296_v35 = vld [vmem:[#allocation8 + $0x190] sm:$0xff] }
 0x1b7   :  { %3415 = vmatpush.msra.mxu3 %v3280_v24  ;;  %3376 = vmatpush.msra.mxu1 %v3247_v25  ;;  %v5822_v45 = vpop.f32.mrf.mxu1  ;;  %v3313_v25 = vld [vmem:[#allocation8 + $0x218] sm:$0xff] }
 0x1b8   :  { %3396 = vmatpush.msra.mxu2 %v3263_v26  ;;  %v3295_v26 = vld [vmem:[#allocation8 + $0x188] sm:$0xff] }
 0x1b9   :  { %3416 = vmatpush.msra.mxu3 %v3279_v27  ;;  %3377 = vmatpush.msra.mxu1 %v3246_v29  ;;  %v3312_v27 = vld [vmem:[#allocation8 + $0x210] sm:$0xff]  ;;  %v3294_v29 = vld [vmem:[#allocation8 + $0x180] sm:$0xff] }
 0x1ba   :  { %3422 = vmatpush.msrb.mxu0 %v3309_v28  ;;  %3397 = vmatpush.msra.mxu2 %v3262_v30  ;;  %v3311_v30 = vld [vmem:[#allocation8 + $0x208] sm:$0xff] }
 0x1bb   :  { %3417 = vmatpush.msra.mxu3 %v3278_v31  ;;  %3234 = vmatmul.bf16.vlgmr.msra.gmra.mxu0 %v5730_v37  ;;  %v3027_v37 = vpop.f32.mrf.mxu0  ;;  %v3242_v31 = vmax.f32 %v5802_v36, 0.0 }
 0x1bc   :  { %3378 = vmatmul.f32.vlgmr.msra.gmra.mxu1 %v3239_v32  ;;  %3398 = vmatmul.f32.vlgmr.msra.gmra.mxu2 %v3240_v34  ;;  %v3028_v16 = vadd.f32 %v3027_v37, %v3015_v11  ;;  %v3310_v32 = vld [vmem:[#allocation8 + $0x200] sm:$0xff] }
 0x1bd   :  { %3418 = vmatmul.f32.vlgmr.msra.gmra.mxu3 %v3241_v4  ;;  %3423 = vmatpush.msrb.mxu0 %v3308_v39  ;;  %v3329_v4 = vld [vmem:[#allocation8 + $0x298] sm:$0xff] }
 0x1be   :  { %3442 = vmatpush.msrb.mxu1 %v3325_v42  ;;  %3462 = vmatpush.msrb.mxu2 %v3341_v33  ;;  %v3053_v62 = vpop.f32.mrf.mxu2  ;;  %v3041_v24 = vadd.f32 %v5822_v45, %v3028_v16  ;;  %v3328_v42 = vld [vmem:[#allocation8 + $0x290] sm:$0xff]  ;;  %v552_v33 = vperm.slane %v5795_v48, 5  ;;  %v3343_v16 = vld [vmem:[#allocation8 + $0x308] sm:$0xff] }
 0x1bf   :  { %3424 = vmatpush.msrb.mxu0 %v3307_v47  ;;  %v5826_v44 = vpop.f32.mrf.mxu3  ;;  %v3042_v9 = vpop.f32.mrf.mxu1  ;;  %v3327_v47 = vld [vmem:[#allocation8 + $0x288] sm:$0xff] }
 0x1c0   :  { %3443 = vmatpush.msrb.mxu1 %v3324_v51  ;;  %3463 = vmatpush.msrb.mxu2 %v3340_v52  ;;  %v3054_v28 = vadd.f32 %v3053_v62, %v3041_v24  ;;  %v3326_v51 = vld [vmem:[#allocation8 + $0x280] sm:$0xff] }
 0x1c1   :  { %3425 = vmatpush.msrb.mxu0 %v3306_v0  ;;  %v3357_v0 = vld [vmem:[#allocation8 + $0x378] sm:$0xff]  ;;  %v3354_v62 = vld [vmem:[#allocation8 + $0x360] sm:$0xff] }
 0x1c2   :  { %3444 = vmatpush.msrb.mxu1 %v3323_v53  ;;  %3464 = vmatpush.msrb.mxu2 %v3339_v40  ;;  %v3243_v34 = vmax.f32 %v3054_v28, 0.0  ;;  %v3067_v40 = vadd.f32 %v5826_v44, %v552_v33  ;;  %v3352_v44 = vld [vmem:[#allocation8 + $0x350] sm:$0xff]  ;;  %v3350_v9 = vld [vmem:[#allocation8 + $0x340] sm:$0xff] }
 0x1c3   :  { %3426 = vmatpush.msrb.mxu0 %v3305_v54  ;;  %v3029_v8 = vpop.f32.mrf.mxu0  ;;  %3482 = vmatpush.msrb.mxu3 %v3357_v0 }
 0x1c4   :  { %3445 = vmatpush.msrb.mxu1 %v3322_v55  ;;  %3465 = vmatpush.msrb.mxu2 %v3338_v56 }
 0x1c5   :  { %3427 = vmatpush.msrb.mxu0 %v3304_v59  ;;  %v3356_v59 = vld [vmem:[#allocation8 + $0x370] sm:$0xff] }
 0x1c6   :  { %3446 = vmatpush.msrb.mxu1 %v3321_v60  ;;  %3466 = vmatpush.msrb.mxu2 %v3337_v43  ;;  %v3055_v46 = vpop.f32.mrf.mxu2  ;;  %v3355_v60 = vld [vmem:[#allocation8 + $0x368] sm:$0xff] }
 0x1c7   :  { %3428 = vmatpush.msrb.mxu0 %v3303_v61  ;;  %v3068_v63 = vpop.f32.mrf.mxu3  ;;  %3483 = vmatpush.msrb.mxu3 %v3356_v59 }
 0x1c8   :  { %3447 = vmatpush.msrb.mxu1 %v3320_v6  ;;  %3467 = vmatpush.msrb.mxu2 %v3336_v1 }
 0x1c9   :  { %3429 = vmatpush.msrb.mxu0 %v3302_v2  ;;  %3484 = vmatpush.msrb.mxu3 %v3355_v60 }
 0x1ca   :  { %3448 = vmatpush.msrb.mxu1 %v3319_v21  ;;  %3468 = vmatpush.msrb.mxu2 %v3335_v3  ;;  %v3351_v3 = vld [vmem:[#allocation8 + $0x348] sm:$0xff] }
 0x1cb   :  { %3430 = vmatpush.msrb.mxu0 %v3301_v5  ;;  %3485 = vmatpush.msrb.mxu3 %v3354_v62 }
 0x1cc   :  { %3449 = vmatpush.msrb.mxu1 %v3318_v7  ;;  %3469 = vmatpush.msrb.mxu2 %v3334_v10 }
 0x1cd   :  { %3431 = vmatpush.msrb.mxu0 %v3300_v12  ;;  %3486 = vmatpush.msrb.mxu3 %v3353_v20  ;;  %v3349_v12 = vld [vmem:[#allocation8 + $0x338] sm:$0xff] }
 0x1ce   :  { %3450 = vmatpush.msrb.mxu1 %v3317_v58  ;;  %3470 = vmatpush.msrb.mxu2 %v3333_v13  ;;  %v3348_v58 = vld [vmem:[#allocation8 + $0x330] sm:$0xff]  ;;  %v3347_v13 = vld [vmem:[#allocation8 + $0x328] sm:$0xff] }
 0x1cf   :  { %3432 = vmatpush.msrb.mxu0 %v3299_v50  ;;  %3487 = vmatpush.msrb.mxu3 %v3352_v44  ;;  %v3346_v50 = vld [vmem:[#allocation8 + $0x320] sm:$0xff] }
 0x1d0   :  { %3451 = vmatpush.msrb.mxu1 %v3316_v41  ;;  %3471 = vmatpush.msrb.mxu2 %v3332_v15  ;;  %v3345_v41 = vld [vmem:[#allocation8 + $0x318] sm:$0xff]  ;;  %v3344_v15 = vld [vmem:[#allocation8 + $0x310] sm:$0xff] }
 0x1d1   :  { %3433 = vmatpush.msrb.mxu0 %v3298_v17  ;;  %3488 = vmatpush.msrb.mxu3 %v3351_v3  ;;  %v3342_v17 = vld [vmem:[#allocation8 + $0x300] sm:$0xff] }
 0x1d2   :  { %3452 = vmatpush.msrb.mxu1 %v3315_v49  ;;  %3472 = vmatpush.msrb.mxu2 %v3331_v18  ;;  %v553_v49 = vperm.slane %v5795_v48, 6 }
 0x1d3   :  { %3434 = vmatpush.msrb.mxu0 %v3297_v19  ;;  %3489 = vmatpush.msrb.mxu3 %v3350_v9 }
 0x1d4   :  { %3453 = vmatpush.msrb.mxu1 %v3314_v22  ;;  %3473 = vmatpush.msrb.mxu2 %v3330_v23 }
 0x1d5   :  { %3435 = vmatpush.msrb.mxu0 %v3296_v35  ;;  %3490 = vmatpush.msrb.mxu3 %v3349_v12 }
 0x1d6   :  { %3454 = vmatpush.msrb.mxu1 %v3313_v25  ;;  %v3079_v38 = vpop.f32.mrf.mxu0  ;;  %3474 = vmatpush.msrb.mxu2 %v3329_v4 }
 0x1d7   :  { %3436 = vmatpush.msrb.mxu0 %v3295_v26  ;;  %v3092_v39 = vpop.f32.mrf.mxu1  ;;  %v3080_v54 = vadd.f32 %v3079_v38, %v3067_v40  ;;  %3491 = vmatpush.msrb.mxu3 %v3348_v58  ;;  %v5505_v38 = vld [vmem:[#allocation10] ss:$0 sm:$0xff] }
 0x1d8   :  { %3455 = vmatpush.msrb.mxu1 %v3312_v27  ;;  %3475 = vmatpush.msrb.mxu2 %v3328_v42 }
 0x1d9   :  { %3437 = vmatpush.msrb.mxu0 %v3294_v29  ;;  %v3093_v45 = vadd.f32 %v3092_v39, %v3080_v54  ;;  %3492 = vmatpush.msrb.mxu3 %v3347_v13 }
 0x1da   :  { %3456 = vmatpush.msrb.mxu1 %v3311_v30  ;;  %3438 = vmatmul.f32.vlgmr.msrb.gmra.mxu0 %v3242_v31 }
 0x1db   :  { %3476 = vmatpush.msrb.mxu2 %v3327_v47  ;;  %3493 = vmatpush.msrb.mxu3 %v3346_v50 }
 0x1dc   :  { %3457 = vmatpush.msrb.mxu1 %v3310_v32 }
 0x1dd   :  { %3458 = vmatmul.f32.vlgmr.msrb.gmra.mxu1 %v3243_v34  ;;  %3477 = vmatpush.msrb.mxu2 %v3326_v51 }
 0x1de   :  { %v3105_v52 = vpop.f32.mrf.mxu2  ;;  %v3081_v36 = vpop.f32.mrf.mxu0  ;;  %3494 = vmatpush.msrb.mxu3 %v3345_v41 }
 0x1df   :  { %v3118_v14 = vpop.f32.mrf.mxu3  ;;  %v3094_v53 = vpop.f32.mrf.mxu1  ;;  %v3106_v56 = vadd.f32 %v3105_v52, %v3093_v45  ;;  %v3502_v36 = vlaneseq }
 0x1e0   :  { %3495 = vmatpush.msrb.mxu3 %v3344_v15 }
 0x1e1   :  { %v3119_v57 = vadd.f32 %v3118_v14, %v3106_v56  ;;  %v3503_v40 = vand.u32 127, %v3502_v36 }
 0x1e2   :  { %3496 = vmatpush.msrb.mxu3 %v3343_v16 }
 0x1e3   :  { %vm3504_vm0 = vcmp.lt.s32.totalorder %v3503_v40, 10 }
 0x1e4   :  { %3497 = vmatpush.msrb.mxu3 %v3342_v17 }
 0x1e6   :  { %v3107_v55 = vpop.f32.mrf.mxu2 }
 0x1e7   :  { %v3120_v37 = vpop.f32.mrf.mxu3 }
 0x1f6   :  { %v3131_v43 = vpop.f32.mrf.mxu0 }
 0x1f7   :  { %v3132_v61 = vadd.f32 %v3131_v43, %v3119_v57  ;;  %v3144_v6 = vpop.f32.mrf.mxu1 }
 0x1f9   :  { %v3145_v1 = vadd.f32 %v3144_v6, %v3132_v61 }
 0x1fb   :  { %v3244_v2 = vmax.f32 %v3145_v1, 0.0 }
 0x1fd   :  { %3478 = vmatmul.f32.vlgmr.msrb.gmra.mxu2 %v3244_v2 }
 0x1fe   :  { %v3157_v21 = vpop.f32.mrf.mxu2  ;;  %v3133_v5 = vpop.f32.mrf.mxu0 }
 0x1ff   :  { %v3170_v7 = vpop.f32.mrf.mxu3  ;;  %v3146_v8 = vpop.f32.mrf.mxu1  ;;  %v3158_v19 = vadd.f32 %v3157_v21, %v553_v49 }
 0x201   :  { %v3171_v23 = vadd.f32 %v3170_v7, %v3158_v19 }
 0x206   :  { %v3159_v10 = vpop.f32.mrf.mxu2 }
 0x207   :  { %v3172_v11 = vpop.f32.mrf.mxu3 }
 0x216   :  { %v3183_v46 = vpop.f32.mrf.mxu0 }
 0x217   :  { %v3196_v18 = vpop.f32.mrf.mxu1  ;;  %v3184_v35 = vadd.f32 %v3183_v46, %v3171_v23 }
 0x219   :  { %v3197_v27 = vadd.f32 %v3196_v18, %v3184_v35 }
 0x21e   :  { %v3185_v63 = vpop.f32.mrf.mxu0  ;;  %v3209_v22 = vpop.f32.mrf.mxu2 }
 0x21f   :  { %v3198_v24 = vpop.f32.mrf.mxu1  ;;  %v3222_v26 = vpop.f32.mrf.mxu3  ;;  %v3210_v28 = vadd.f32 %v3209_v22, %v3197_v27 }
 0x221   :  { %v3223_v30 = vadd.f32 %v3222_v26, %v3210_v28 }
 0x226   :  { %v3211_v25 = vpop.f32.mrf.mxu2 }
 0x227   :  { %v3224_v29 = vpop.f32.mrf.mxu3 }
 0x238   :  { %v3235_v31 = vpop.f32.mrf.mxu0 }
 0x239   :  { %v3236_v32 = vadd.f32 %v3235_v31, %v3223_v30  ;;  %v3379_v48 = vpop.f32.mrf.mxu1 }
 0x23a   :  { %v3380_v42 = vadd.f32 %v5505_v38, %v3379_v48 }
 0x23b   :  { %v3245_v34 = vmax.f32 %v3236_v32, 0.0 }
 0x23d   :  { %3498 = vmatmul.f32.vlgmr.msrb.gmra.mxu3 %v3245_v34 }
 0x23f   :  { %v3399_v39 = vpop.f32.mrf.mxu2 }
 0x240   :  { %v3237_v4 = vpop.f32.mrf.mxu0  ;;  %v3400_v47 = vadd.f32 %v3399_v39, %v3380_v42  ;;  %v3419_v51 = vpop.f32.mrf.mxu3 }
 0x242   :  { %v3420_v52 = vadd.f32 %v3419_v51, %v3400_v47 }
 0x257   :  { %v3439_v33 = vpop.f32.mrf.mxu0 }
 0x258   :  { %v3440_v14 = vadd.f32 %v3439_v33, %v3420_v52 }
 0x25a   :  { %v3459_v0 = vpop.f32.mrf.mxu1 }
 0x25b   :  { %v3460_v54 = vadd.f32 %v3459_v0, %v3440_v14 }
 0x280   :  { %v3479_v53 = vpop.f32.mrf.mxu2 }
 0x281   :  { %v3480_v55 = vadd.f32 %v3479_v53, %v3460_v54 }
 0x2c0   :  { %v3499_v37 = vpop.f32.mrf.mxu3 }
 0x2c1   :  { %v3500_v45 = vadd.f32 %v3499_v37, %v3480_v55 }
 0x2c3   :  { %v3505_v56 = vsel %vm3504_vm0, %v3500_v45, -inf }
 0x2c4   :  { %3506 = vmax.xlane.f32.xlu0 %v3505_v56 }
 0x337   :  { %v3507_v57 = vpop.xlane.xlu0 %3506 }
 0x338   :  { %v3508_v59 = vsub.f32 %v3505_v56, %v3507_v57 }
 0x33a   :  { %v3509_v60 = vmul.f32 1.442695, %v3508_v59 }
 0x33c   :  { %5506 = vpow2.f32 %v3509_v60 }
 0x342   :  { %v5507_v43 = vpop.eup %5506 }
 0x343   :  { %3511 = vadd.xlane.f32.xlu0 %v5507_v43 }
 0x3b6   :  { %v3512_v61 = vpop.xlane.xlu0 %3511 }
 0x3b7   :  { %5508 = vrcp.f32 %v3512_v61 }
 0x3bd   :  { %v5509_v6 = vpop.eup %5508 }
 0x3be   :  { %v3514_v62 = vmul.f32 %v5509_v6, %v5507_v43 }
 0x3c0   :  { %3515 = vst [vmem:[#allocation11] sm:$0xff] %v3514_v62 }
 0x3c1   :  { %3526 = dma.vmem_to_hbm [thread:$0]  %s3522_s4, 128, %s3524_s21, [#allocation4]  }
 0x3c2   :  { %5661 = dma.done.wait [#allocation4], 128  }
 0x3c3   :  { %5662 = vsyncadd [#allocation4], 4294967168 }
 0x3c4   :  { %3531 = vsyncpa [#allocation3], 1 }
 0x3c5   :  { %3532 = vsyncpa [#allocation6], 1 }
 0x3c6   :  { %3533 = vsyncpa [#allocation9], 1 }
 0x3c7   :  { %3534 = vsyncpa [#allocation4], 1 }

</bundles_post_ra>
